<compile_context>
chip_gen: v7x
topology: tpu7x:2x2x1
jax: 0.10.0
libtpu: 0.0.40
codegen_flags: <defaults>
</compile_context>

<pallas_src>
import functools

import jax
import jax.numpy as jnp
from jax.experimental import pallas as pl
from jax.experimental.pallas import tpu as pltpu


# ---------------------------------------------------------------------------
# Pallas kernel: tiled matmul + per-channel scale/bias (+ LeakyReLU) epilogue
# ---------------------------------------------------------------------------

def matmul_scale_bias_kernel(a_ref, b_ref, scale_ref, bias_ref, o_ref, acc_ref,
                             *, negative_slope):
    """acc += A@B over the K grid axis; epilogue: out = acc*scale + bias (+lrelu)."""
    @pl.when(pl.program_id(2) == 0)
    def _():
        acc_ref[...] = jnp.zeros_like(acc_ref)

    acc_ref[...] += jnp.dot(a_ref[...], b_ref[...],
                            preferred_element_type=jnp.float32)

    @pl.when(pl.program_id(2) == pl.num_programs(2) - 1)
    def _():
        out = acc_ref[...] * scale_ref[...] + bias_ref[...]
        if negative_slope is not None:
            out = jnp.where(out > 0, out, negative_slope * out)
        o_ref[...] = out.astype(o_ref.dtype)


# ---------------------------------------------------------------------------
# Pallas wrapper
# ---------------------------------------------------------------------------

def _pick_tile(dim, pref, align):
    """Largest multiple of `align` that divides `dim` and is <= pref, else full dim."""
    if dim <= pref:
        return dim
    best = None
    t = align
    while t <= pref:
        if dim % t == 0:
            best = t
        t += align
    return best if best is not None else dim


def matmul_scale_bias(a, b, scale, bias, *, negative_slope=None):
    """a:(M,K), b:(K,N), scale/bias:(N,) -> (M,N) f32.

    bf16 MXU inputs, f32 accumulation, fused scale/bias/LeakyReLU epilogue.
    """
    M, K = a.shape
    K2, N = b.shape
    assert K == K2
    a = a.astype(jnp.bfloat16)
    b = b.astype(jnp.bfloat16)
    scale2 = scale.reshape(1, N).astype(jnp.float32)
    bias2 = bias.reshape(1, N).astype(jnp.float32)

    # Everything in this model fits in VMEM with full-dim tiles; split N when
    # large so the "parallel" j axis has >=2 blocks (v7x two-TC sharding).
    tm = _pick_tile(M, 1024, 8)
    tn = _pick_tile(N, 256, 128)
    tk = _pick_tile(K, 2048, 128)
    grid = (M // tm, N // tn, K // tk)

    cost = pl.CostEstimate(
        flops=2 * M * N * K,
        transcendentals=0,
        bytes_accessed=M * K * 2 + K * N * 2 + M * N * 4 + 2 * N * 4)

    kernel = functools.partial(matmul_scale_bias_kernel,
                               negative_slope=negative_slope)
    return pl.pallas_call(
        kernel,
        out_shape=jax.ShapeDtypeStruct((M, N), jnp.float32),
        grid_spec=pltpu.PrefetchScalarGridSpec(
            num_scalar_prefetch=0,
            grid=grid,
            in_specs=[
                pl.BlockSpec((tm, tk), lambda i, j, k: (i, k)),
                pl.BlockSpec((tk, tn), lambda i, j, k: (k, j)),
                pl.BlockSpec((1, tn), lambda i, j, k: (0, j)),
                pl.BlockSpec((1, tn), lambda i, j, k: (0, j)),
            ],
            out_specs=pl.BlockSpec((tm, tn), lambda i, j, k: (i, j)),
            scratch_shapes=[pltpu.VMEM((tm, tn), jnp.float32)],
        ),
        compiler_params=pltpu.CompilerParams(
            dimension_semantics=("parallel", "parallel", "arbitrary")),
        cost_estimate=cost,
    )(a, b, scale2, bias2)


# ---------------------------------------------------------------------------
# JAX glue (layout plumbing, im2col for k=4 s=2 p=1 convs)
# ---------------------------------------------------------------------------

def im2col_4x4_s2(x):
    """x: (N, H, W, C) NHWC -> (N*Ho*Wo, 16*C) patches for k=4, stride=2, pad=1."""
    N, H, W, C = x.shape
    Ho, Wo = H // 2, W // 2
    xp = jnp.pad(x, ((0, 0), (1, 1), (1, 1), (0, 0)))
    cols = []
    for di in range(4):
        for dj in range(4):
            cols.append(xp[:, di:di + 2 * Ho:2, dj:dj + 2 * Wo:2, :])
    patches = jnp.concatenate(cols, axis=-1)            # (N, Ho, Wo, 16C)
    return patches.reshape(N * Ho * Wo, 16 * C)


def conv4x4_bn_lrelu(x, w, b, gamma, beta, mean, var, eps=1e-5):
    """Conv2d(k=4,s=2,p=1) + BatchNorm2d (eval, folded) + LeakyReLU(0.2).

    x: NHWC; w: (Cout, Cin, 4, 4) PyTorch layout; others: (Cout,).
    """
    N, H, W, C = x.shape
    Cout = w.shape[0]
    Ho, Wo = H // 2, W // 2
    a = im2col_4x4_s2(x)                                  # (N*Ho*Wo, 16*C)
    # Match im2col feature ordering: index = (di*4 + dj)*C + c
    w_mat = jnp.transpose(w, (2, 3, 1, 0)).reshape(16 * C, Cout)
    inv_std = jax.lax.rsqrt(var + eps)
    scale = gamma * inv_std                               # folded BN scale
    bias_eff = beta + (b - mean) * scale                  # conv bias + BN shift
    y = matmul_scale_bias(a, w_mat, scale, bias_eff, negative_slope=0.2)
    return y.reshape(N, Ho, Wo, Cout)


# ---------------------------------------------------------------------------
# Parameters (Kaiming normal fan_in / leaky_relu gain sqrt(2), zero bias,
# BatchNorm gamma=1 beta=0 running_mean=0 running_var=1) and forward pass.
# ---------------------------------------------------------------------------

def init_params(key, c_in=1, nf=32, c_out=10, H=32, W=16):
    conv_defs = [(c_in, nf), (nf, nf * 2), (nf * 2, nf * 4)]
    lin_in = nf * 4 * H // 8 * W // 8                     # same arithmetic as torch
    lin_defs = [(lin_in, 512), (512, 256), (256, 128), (128, c_out)]
    keys = jax.random.split(key, len(conv_defs) + len(lin_defs))

    convs = []
    for i, (cin, cout) in enumerate(conv_defs):
        fan_in = cin * 4 * 4
        std = (2.0 / fan_in) ** 0.5
        w = (jax.random.normal(keys[i], (cout, cin, 4, 4), jnp.float32)
             * std).astype(jnp.bfloat16)                  # bf16 weights for MXU
        convs.append(dict(
            w=w,
            b=jnp.zeros((cout,), jnp.float32),
            gamma=jnp.ones((cout,), jnp.float32),
            beta=jnp.zeros((cout,), jnp.float32),
            mean=jnp.zeros((cout,), jnp.float32),
            var=jnp.ones((cout,), jnp.float32),
        ))

    lins = []
    for j, (fin, fout) in enumerate(lin_defs):
        std = (2.0 / fin) ** 0.5
        w = (jax.random.normal(keys[len(conv_defs) + j], (fin, fout), jnp.float32)
             * std).astype(jnp.bfloat16)
        lins.append(dict(w=w, b=jnp.zeros((fout,), jnp.float32)))
    return convs, lins


def encoder_forward(x_nchw, params):
    convs, lins = params
    # NCHW -> NHWC (channels on the lane axis)
    x = jnp.transpose(x_nchw, (0, 2, 3, 1)).astype(jnp.float32)

    for p in convs:
        # TODO(synk): BatchNorm2d uses eval-mode running statistics folded into
        # the matmul epilogue; train-mode batch statistics are not computed.
        x = conv4x4_bn_lrelu(x, p["w"], p["b"], p["gamma"], p["beta"],
                             p["mean"], p["var"])

    # torch flattens NCHW: transpose back so feature index = c*H*W + h*W + w.
    n = x.shape[0]
    z = jnp.transpose(x, (0, 3, 1, 2)).reshape(n, -1)

    n_lin = len(lins)
    for i, p in enumerate(lins):
        last = (i == n_lin - 1)
        ones = jnp.ones((p["w"].shape[1],), jnp.float32)
        z = matmul_scale_bias(z, p["w"], ones, p["b"],
                              negative_slope=None if last else 0.2)
        # TODO(synk): nn.Dropout(p=0.5) treated as identity (eval-mode
        # semantics); train-mode stochastic masking not applied.
    return z


if __name__ == "__main__":
    key = jax.random.PRNGKey(0)
    pkey, xkey = jax.random.split(key)
    params = init_params(pkey, c_in=1, nf=32, c_out=10, H=32, W=16)
    # Module defaults imply a (N, 1, 32, 16) input.
    x = jax.random.normal(xkey, (2, 1, 32, 16), jnp.float32)

    fwd = jax.jit(encoder_forward)
    out = jax.block_until_ready(fwd(x, params))
    assert out.shape == (2, 10), out.shape
    assert bool(jnp.all(jnp.isfinite(out)))
    print("KERNEL_OK")
</pallas_src>

<mosaic_0001>
module attributes {stable_mosaic.version = 11 : i64} {
  func.func @matmul_scale_bias_kernel(%arg0: i32, %arg1: i32, %arg2: i32, %arg3: memref<256x16xbf16, #tpu.memory_space<vmem>>, %arg4: memref<16x32xbf16, #tpu.memory_space<vmem>>, %arg5: memref<1x32xf32, #tpu.memory_space<vmem>>, %arg6: memref<1x32xf32, #tpu.memory_space<vmem>>, %arg7: memref<256x32xf32, #tpu.memory_space<vmem>>, %arg8: memref<256x32xf32, #tpu.memory_space<vmem>>) attributes {dimension_semantics = [#tpu.dimension_semantics<parallel>, #tpu.dimension_semantics<parallel>, #tpu.dimension_semantics<arbitrary>], iteration_bounds = array<i64: 1, 1, 1>, scalar_prefetch = 0 : i64, scratch_operands = 1 : i64, tpu.core_type = #tpu.core_type<tc>, window_params = [{transform_indices = @transform_0, window_bounds = array<i64: 256, 16>}, {transform_indices = @transform_1, window_bounds = array<i64: 16, 32>}, {transform_indices = @transform_2, window_bounds = array<i64: 1, 32>}, {transform_indices = @transform_3, window_bounds = array<i64: 1, 32>}, {transform_indices = @transform_4, window_bounds = array<i64: 256, 32>}]} {
    %c0_i32 = arith.constant 0 : i32
    %0 = arith.cmpi eq, %arg2, %c0_i32 : i32
    %1 = arith.extui %0 : i1 to i32
    %c0_i32_0 = arith.constant 0 : i32
    %2 = arith.cmpi ne, %1, %c0_i32_0 : i32
    scf.if %2 {
      %cst_10 = arith.constant 0.000000e+00 : f32
      %12 = vector.broadcast %cst_10 : f32 to vector<256x32xf32>
      %c0_11 = arith.constant 0 : index
      %c0_12 = arith.constant 0 : index
      %13 = vector.load %arg8[%c0_11, %c0_12] : memref<256x32xf32, #tpu.memory_space<vmem>>, vector<256x32xf32>
      tpu.vector_store %arg8[%c0_11, %c0_12], %12 {strides = array<i32>} : memref<256x32xf32, #tpu.memory_space<vmem>>, vector<256x32xf32>,
    } else {
    }
    %c0 = arith.constant 0 : index
    %c0_1 = arith.constant 0 : index
    %3 = vector.load %arg8[%c0, %c0_1] : memref<256x32xf32, #tpu.memory_space<vmem>>, vector<256x32xf32>
    %c0_2 = arith.constant 0 : index
    %c0_3 = arith.constant 0 : index
    %4 = vector.load %arg3[%c0_2, %c0_3] : memref<256x16xbf16, #tpu.memory_space<vmem>>, vector<256x16xbf16>
    %c0_4 = arith.constant 0 : index
    %c0_5 = arith.constant 0 : index
    %5 = vector.load %arg4[%c0_4, %c0_5] : memref<16x32xbf16, #tpu.memory_space<vmem>>, vector<16x32xbf16>
    %cst = arith.constant dense<0.000000e+00> : vector<256x32xf32>
    %6 = tpu.matmul %4, %5, %cst {dimension_numbers = #tpu.dot_dimension_numbers<[1], [0], [0], [1], [0, 0, 1, 1], [], []>} : vector<256x16xbf16>, vector<16x32xbf16>, vector<256x32xf32> -> vector<256x32xf32>
    %7 = arith.addf %3, %6 : vector<256x32xf32>
    %c0_6 = arith.constant 0 : index
    %c0_7 = arith.constant 0 : index
    %8 = vector.load %arg8[%c0_6, %c0_7] : memref<256x32xf32, #tpu.memory_space<vmem>>, vector<256x32xf32>
    tpu.vector_store %arg8[%c0_6, %c0_7], %7 {strides = array<i32>} : memref<256x32xf32, #tpu.memory_space<vmem>>, vector<256x32xf32>,
    %c0_i32_8 = arith.constant 0 : i32
    %9 = arith.cmpi eq, %arg2, %c0_i32_8 : i32
    %10 = arith.extui %9 : i1 to i32
    %c0_i32_9 = arith.constant 0 : i32
    %11 = arith.cmpi ne, %10, %c0_i32_9 : i32
    scf.if %11 {
      %c0_10 = arith.constant 0 : index
      %c0_11 = arith.constant 0 : index
      %12 = vector.load %arg8[%c0_10, %c0_11] : memref<256x32xf32, #tpu.memory_space<vmem>>, vector<256x32xf32>
      %c0_12 = arith.constant 0 : index
      %c0_13 = arith.constant 0 : index
      %13 = vector.load %arg5[%c0_12, %c0_13] : memref<1x32xf32, #tpu.memory_space<vmem>>, vector<1x32xf32>
      %14 = vector.broadcast %13 : vector<1x32xf32> to vector<256x32xf32>
      %15 = arith.mulf %12, %14 : vector<256x32xf32>
      %c0_14 = arith.constant 0 : index
      %c0_15 = arith.constant 0 : index
      %16 = vector.load %arg6[%c0_14, %c0_15] : memref<1x32xf32, #tpu.memory_space<vmem>>, vector<1x32xf32>
      %17 = vector.broadcast %16 : vector<1x32xf32> to vector<256x32xf32>
      %18 = arith.addf %15, %17 : vector<256x32xf32>
      %cst_16 = arith.constant 0.000000e+00 : f32
      %19 = vector.broadcast %cst_16 : f32 to vector<256x32xf32>
      %20 = arith.cmpf ogt, %18, %19 : vector<256x32xf32>
      %cst_17 = arith.constant 2.000000e-01 : f32
      %21 = vector.broadcast %cst_17 : f32 to vector<256x32xf32>
      %22 = arith.mulf %21, %18 : vector<256x32xf32>
      %23 = arith.select %20, %18, %22 : vector<256x32xi1>, vector<256x32xf32>
      %c0_18 = arith.constant 0 : index
      %c0_19 = arith.constant 0 : index
      %24 = vector.load %arg7[%c0_18, %c0_19] : memref<256x32xf32, #tpu.memory_space<vmem>>, vector<256x32xf32>
      tpu.vector_store %arg7[%c0_18, %c0_19], %23 {strides = array<i32>} : memref<256x32xf32, #tpu.memory_space<vmem>>, vector<256x32xf32>,
    } else {
    }
    return
  }
  func.func @transform_0(%arg0: i32, %arg1: i32, %arg2: i32) -> (i32, i32) {
    %c0_i32 = arith.constant 0 : i32
    return %arg0, %arg2 : i32, i32
  }
  func.func @transform_1(%arg0: i32, %arg1: i32, %arg2: i32) -> (i32, i32) {
    %c0_i32 = arith.constant 0 : i32
    return %arg2, %arg1 : i32, i32
  }
  func.func @transform_2(%arg0: i32, %arg1: i32, %arg2: i32) -> (i32, i32) {
    %c0_i32 = arith.constant 0 : i32
    %c0_i32_0 = arith.constant 0 : i32
    return %c0_i32, %arg1 : i32, i32
  }
  func.func @transform_3(%arg0: i32, %arg1: i32, %arg2: i32) -> (i32, i32) {
    %c0_i32 = arith.constant 0 : i32
    %c0_i32_0 = arith.constant 0 : i32
    return %c0_i32, %arg1 : i32, i32
  }
  func.func @transform_4(%arg0: i32, %arg1: i32, %arg2: i32) -> (i32, i32) {
    %c0_i32 = arith.constant 0 : i32
    return %arg0, %arg1 : i32, i32
  }
}

module attributes {stable_mosaic.version = 11 : i64} {
  func.func @matmul_scale_bias_kernel(%arg0: i32, %arg1: i32, %arg2: i32, %arg3: memref<64x512xbf16, #tpu.memory_space<vmem>>, %arg4: memref<512x64xbf16, #tpu.memory_space<vmem>>, %arg5: memref<1x64xf32, #tpu.memory_space<vmem>>, %arg6: memref<1x64xf32, #tpu.memory_space<vmem>>, %arg7: memref<64x64xf32, #tpu.memory_space<vmem>>, %arg8: memref<64x64xf32, #tpu.memory_space<vmem>>) attributes {dimension_semantics = [#tpu.dimension_semantics<parallel>, #tpu.dimension_semantics<parallel>, #tpu.dimension_semantics<arbitrary>], iteration_bounds = array<i64: 1, 1, 1>, scalar_prefetch = 0 : i64, scratch_operands = 1 : i64, tpu.core_type = #tpu.core_type<tc>, window_params = [{transform_indices = @transform_0, window_bounds = array<i64: 64, 512>}, {transform_indices = @transform_1, window_bounds = array<i64: 512, 64>}, {transform_indices = @transform_2, window_bounds = array<i64: 1, 64>}, {transform_indices = @transform_3, window_bounds = array<i64: 1, 64>}, {transform_indices = @transform_4, window_bounds = array<i64: 64, 64>}]} {
    %c0_i32 = arith.constant 0 : i32
    %0 = arith.cmpi eq, %arg2, %c0_i32 : i32
    %1 = arith.extui %0 : i1 to i32
    %c0_i32_0 = arith.constant 0 : i32
    %2 = arith.cmpi ne, %1, %c0_i32_0 : i32
    scf.if %2 {
      %cst_10 = arith.constant 0.000000e+00 : f32
      %12 = vector.broadcast %cst_10 : f32 to vector<64x64xf32>
      %c0_11 = arith.constant 0 : index
      %c0_12 = arith.constant 0 : index
      %13 = vector.load %arg8[%c0_11, %c0_12] : memref<64x64xf32, #tpu.memory_space<vmem>>, vector<64x64xf32>
      tpu.vector_store %arg8[%c0_11, %c0_12], %12 {strides = array<i32>} : memref<64x64xf32, #tpu.memory_space<vmem>>, vector<64x64xf32>,
    } else {
    }
    %c0 = arith.constant 0 : index
    %c0_1 = arith.constant 0 : index
    %3 = vector.load %arg8[%c0, %c0_1] : memref<64x64xf32, #tpu.memory_space<vmem>>, vector<64x64xf32>
    %c0_2 = arith.constant 0 : index
    %c0_3 = arith.constant 0 : index
    %4 = vector.load %arg3[%c0_2, %c0_3] : memref<64x512xbf16, #tpu.memory_space<vmem>>, vector<64x512xbf16>
    %c0_4 = arith.constant 0 : index
    %c0_5 = arith.constant 0 : index
    %5 = vector.load %arg4[%c0_4, %c0_5] : memref<512x64xbf16, #tpu.memory_space<vmem>>, vector<512x64xbf16>
    %cst = arith.constant dense<0.000000e+00> : vector<64x64xf32>
    %6 = tpu.matmul %4, %5, %cst {dimension_numbers = #tpu.dot_dimension_numbers<[1], [0], [0], [1], [0, 0, 1, 1], [], []>} : vector<64x512xbf16>, vector<512x64xbf16>, vector<64x64xf32> -> vector<64x64xf32>
    %7 = arith.addf %3, %6 : vector<64x64xf32>
    %c0_6 = arith.constant 0 : index
    %c0_7 = arith.constant 0 : index
    %8 = vector.load %arg8[%c0_6, %c0_7] : memref<64x64xf32, #tpu.memory_space<vmem>>, vector<64x64xf32>
    tpu.vector_store %arg8[%c0_6, %c0_7], %7 {strides = array<i32>} : memref<64x64xf32, #tpu.memory_space<vmem>>, vector<64x64xf32>,
    %c0_i32_8 = arith.constant 0 : i32
    %9 = arith.cmpi eq, %arg2, %c0_i32_8 : i32
    %10 = arith.extui %9 : i1 to i32
    %c0_i32_9 = arith.constant 0 : i32
    %11 = arith.cmpi ne, %10, %c0_i32_9 : i32
    scf.if %11 {
      %c0_10 = arith.constant 0 : index
      %c0_11 = arith.constant 0 : index
      %12 = vector.load %arg8[%c0_10, %c0_11] : memref<64x64xf32, #tpu.memory_space<vmem>>, vector<64x64xf32>
      %c0_12 = arith.constant 0 : index
      %c0_13 = arith.constant 0 : index
      %13 = vector.load %arg5[%c0_12, %c0_13] : memref<1x64xf32, #tpu.memory_space<vmem>>, vector<1x64xf32>
      %14 = vector.broadcast %13 : vector<1x64xf32> to vector<64x64xf32>
      %15 = arith.mulf %12, %14 : vector<64x64xf32>
      %c0_14 = arith.constant 0 : index
      %c0_15 = arith.constant 0 : index
      %16 = vector.load %arg6[%c0_14, %c0_15] : memref<1x64xf32, #tpu.memory_space<vmem>>, vector<1x64xf32>
      %17 = vector.broadcast %16 : vector<1x64xf32> to vector<64x64xf32>
      %18 = arith.addf %15, %17 : vector<64x64xf32>
      %cst_16 = arith.constant 0.000000e+00 : f32
      %19 = vector.broadcast %cst_16 : f32 to vector<64x64xf32>
      %20 = arith.cmpf ogt, %18, %19 : vector<64x64xf32>
      %cst_17 = arith.constant 2.000000e-01 : f32
      %21 = vector.broadcast %cst_17 : f32 to vector<64x64xf32>
      %22 = arith.mulf %21, %18 : vector<64x64xf32>
      %23 = arith.select %20, %18, %22 : vector<64x64xi1>, vector<64x64xf32>
      %c0_18 = arith.constant 0 : index
      %c0_19 = arith.constant 0 : index
      %24 = vector.load %arg7[%c0_18, %c0_19] : memref<64x64xf32, #tpu.memory_space<vmem>>, vector<64x64xf32>
      tpu.vector_store %arg7[%c0_18, %c0_19], %23 {strides = array<i32>} : memref<64x64xf32, #tpu.memory_space<vmem>>, vector<64x64xf32>,
    } else {
    }
    return
  }
  func.func @transform_0(%arg0: i32, %arg1: i32, %arg2: i32) -> (i32, i32) {
    %c0_i32 = arith.constant 0 : i32
    return %arg0, %arg2 : i32, i32
  }
  func.func @transform_1(%arg0: i32, %arg1: i32, %arg2: i32) -> (i32, i32) {
    %c0_i32 = arith.constant 0 : i32
    return %arg2, %arg1 : i32, i32
  }
  func.func @transform_2(%arg0: i32, %arg1: i32, %arg2: i32) -> (i32, i32) {
    %c0_i32 = arith.constant 0 : i32
    %c0_i32_0 = arith.constant 0 : i32
    return %c0_i32, %arg1 : i32, i32
  }
  func.func @transform_3(%arg0: i32, %arg1: i32, %arg2: i32) -> (i32, i32) {
    %c0_i32 = arith.constant 0 : i32
    %c0_i32_0 = arith.constant 0 : i32
    return %c0_i32, %arg1 : i32, i32
  }
  func.func @transform_4(%arg0: i32, %arg1: i32, %arg2: i32) -> (i32, i32) {
    %c0_i32 = arith.constant 0 : i32
    return %arg0, %arg1 : i32, i32
  }
}

module attributes {stable_mosaic.version = 11 : i64} {
  func.func @matmul_scale_bias_kernel(%arg0: i32, %arg1: i32, %arg2: i32, %arg3: memref<16x1024xbf16, #tpu.memory_space<vmem>>, %arg4: memref<1024x128xbf16, #tpu.memory_space<vmem>>, %arg5: memref<1x128xf32, #tpu.memory_space<vmem>>, %arg6: memref<1x128xf32, #tpu.memory_space<vmem>>, %arg7: memref<16x128xf32, #tpu.memory_space<vmem>>, %arg8: memref<16x128xf32, #tpu.memory_space<vmem>>) attributes {dimension_semantics = [#tpu.dimension_semantics<parallel>, #tpu.dimension_semantics<parallel>, #tpu.dimension_semantics<arbitrary>], iteration_bounds = array<i64: 1, 1, 1>, scalar_prefetch = 0 : i64, scratch_operands = 1 : i64, tpu.core_type = #tpu.core_type<tc>, window_params = [{transform_indices = @transform_0, window_bounds = array<i64: 16, 1024>}, {transform_indices = @transform_1, window_bounds = array<i64: 1024, 128>}, {transform_indices = @transform_2, window_bounds = array<i64: 1, 128>}, {transform_indices = @transform_3, window_bounds = array<i64: 1, 128>}, {transform_indices = @transform_4, window_bounds = array<i64: 16, 128>}]} {
    %c0_i32 = arith.constant 0 : i32
    %0 = arith.cmpi eq, %arg2, %c0_i32 : i32
    %1 = arith.extui %0 : i1 to i32
    %c0_i32_0 = arith.constant 0 : i32
    %2 = arith.cmpi ne, %1, %c0_i32_0 : i32
    scf.if %2 {
      %cst_10 = arith.constant 0.000000e+00 : f32
      %12 = vector.broadcast %cst_10 : f32 to vector<16x128xf32>
      %c0_11 = arith.constant 0 : index
      %c0_12 = arith.constant 0 : index
      %13 = vector.load %arg8[%c0_11, %c0_12] : memref<16x128xf32, #tpu.memory_space<vmem>>, vector<16x128xf32>
      tpu.vector_store %arg8[%c0_11, %c0_12], %12 {strides = array<i32>} : memref<16x128xf32, #tpu.memory_space<vmem>>, vector<16x128xf32>,
    } else {
    }
    %c0 = arith.constant 0 : index
    %c0_1 = arith.constant 0 : index
    %3 = vector.load %arg8[%c0, %c0_1] : memref<16x128xf32, #tpu.memory_space<vmem>>, vector<16x128xf32>
    %c0_2 = arith.constant 0 : index
    %c0_3 = arith.constant 0 : index
    %4 = vector.load %arg3[%c0_2, %c0_3] : memref<16x1024xbf16, #tpu.memory_space<vmem>>, vector<16x1024xbf16>
    %c0_4 = arith.constant 0 : index
    %c0_5 = arith.constant 0 : index
    %5 = vector.load %arg4[%c0_4, %c0_5] : memref<1024x128xbf16, #tpu.memory_space<vmem>>, vector<1024x128xbf16>
    %cst = arith.constant dense<0.000000e+00> : vector<16x128xf32>
    %6 = tpu.matmul %4, %5, %cst {dimension_numbers = #tpu.dot_dimension_numbers<[1], [0], [0], [1], [0, 0, 1, 1], [], []>} : vector<16x1024xbf16>, vector<1024x128xbf16>, vector<16x128xf32> -> vector<16x128xf32>
    %7 = arith.addf %3, %6 : vector<16x128xf32>
    %c0_6 = arith.constant 0 : index
    %c0_7 = arith.constant 0 : index
    %8 = vector.load %arg8[%c0_6, %c0_7] : memref<16x128xf32, #tpu.memory_space<vmem>>, vector<16x128xf32>
    tpu.vector_store %arg8[%c0_6, %c0_7], %7 {strides = array<i32>} : memref<16x128xf32, #tpu.memory_space<vmem>>, vector<16x128xf32>,
    %c0_i32_8 = arith.constant 0 : i32
    %9 = arith.cmpi eq, %arg2, %c0_i32_8 : i32
    %10 = arith.extui %9 : i1 to i32
    %c0_i32_9 = arith.constant 0 : i32
    %11 = arith.cmpi ne, %10, %c0_i32_9 : i32
    scf.if %11 {
      %c0_10 = arith.constant 0 : index
      %c0_11 = arith.constant 0 : index
      %12 = vector.load %arg8[%c0_10, %c0_11] : memref<16x128xf32, #tpu.memory_space<vmem>>, vector<16x128xf32>
      %c0_12 = arith.constant 0 : index
      %c0_13 = arith.constant 0 : index
      %13 = vector.load %arg5[%c0_12, %c0_13] : memref<1x128xf32, #tpu.memory_space<vmem>>, vector<1x128xf32>
      %14 = vector.broadcast %13 : vector<1x128xf32> to vector<16x128xf32>
      %15 = arith.mulf %12, %14 : vector<16x128xf32>
      %c0_14 = arith.constant 0 : index
      %c0_15 = arith.constant 0 : index
      %16 = vector.load %arg6[%c0_14, %c0_15] : memref<1x128xf32, #tpu.memory_space<vmem>>, vector<1x128xf32>
      %17 = vector.broadcast %16 : vector<1x128xf32> to vector<16x128xf32>
      %18 = arith.addf %15, %17 : vector<16x128xf32>
      %cst_16 = arith.constant 0.000000e+00 : f32
      %19 = vector.broadcast %cst_16 : f32 to vector<16x128xf32>
      %20 = arith.cmpf ogt, %18, %19 : vector<16x128xf32>
      %cst_17 = arith.constant 2.000000e-01 : f32
      %21 = vector.broadcast %cst_17 : f32 to vector<16x128xf32>
      %22 = arith.mulf %21, %18 : vector<16x128xf32>
      %23 = arith.select %20, %18, %22 : vector<16x128xi1>, vector<16x128xf32>
      %c0_18 = arith.constant 0 : index
      %c0_19 = arith.constant 0 : index
      %24 = vector.load %arg7[%c0_18, %c0_19] : memref<16x128xf32, #tpu.memory_space<vmem>>, vector<16x128xf32>
      tpu.vector_store %arg7[%c0_18, %c0_19], %23 {strides = array<i32>} : memref<16x128xf32, #tpu.memory_space<vmem>>, vector<16x128xf32>,
    } else {
    }
    return
  }
  func.func @transform_0(%arg0: i32, %arg1: i32, %arg2: i32) -> (i32, i32) {
    %c0_i32 = arith.constant 0 : i32
    return %arg0, %arg2 : i32, i32
  }
  func.func @transform_1(%arg0: i32, %arg1: i32, %arg2: i32) -> (i32, i32) {
    %c0_i32 = arith.constant 0 : i32
    return %arg2, %arg1 : i32, i32
  }
  func.func @transform_2(%arg0: i32, %arg1: i32, %arg2: i32) -> (i32, i32) {
    %c0_i32 = arith.constant 0 : i32
    %c0_i32_0 = arith.constant 0 : i32
    return %c0_i32, %arg1 : i32, i32
  }
  func.func @transform_3(%arg0: i32, %arg1: i32, %arg2: i32) -> (i32, i32) {
    %c0_i32 = arith.constant 0 : i32
    %c0_i32_0 = arith.constant 0 : i32
    return %c0_i32, %arg1 : i32, i32
  }
  func.func @transform_4(%arg0: i32, %arg1: i32, %arg2: i32) -> (i32, i32) {
    %c0_i32 = arith.constant 0 : i32
    return %arg0, %arg1 : i32, i32
  }
}

module attributes {stable_mosaic.version = 11 : i64} {
  func.func @matmul_scale_bias_kernel(%arg0: i32, %arg1: i32, %arg2: i32, %arg3: memref<2x1024xbf16, #tpu.memory_space<vmem>>, %arg4: memref<1024x256xbf16, #tpu.memory_space<vmem>>, %arg5: memref<1x256xf32, #tpu.memory_space<vmem>>, %arg6: memref<1x256xf32, #tpu.memory_space<vmem>>, %arg7: memref<2x256xf32, #tpu.memory_space<vmem>>, %arg8: memref<2x256xf32, #tpu.memory_space<vmem>>) attributes {dimension_semantics = [#tpu.dimension_semantics<parallel>, #tpu.dimension_semantics<parallel>, #tpu.dimension_semantics<arbitrary>], iteration_bounds = array<i64: 1, 2, 1>, scalar_prefetch = 0 : i64, scratch_operands = 1 : i64, tpu.core_type = #tpu.core_type<tc>, window_params = [{transform_indices = @transform_0, window_bounds = array<i64: 2, 1024>}, {transform_indices = @transform_1, window_bounds = array<i64: 1024, 256>}, {transform_indices = @transform_2, window_bounds = array<i64: 1, 256>}, {transform_indices = @transform_3, window_bounds = array<i64: 1, 256>}, {transform_indices = @transform_4, window_bounds = array<i64: 2, 256>}]} {
    %c0_i32 = arith.constant 0 : i32
    %0 = arith.cmpi eq, %arg2, %c0_i32 : i32
    %1 = arith.extui %0 : i1 to i32
    %c0_i32_0 = arith.constant 0 : i32
    %2 = arith.cmpi ne, %1, %c0_i32_0 : i32
    scf.if %2 {
      %cst_10 = arith.constant 0.000000e+00 : f32
      %12 = vector.broadcast %cst_10 : f32 to vector<2x256xf32>
      %c0_11 = arith.constant 0 : index
      %c0_12 = arith.constant 0 : index
      %13 = vector.load %arg8[%c0_11, %c0_12] : memref<2x256xf32, #tpu.memory_space<vmem>>, vector<2x256xf32>
      tpu.vector_store %arg8[%c0_11, %c0_12], %12 {strides = array<i32>} : memref<2x256xf32, #tpu.memory_space<vmem>>, vector<2x256xf32>,
    } else {
    }
    %c0 = arith.constant 0 : index
    %c0_1 = arith.constant 0 : index
    %3 = vector.load %arg8[%c0, %c0_1] : memref<2x256xf32, #tpu.memory_space<vmem>>, vector<2x256xf32>
    %c0_2 = arith.constant 0 : index
    %c0_3 = arith.constant 0 : index
    %4 = vector.load %arg3[%c0_2, %c0_3] : memref<2x1024xbf16, #tpu.memory_space<vmem>>, vector<2x1024xbf16>
    %c0_4 = arith.constant 0 : index
    %c0_5 = arith.constant 0 : index
    %5 = vector.load %arg4[%c0_4, %c0_5] : memref<1024x256xbf16, #tpu.memory_space<vmem>>, vector<1024x256xbf16>
    %cst = arith.constant dense<0.000000e+00> : vector<2x256xf32>
    %6 = tpu.matmul %4, %5, %cst {dimension_numbers = #tpu.dot_dimension_numbers<[1], [0], [0], [1], [0, 0, 1, 1], [], []>} : vector<2x1024xbf16>, vector<1024x256xbf16>, vector<2x256xf32> -> vector<2x256xf32>
    %7 = arith.addf %3, %6 : vector<2x256xf32>
    %c0_6 = arith.constant 0 : index
    %c0_7 = arith.constant 0 : index
    %8 = vector.load %arg8[%c0_6, %c0_7] : memref<2x256xf32, #tpu.memory_space<vmem>>, vector<2x256xf32>
    tpu.vector_store %arg8[%c0_6, %c0_7], %7 {strides = array<i32>} : memref<2x256xf32, #tpu.memory_space<vmem>>, vector<2x256xf32>,
    %c0_i32_8 = arith.constant 0 : i32
    %9 = arith.cmpi eq, %arg2, %c0_i32_8 : i32
    %10 = arith.extui %9 : i1 to i32
    %c0_i32_9 = arith.constant 0 : i32
    %11 = arith.cmpi ne, %10, %c0_i32_9 : i32
    scf.if %11 {
      %c0_10 = arith.constant 0 : index
      %c0_11 = arith.constant 0 : index
      %12 = vector.load %arg8[%c0_10, %c0_11] : memref<2x256xf32, #tpu.memory_space<vmem>>, vector<2x256xf32>
      %c0_12 = arith.constant 0 : index
      %c0_13 = arith.constant 0 : index
      %13 = vector.load %arg5[%c0_12, %c0_13] : memref<1x256xf32, #tpu.memory_space<vmem>>, vector<1x256xf32>
      %14 = vector.broadcast %13 : vector<1x256xf32> to vector<2x256xf32>
      %15 = arith.mulf %12, %14 : vector<2x256xf32>
      %c0_14 = arith.constant 0 : index
      %c0_15 = arith.constant 0 : index
      %16 = vector.load %arg6[%c0_14, %c0_15] : memref<1x256xf32, #tpu.memory_space<vmem>>, vector<1x256xf32>
      %17 = vector.broadcast %16 : vector<1x256xf32> to vector<2x256xf32>
      %18 = arith.addf %15, %17 : vector<2x256xf32>
      %cst_16 = arith.constant 0.000000e+00 : f32
      %19 = vector.broadcast %cst_16 : f32 to vector<2x256xf32>
      %20 = arith.cmpf ogt, %18, %19 : vector<2x256xf32>
      %cst_17 = arith.constant 2.000000e-01 : f32
      %21 = vector.broadcast %cst_17 : f32 to vector<2x256xf32>
      %22 = arith.mulf %21, %18 : vector<2x256xf32>
      %23 = arith.select %20, %18, %22 : vector<2x256xi1>, vector<2x256xf32>
      %c0_18 = arith.constant 0 : index
      %c0_19 = arith.constant 0 : index
      %24 = vector.load %arg7[%c0_18, %c0_19] : memref<2x256xf32, #tpu.memory_space<vmem>>, vector<2x256xf32>
      tpu.vector_store %arg7[%c0_18, %c0_19], %23 {strides = array<i32>} : memref<2x256xf32, #tpu.memory_space<vmem>>, vector<2x256xf32>,
    } else {
    }
    return
  }
  func.func @transform_0(%arg0: i32, %arg1: i32, %arg2: i32) -> (i32, i32) {
    %c0_i32 = arith.constant 0 : i32
    return %arg0, %arg2 : i32, i32
  }
  func.func @transform_1(%arg0: i32, %arg1: i32, %arg2: i32) -> (i32, i32) {
    %c0_i32 = arith.constant 0 : i32
    return %arg2, %arg1 : i32, i32
  }
  func.func @transform_2(%arg0: i32, %arg1: i32, %arg2: i32) -> (i32, i32) {
    %c0_i32 = arith.constant 0 : i32
    %c0_i32_0 = arith.constant 0 : i32
    return %c0_i32, %arg1 : i32, i32
  }
  func.func @transform_3(%arg0: i32, %arg1: i32, %arg2: i32) -> (i32, i32) {
    %c0_i32 = arith.constant 0 : i32
    %c0_i32_0 = arith.constant 0 : i32
    return %c0_i32, %arg1 : i32, i32
  }
  func.func @transform_4(%arg0: i32, %arg1: i32, %arg2: i32) -> (i32, i32) {
    %c0_i32 = arith.constant 0 : i32
    return %arg0, %arg1 : i32, i32
  }
}

module attributes {stable_mosaic.version = 11 : i64} {
  func.func @matmul_scale_bias_kernel(%arg0: i32, %arg1: i32, %arg2: i32, %arg3: memref<2x512xbf16, #tpu.memory_space<vmem>>, %arg4: memref<512x256xbf16, #tpu.memory_space<vmem>>, %arg5: memref<1x256xf32, #tpu.memory_space<vmem>>, %arg6: memref<1x256xf32, #tpu.memory_space<vmem>>, %arg7: memref<2x256xf32, #tpu.memory_space<vmem>>, %arg8: memref<2x256xf32, #tpu.memory_space<vmem>>) attributes {dimension_semantics = [#tpu.dimension_semantics<parallel>, #tpu.dimension_semantics<parallel>, #tpu.dimension_semantics<arbitrary>], iteration_bounds = array<i64: 1, 1, 1>, scalar_prefetch = 0 : i64, scratch_operands = 1 : i64, tpu.core_type = #tpu.core_type<tc>, window_params = [{transform_indices = @transform_0, window_bounds = array<i64: 2, 512>}, {transform_indices = @transform_1, window_bounds = array<i64: 512, 256>}, {transform_indices = @transform_2, window_bounds = array<i64: 1, 256>}, {transform_indices = @transform_3, window_bounds = array<i64: 1, 256>}, {transform_indices = @transform_4, window_bounds = array<i64: 2, 256>}]} {
    %c0_i32 = arith.constant 0 : i32
    %0 = arith.cmpi eq, %arg2, %c0_i32 : i32
    %1 = arith.extui %0 : i1 to i32
    %c0_i32_0 = arith.constant 0 : i32
    %2 = arith.cmpi ne, %1, %c0_i32_0 : i32
    scf.if %2 {
      %cst_10 = arith.constant 0.000000e+00 : f32
      %12 = vector.broadcast %cst_10 : f32 to vector<2x256xf32>
      %c0_11 = arith.constant 0 : index
      %c0_12 = arith.constant 0 : index
      %13 = vector.load %arg8[%c0_11, %c0_12] : memref<2x256xf32, #tpu.memory_space<vmem>>, vector<2x256xf32>
      tpu.vector_store %arg8[%c0_11, %c0_12], %12 {strides = array<i32>} : memref<2x256xf32, #tpu.memory_space<vmem>>, vector<2x256xf32>,
    } else {
    }
    %c0 = arith.constant 0 : index
    %c0_1 = arith.constant 0 : index
    %3 = vector.load %arg8[%c0, %c0_1] : memref<2x256xf32, #tpu.memory_space<vmem>>, vector<2x256xf32>
    %c0_2 = arith.constant 0 : index
    %c0_3 = arith.constant 0 : index
    %4 = vector.load %arg3[%c0_2, %c0_3] : memref<2x512xbf16, #tpu.memory_space<vmem>>, vector<2x512xbf16>
    %c0_4 = arith.constant 0 : index
    %c0_5 = arith.constant 0 : index
    %5 = vector.load %arg4[%c0_4, %c0_5] : memref<512x256xbf16, #tpu.memory_space<vmem>>, vector<512x256xbf16>
    %cst = arith.constant dense<0.000000e+00> : vector<2x256xf32>
    %6 = tpu.matmul %4, %5, %cst {dimension_numbers = #tpu.dot_dimension_numbers<[1], [0], [0], [1], [0, 0, 1, 1], [], []>} : vector<2x512xbf16>, vector<512x256xbf16>, vector<2x256xf32> -> vector<2x256xf32>
    %7 = arith.addf %3, %6 : vector<2x256xf32>
    %c0_6 = arith.constant 0 : index
    %c0_7 = arith.constant 0 : index
    %8 = vector.load %arg8[%c0_6, %c0_7] : memref<2x256xf32, #tpu.memory_space<vmem>>, vector<2x256xf32>
    tpu.vector_store %arg8[%c0_6, %c0_7], %7 {strides = array<i32>} : memref<2x256xf32, #tpu.memory_space<vmem>>, vector<2x256xf32>,
    %c0_i32_8 = arith.constant 0 : i32
    %9 = arith.cmpi eq, %arg2, %c0_i32_8 : i32
    %10 = arith.extui %9 : i1 to i32
    %c0_i32_9 = arith.constant 0 : i32
    %11 = arith.cmpi ne, %10, %c0_i32_9 : i32
    scf.if %11 {
      %c0_10 = arith.constant 0 : index
      %c0_11 = arith.constant 0 : index
      %12 = vector.load %arg8[%c0_10, %c0_11] : memref<2x256xf32, #tpu.memory_space<vmem>>, vector<2x256xf32>
      %c0_12 = arith.constant 0 : index
      %c0_13 = arith.constant 0 : index
      %13 = vector.load %arg5[%c0_12, %c0_13] : memref<1x256xf32, #tpu.memory_space<vmem>>, vector<1x256xf32>
      %14 = vector.broadcast %13 : vector<1x256xf32> to vector<2x256xf32>
      %15 = arith.mulf %12, %14 : vector<2x256xf32>
      %c0_14 = arith.constant 0 : index
      %c0_15 = arith.constant 0 : index
      %16 = vector.load %arg6[%c0_14, %c0_15] : memref<1x256xf32, #tpu.memory_space<vmem>>, vector<1x256xf32>
      %17 = vector.broadcast %16 : vector<1x256xf32> to vector<2x256xf32>
      %18 = arith.addf %15, %17 : vector<2x256xf32>
      %cst_16 = arith.constant 0.000000e+00 : f32
      %19 = vector.broadcast %cst_16 : f32 to vector<2x256xf32>
      %20 = arith.cmpf ogt, %18, %19 : vector<2x256xf32>
      %cst_17 = arith.constant 2.000000e-01 : f32
      %21 = vector.broadcast %cst_17 : f32 to vector<2x256xf32>
      %22 = arith.mulf %21, %18 : vector<2x256xf32>
      %23 = arith.select %20, %18, %22 : vector<2x256xi1>, vector<2x256xf32>
      %c0_18 = arith.constant 0 : index
      %c0_19 = arith.constant 0 : index
      %24 = vector.load %arg7[%c0_18, %c0_19] : memref<2x256xf32, #tpu.memory_space<vmem>>, vector<2x256xf32>
      tpu.vector_store %arg7[%c0_18, %c0_19], %23 {strides = array<i32>} : memref<2x256xf32, #tpu.memory_space<vmem>>, vector<2x256xf32>,
    } else {
    }
    return
  }
  func.func @transform_0(%arg0: i32, %arg1: i32, %arg2: i32) -> (i32, i32) {
    %c0_i32 = arith.constant 0 : i32
    return %arg0, %arg2 : i32, i32
  }
  func.func @transform_1(%arg0: i32, %arg1: i32, %arg2: i32) -> (i32, i32) {
    %c0_i32 = arith.constant 0 : i32
    return %arg2, %arg1 : i32, i32
  }
  func.func @transform_2(%arg0: i32, %arg1: i32, %arg2: i32) -> (i32, i32) {
    %c0_i32 = arith.constant 0 : i32
    %c0_i32_0 = arith.constant 0 : i32
    return %c0_i32, %arg1 : i32, i32
  }
  func.func @transform_3(%arg0: i32, %arg1: i32, %arg2: i32) -> (i32, i32) {
    %c0_i32 = arith.constant 0 : i32
    %c0_i32_0 = arith.constant 0 : i32
    return %c0_i32, %arg1 : i32, i32
  }
  func.func @transform_4(%arg0: i32, %arg1: i32, %arg2: i32) -> (i32, i32) {
    %c0_i32 = arith.constant 0 : i32
    return %arg0, %arg1 : i32, i32
  }
}

module attributes {stable_mosaic.version = 11 : i64} {
  func.func @matmul_scale_bias_kernel(%arg0: i32, %arg1: i32, %arg2: i32, %arg3: memref<2x256xbf16, #tpu.memory_space<vmem>>, %arg4: memref<256x128xbf16, #tpu.memory_space<vmem>>, %arg5: memref<1x128xf32, #tpu.memory_space<vmem>>, %arg6: memref<1x128xf32, #tpu.memory_space<vmem>>, %arg7: memref<2x128xf32, #tpu.memory_space<vmem>>, %arg8: memref<2x128xf32, #tpu.memory_space<vmem>>) attributes {dimension_semantics = [#tpu.dimension_semantics<parallel>, #tpu.dimension_semantics<parallel>, #tpu.dimension_semantics<arbitrary>], iteration_bounds = array<i64: 1, 1, 1>, scalar_prefetch = 0 : i64, scratch_operands = 1 : i64, tpu.core_type = #tpu.core_type<tc>, window_params = [{transform_indices = @transform_0, window_bounds = array<i64: 2, 256>}, {transform_indices = @transform_1, window_bounds = array<i64: 256, 128>}, {transform_indices = @transform_2, window_bounds = array<i64: 1, 128>}, {transform_indices = @transform_3, window_bounds = array<i64: 1, 128>}, {transform_indices = @transform_4, window_bounds = array<i64: 2, 128>}]} {
    %c0_i32 = arith.constant 0 : i32
    %0 = arith.cmpi eq, %arg2, %c0_i32 : i32
    %1 = arith.extui %0 : i1 to i32
    %c0_i32_0 = arith.constant 0 : i32
    %2 = arith.cmpi ne, %1, %c0_i32_0 : i32
    scf.if %2 {
      %cst_10 = arith.constant 0.000000e+00 : f32
      %12 = vector.broadcast %cst_10 : f32 to vector<2x128xf32>
      %c0_11 = arith.constant 0 : index
      %c0_12 = arith.constant 0 : index
      %13 = vector.load %arg8[%c0_11, %c0_12] : memref<2x128xf32, #tpu.memory_space<vmem>>, vector<2x128xf32>
      tpu.vector_store %arg8[%c0_11, %c0_12], %12 {strides = array<i32>} : memref<2x128xf32, #tpu.memory_space<vmem>>, vector<2x128xf32>,
    } else {
    }
    %c0 = arith.constant 0 : index
    %c0_1 = arith.constant 0 : index
    %3 = vector.load %arg8[%c0, %c0_1] : memref<2x128xf32, #tpu.memory_space<vmem>>, vector<2x128xf32>
    %c0_2 = arith.constant 0 : index
    %c0_3 = arith.constant 0 : index
    %4 = vector.load %arg3[%c0_2, %c0_3] : memref<2x256xbf16, #tpu.memory_space<vmem>>, vector<2x256xbf16>
    %c0_4 = arith.constant 0 : index
    %c0_5 = arith.constant 0 : index
    %5 = vector.load %arg4[%c0_4, %c0_5] : memref<256x128xbf16, #tpu.memory_space<vmem>>, vector<256x128xbf16>
    %cst = arith.constant dense<0.000000e+00> : vector<2x128xf32>
    %6 = tpu.matmul %4, %5, %cst {dimension_numbers = #tpu.dot_dimension_numbers<[1], [0], [0], [1], [0, 0, 1, 1], [], []>} : vector<2x256xbf16>, vector<256x128xbf16>, vector<2x128xf32> -> vector<2x128xf32>
    %7 = arith.addf %3, %6 : vector<2x128xf32>
    %c0_6 = arith.constant 0 : index
    %c0_7 = arith.constant 0 : index
    %8 = vector.load %arg8[%c0_6, %c0_7] : memref<2x128xf32, #tpu.memory_space<vmem>>, vector<2x128xf32>
    tpu.vector_store %arg8[%c0_6, %c0_7], %7 {strides = array<i32>} : memref<2x128xf32, #tpu.memory_space<vmem>>, vector<2x128xf32>,
    %c0_i32_8 = arith.constant 0 : i32
    %9 = arith.cmpi eq, %arg2, %c0_i32_8 : i32
    %10 = arith.extui %9 : i1 to i32
    %c0_i32_9 = arith.constant 0 : i32
    %11 = arith.cmpi ne, %10, %c0_i32_9 : i32
    scf.if %11 {
      %c0_10 = arith.constant 0 : index
      %c0_11 = arith.constant 0 : index
      %12 = vector.load %arg8[%c0_10, %c0_11] : memref<2x128xf32, #tpu.memory_space<vmem>>, vector<2x128xf32>
      %c0_12 = arith.constant 0 : index
      %c0_13 = arith.constant 0 : index
      %13 = vector.load %arg5[%c0_12, %c0_13] : memref<1x128xf32, #tpu.memory_space<vmem>>, vector<1x128xf32>
      %14 = vector.broadcast %13 : vector<1x128xf32> to vector<2x128xf32>
      %15 = arith.mulf %12, %14 : vector<2x128xf32>
      %c0_14 = arith.constant 0 : index
      %c0_15 = arith.constant 0 : index
      %16 = vector.load %arg6[%c0_14, %c0_15] : memref<1x128xf32, #tpu.memory_space<vmem>>, vector<1x128xf32>
      %17 = vector.broadcast %16 : vector<1x128xf32> to vector<2x128xf32>
      %18 = arith.addf %15, %17 : vector<2x128xf32>
      %cst_16 = arith.constant 0.000000e+00 : f32
      %19 = vector.broadcast %cst_16 : f32 to vector<2x128xf32>
      %20 = arith.cmpf ogt, %18, %19 : vector<2x128xf32>
      %cst_17 = arith.constant 2.000000e-01 : f32
      %21 = vector.broadcast %cst_17 : f32 to vector<2x128xf32>
      %22 = arith.mulf %21, %18 : vector<2x128xf32>
      %23 = arith.select %20, %18, %22 : vector<2x128xi1>, vector<2x128xf32>
      %c0_18 = arith.constant 0 : index
      %c0_19 = arith.constant 0 : index
      %24 = vector.load %arg7[%c0_18, %c0_19] : memref<2x128xf32, #tpu.memory_space<vmem>>, vector<2x128xf32>
      tpu.vector_store %arg7[%c0_18, %c0_19], %23 {strides = array<i32>} : memref<2x128xf32, #tpu.memory_space<vmem>>, vector<2x128xf32>,
    } else {
    }
    return
  }
  func.func @transform_0(%arg0: i32, %arg1: i32, %arg2: i32) -> (i32, i32) {
    %c0_i32 = arith.constant 0 : i32
    return %arg0, %arg2 : i32, i32
  }
  func.func @transform_1(%arg0: i32, %arg1: i32, %arg2: i32) -> (i32, i32) {
    %c0_i32 = arith.constant 0 : i32
    return %arg2, %arg1 : i32, i32
  }
  func.func @transform_2(%arg0: i32, %arg1: i32, %arg2: i32) -> (i32, i32) {
    %c0_i32 = arith.constant 0 : i32
    %c0_i32_0 = arith.constant 0 : i32
    return %c0_i32, %arg1 : i32, i32
  }
  func.func @transform_3(%arg0: i32, %arg1: i32, %arg2: i32) -> (i32, i32) {
    %c0_i32 = arith.constant 0 : i32
    %c0_i32_0 = arith.constant 0 : i32
    return %c0_i32, %arg1 : i32, i32
  }
  func.func @transform_4(%arg0: i32, %arg1: i32, %arg2: i32) -> (i32, i32) {
    %c0_i32 = arith.constant 0 : i32
    return %arg0, %arg1 : i32, i32
  }
}

module attributes {stable_mosaic.version = 11 : i64} {
  func.func @matmul_scale_bias_kernel(%arg0: i32, %arg1: i32, %arg2: i32, %arg3: memref<2x128xbf16, #tpu.memory_space<vmem>>, %arg4: memref<128x10xbf16, #tpu.memory_space<vmem>>, %arg5: memref<1x10xf32, #tpu.memory_space<vmem>>, %arg6: memref<1x10xf32, #tpu.memory_space<vmem>>, %arg7: memref<2x10xf32, #tpu.memory_space<vmem>>, %arg8: memref<2x10xf32, #tpu.memory_space<vmem>>) attributes {dimension_semantics = [#tpu.dimension_semantics<parallel>, #tpu.dimension_semantics<parallel>, #tpu.dimension_semantics<arbitrary>], iteration_bounds = array<i64: 1, 1, 1>, scalar_prefetch = 0 : i64, scratch_operands = 1 : i64, tpu.core_type = #tpu.core_type<tc>, window_params = [{transform_indices = @transform_0, window_bounds = array<i64: 2, 128>}, {transform_indices = @transform_1, window_bounds = array<i64: 128, 10>}, {transform_indices = @transform_2, window_bounds = array<i64: 1, 10>}, {transform_indices = @transform_3, window_bounds = array<i64: 1, 10>}, {transform_indices = @transform_4, window_bounds = array<i64: 2, 10>}]} {
    %c0_i32 = arith.constant 0 : i32
    %0 = arith.cmpi eq, %arg2, %c0_i32 : i32
    %1 = arith.extui %0 : i1 to i32
    %c0_i32_0 = arith.constant 0 : i32
    %2 = arith.cmpi ne, %1, %c0_i32_0 : i32
    scf.if %2 {
      %cst_10 = arith.constant 0.000000e+00 : f32
      %12 = vector.broadcast %cst_10 : f32 to vector<2x10xf32>
      %c0_11 = arith.constant 0 : index
      %c0_12 = arith.constant 0 : index
      %13 = vector.load %arg8[%c0_11, %c0_12] : memref<2x10xf32, #tpu.memory_space<vmem>>, vector<2x10xf32>
      tpu.vector_store %arg8[%c0_11, %c0_12], %12 {strides = array<i32>} : memref<2x10xf32, #tpu.memory_space<vmem>>, vector<2x10xf32>,
    } else {
    }
    %c0 = arith.constant 0 : index
    %c0_1 = arith.constant 0 : index
    %3 = vector.load %arg8[%c0, %c0_1] : memref<2x10xf32, #tpu.memory_space<vmem>>, vector<2x10xf32>
    %c0_2 = arith.constant 0 : index
    %c0_3 = arith.constant 0 : index
    %4 = vector.load %arg3[%c0_2, %c0_3] : memref<2x128xbf16, #tpu.memory_space<vmem>>, vector<2x128xbf16>
    %c0_4 = arith.constant 0 : index
    %c0_5 = arith.constant 0 : index
    %5 = vector.load %arg4[%c0_4, %c0_5] : memref<128x10xbf16, #tpu.memory_space<vmem>>, vector<128x10xbf16>
    %cst = arith.constant dense<0.000000e+00> : vector<2x10xf32>
    %6 = tpu.matmul %4, %5, %cst {dimension_numbers = #tpu.dot_dimension_numbers<[1], [0], [0], [1], [0, 0, 1, 1], [], []>} : vector<2x128xbf16>, vector<128x10xbf16>, vector<2x10xf32> -> vector<2x10xf32>
    %7 = arith.addf %3, %6 : vector<2x10xf32>
    %c0_6 = arith.constant 0 : index
    %c0_7 = arith.constant 0 : index
    %8 = vector.load %arg8[%c0_6, %c0_7] : memref<2x10xf32, #tpu.memory_space<vmem>>, vector<2x10xf32>
    tpu.vector_store %arg8[%c0_6, %c0_7], %7 {strides = array<i32>} : memref<2x10xf32, #tpu.memory_space<vmem>>, vector<2x10xf32>,
    %c0_i32_8 = arith.constant 0 : i32
    %9 = arith.cmpi eq, %arg2, %c0_i32_8 : i32
    %10 = arith.extui %9 : i1 to i32
    %c0_i32_9 = arith.constant 0 : i32
    %11 = arith.cmpi ne, %10, %c0_i32_9 : i32
    scf.if %11 {
      %c0_10 = arith.constant 0 : index
      %c0_11 = arith.constant 0 : index
      %12 = vector.load %arg8[%c0_10, %c0_11] : memref<2x10xf32, #tpu.memory_space<vmem>>, vector<2x10xf32>
      %c0_12 = arith.constant 0 : index
      %c0_13 = arith.constant 0 : index
      %13 = vector.load %arg5[%c0_12, %c0_13] : memref<1x10xf32, #tpu.memory_space<vmem>>, vector<1x10xf32>
      %14 = vector.broadcast %13 : vector<1x10xf32> to vector<2x10xf32>
      %15 = arith.mulf %12, %14 : vector<2x10xf32>
      %c0_14 = arith.constant 0 : index
      %c0_15 = arith.constant 0 : index
      %16 = vector.load %arg6[%c0_14, %c0_15] : memref<1x10xf32, #tpu.memory_space<vmem>>, vector<1x10xf32>
      %17 = vector.broadcast %16 : vector<1x10xf32> to vector<2x10xf32>
      %18 = arith.addf %15, %17 : vector<2x10xf32>
      %c0_16 = arith.constant 0 : index
      %c0_17 = arith.constant 0 : index
      %19 = vector.load %arg7[%c0_16, %c0_17] : memref<2x10xf32, #tpu.memory_space<vmem>>, vector<2x10xf32>
      tpu.vector_store %arg7[%c0_16, %c0_17], %18 {strides = array<i32>} : memref<2x10xf32, #tpu.memory_space<vmem>>, vector<2x10xf32>,
    } else {
    }
    return
  }
  func.func @transform_0(%arg0: i32, %arg1: i32, %arg2: i32) -> (i32, i32) {
    %c0_i32 = arith.constant 0 : i32
    return %arg0, %arg2 : i32, i32
  }
  func.func @transform_1(%arg0: i32, %arg1: i32, %arg2: i32) -> (i32, i32) {
    %c0_i32 = arith.constant 0 : i32
    return %arg2, %arg1 : i32, i32
  }
  func.func @transform_2(%arg0: i32, %arg1: i32, %arg2: i32) -> (i32, i32) {
    %c0_i32 = arith.constant 0 : i32
    %c0_i32_0 = arith.constant 0 : i32
    return %c0_i32, %arg1 : i32, i32
  }
  func.func @transform_3(%arg0: i32, %arg1: i32, %arg2: i32) -> (i32, i32) {
    %c0_i32 = arith.constant 0 : i32
    %c0_i32_0 = arith.constant 0 : i32
    return %c0_i32, %arg1 : i32, i32
  }
  func.func @transform_4(%arg0: i32, %arg1: i32, %arg2: i32) -> (i32, i32) {
    %c0_i32 = arith.constant 0 : i32
    return %arg0, %arg1 : i32, i32
  }
}

</mosaic_0001>

<bundles_post_ra>
// kernel: encoder_forward.7
= control target key start
LH: loop header
LB: loop body
LE: loop exit
PB: predicated region body
PF: predicated region fallthrough
CT: control target
= control target key end

     0   :  { %vm22_vm0 = vcmask 261120   ;;  %v833_v1 = vmov 0.0   ;;  %vm207_vm1 = vcmask 130048   ;;  %s1223_s1 = inlined_call_operand.vmem [shape: bf16[16,32], index: 1, kind: input, shape index: {}]   ;;  %s1224_s0 = inlined_call_operand.vmem [shape: bf16[256,16], index: 0, kind: input, shape index: {}]   ;;  %s1225_s2 = inlined_call_operand.vmem [shape: f32[1,32], index: 2, kind: input, shape index: {}]   ;;  %s1226_s3 = inlined_call_operand.vmem [shape: f32[1,32], index: 3, kind: input, shape index: {}]   ;;  %s1227_s4 = inlined_call_operand.vmem [shape: f32[256,32], index: 4, kind: output, shape index: {}]  }
   0x1   :  { %v816_v0 = vld [vmem:[%s1223_s1] sm:$0xff]   ;;  %25 = vst.msk [vmem:[#allocation2 + $0x10] sm:$0xff] %vm22_vm0, %v833_v1  ;;  %23 = vst.msk [vmem:[#allocation2] sm:$0xff] %vm22_vm0, %v833_v1  ;;  %v819_v4 = vld [vmem:[%s1224_s0 + $0x8] sm:$0xff]  }
   0x2   :  { %24 = vst.msk [vmem:[#allocation2 + $0x8] sm:$0xff] %vm22_vm0, %v833_v1  ;;  %26 = vst.msk [vmem:[#allocation2 + $0x18] sm:$0xff] %vm22_vm0, %v833_v1  ;;  %v817_v2 = vld [vmem:[%s1224_s0] sm:$0xff]   ;;  %779 = vmatprep.subr.bf16.mxu0 %v816_v0  ;;  %813 = vmatprep.subr.bf16.mxu1 %v816_v0  ;;  %v820_v5 = vld [vmem:[%s1224_s0 + $0x48] sm:$0xff]  }
   0x3   :  { %27 = vst.msk [vmem:[#allocation2 + $0x20] sm:$0xff] %vm22_vm0, %v833_v1  ;;  %28 = vst.msk [vmem:[#allocation2 + $0x28] sm:$0xff] %vm22_vm0, %v833_v1  ;;  %v818_v3 = vld [vmem:[%s1224_s0 + $0x40] sm:$0xff]   ;;  %780 = vmatpush3.bf16.msra.mxu0 %v816_v0  ;;  %814 = vmatpush3.bf16.msra.mxu1 %v816_v0  ;;  %v821_v6 = vld [vmem:[%s1224_s0 + $0x10] sm:$0xff]  }
   0x4   :  { %29 = vst.msk [vmem:[#allocation2 + $0x30] sm:$0xff] %vm22_vm0, %v833_v1  ;;  %30 = vst.msk [vmem:[#allocation2 + $0x38] sm:$0xff] %vm22_vm0, %v833_v1  ;;  %781 = vmatprep.mubr.msk.bf16.mxu0 %vm207_vm1, %v817_v2  ;;  %797 = vmatprep.mubr.msk.bf16.mxu1 %vm207_vm1, %v818_v3  ;;  %v822_v7 = vld [vmem:[%s1224_s0 + $0x50] sm:$0xff]   ;;  %v823_v8 = vld [vmem:[%s1224_s0 + $0x18] sm:$0xff]  }
   0x5   :  { %31 = vst.msk [vmem:[#allocation2 + $0x40] sm:$0xff] %vm22_vm0, %v833_v1  ;;  %32 = vst.msk [vmem:[#allocation2 + $0x48] sm:$0xff] %vm22_vm0, %v833_v1  ;;  %v824_v9 = vld [vmem:[%s1224_s0 + $0x58] sm:$0xff]   ;;  %v825_v10 = vld [vmem:[%s1224_s0 + $0x20] sm:$0xff]  }
   0x6   :  { %33 = vst.msk [vmem:[#allocation2 + $0x50] sm:$0xff] %vm22_vm0, %v833_v1  ;;  %34 = vst.msk [vmem:[#allocation2 + $0x58] sm:$0xff] %vm22_vm0, %v833_v1  ;;  %782 = vmatmul.mubr.msk.bf16.vlgmr.msra.gmra.mrb[0].mxu0 %vm207_vm1, %v819_v4  ;;  %798 = vmatmul.mubr.msk.bf16.vlgmr.msra.gmra.mrb[0].mxu1 %vm207_vm1, %v820_v5  ;;  %v826_v11 = vld [vmem:[%s1224_s0 + $0x60] sm:$0xff]   ;;  %v827_v12 = vld [vmem:[%s1224_s0 + $0x28] sm:$0xff]  }
   0x7   :  { %35 = vst.msk [vmem:[#allocation2 + $0x60] sm:$0xff] %vm22_vm0, %v833_v1  ;;  %36 = vst.msk [vmem:[#allocation2 + $0x68] sm:$0xff] %vm22_vm0, %v833_v1  ;;  %785 = vmatprep.mubr.msk.bf16.mxu0 %vm207_vm1, %v821_v6  ;;  %801 = vmatprep.mubr.msk.bf16.mxu1 %vm207_vm1, %v822_v7  ;;  %v828_v13 = vld [vmem:[%s1224_s0 + $0x68] sm:$0xff]   ;;  %v829_v14 = vld [vmem:[%s1224_s0 + $0x30] sm:$0xff]  }
   0x8   :  { %37 = vst.msk [vmem:[#allocation2 + $0x70] sm:$0xff] %vm22_vm0, %v833_v1  ;;  %38 = vst.msk [vmem:[#allocation2 + $0x78] sm:$0xff] %vm22_vm0, %v833_v1  ;;  %v830_v15 = vld [vmem:[%s1224_s0 + $0x70] sm:$0xff]   ;;  %v831_v16 = vld [vmem:[%s1224_s0 + $0x38] sm:$0xff]  }
   0x9   :  { %39 = vst.msk [vmem:[#allocation2 + $0x80] sm:$0xff] %vm22_vm0, %v833_v1  ;;  %40 = vst.msk [vmem:[#allocation2 + $0x88] sm:$0xff] %vm22_vm0, %v833_v1  ;;  %v832_v17 = vld [vmem:[%s1224_s0 + $0x78] sm:$0xff]   ;;  %v57_v18 = vld [vmem:[#allocation2 + $0x10] sm:$0xff] }
   0xa   :  { %41 = vst.msk [vmem:[#allocation2 + $0x90] sm:$0xff] %vm22_vm0, %v833_v1  ;;  %42 = vst.msk [vmem:[#allocation2 + $0x98] sm:$0xff] %vm22_vm0, %v833_v1  ;;  %v55_v20 = vld [vmem:[#allocation2] sm:$0xff]  ;;  %v58_v24 = vld [vmem:[#allocation2 + $0x18] sm:$0xff] }
   0xb   :  { %43 = vst.msk [vmem:[#allocation2 + $0xa0] sm:$0xff] %vm22_vm0, %v833_v1  ;;  %44 = vst.msk [vmem:[#allocation2 + $0xa8] sm:$0xff] %vm22_vm0, %v833_v1  ;;  %v56_v30 = vld [vmem:[#allocation2 + $0x8] sm:$0xff]  ;;  %v61_v42 = vld [vmem:[#allocation2 + $0x30] sm:$0xff] }
   0xc   :  { %45 = vst.msk [vmem:[#allocation2 + $0xb0] sm:$0xff] %vm22_vm0, %v833_v1  ;;  %46 = vst.msk [vmem:[#allocation2 + $0xb8] sm:$0xff] %vm22_vm0, %v833_v1  ;;  %v59_v44 = vld [vmem:[#allocation2 + $0x20] sm:$0xff]  ;;  %v62_v49 = vld [vmem:[#allocation2 + $0x38] sm:$0xff] }
   0xd   :  { %47 = vst.msk [vmem:[#allocation2 + $0xc0] sm:$0xff] %vm22_vm0, %v833_v1  ;;  %48 = vst.msk [vmem:[#allocation2 + $0xc8] sm:$0xff] %vm22_vm0, %v833_v1  ;;  %v969_v46 = vld [vmem:[%s1225_s2] ss:$0 sm:$0xff]  ;;  %v60_v55 = vld [vmem:[#allocation2 + $0x28] sm:$0xff] }
   0xe   :  { %49 = vst.msk [vmem:[#allocation2 + $0xd0] sm:$0xff] %vm22_vm0, %v833_v1  ;;  %50 = vst.msk [vmem:[#allocation2 + $0xd8] sm:$0xff] %vm22_vm0, %v833_v1  ;;  %786 = vmatmul.mubr.msk.bf16.gmra.mrb[4].mxu0 %vm207_vm1, %v823_v8  ;;  %802 = vmatmul.mubr.msk.bf16.gmra.mrb[4].mxu1 %vm207_vm1, %v824_v9  ;;  %v974_v58 = vld [vmem:[%s1226_s3] ss:$0 sm:$0xff] }
   0xf   :  { %51 = vst.msk [vmem:[#allocation2 + $0xe0] sm:$0xff] %vm22_vm0, %v833_v1  ;;  %52 = vst.msk [vmem:[#allocation2 + $0xe8] sm:$0xff] %vm22_vm0, %v833_v1  ;;  %789 = vmatprep.mubr.msk.bf16.mxu0 %vm207_vm1, %v825_v10  ;;  %805 = vmatprep.mubr.msk.bf16.mxu1 %vm207_vm1, %v826_v11 }
  0x10   :  { %53 = vst.msk [vmem:[#allocation2 + $0xf0] sm:$0xff] %vm22_vm0, %v833_v1  ;;  %54 = vst.msk [vmem:[#allocation2 + $0xf8] sm:$0xff] %vm22_vm0, %v833_v1  ;;  %v71_v21 = vld [vmem:[#allocation2 + $0x80] sm:$0xff]  ;;  %v72_v31 = vld [vmem:[#allocation2 + $0x88] sm:$0xff] }
  0x11   :  { %v73_v19 = vld [vmem:[#allocation2 + $0x90] sm:$0xff]  ;;  %v74_v25 = vld [vmem:[#allocation2 + $0x98] sm:$0xff] }
  0x12   :  { %v75_v45 = vld [vmem:[#allocation2 + $0xa0] sm:$0xff]  ;;  %v76_v56 = vld [vmem:[#allocation2 + $0xa8] sm:$0xff] }
  0x13   :  { %v77_v43 = vld [vmem:[#allocation2 + $0xb0] sm:$0xff]  ;;  %v78_v50 = vld [vmem:[#allocation2 + $0xb8] sm:$0xff] }
  0x16   :  { %790 = vmatmul.mubr.msk.bf16.gmra.mrb[8].mxu0 %vm207_vm1, %v827_v12  ;;  %806 = vmatmul.mubr.msk.bf16.gmra.mrb[8].mxu1 %vm207_vm1, %v828_v13 }
  0x17   :  { %793 = vmatprep.mubr.msk.bf16.mxu0 %vm207_vm1, %v829_v14  ;;  %809 = vmatprep.mubr.msk.bf16.mxu1 %vm207_vm1, %v830_v15 }
  0x1e   :  { %794 = vmatmul.mubr.msk.bf16.gmra.mrb[12].mxu0 %vm207_vm1, %v831_v16  ;;  %810 = vmatmul.mubr.msk.bf16.gmra.mrb[12].mxu1 %vm207_vm1, %v832_v17 }
  0xd9   :  { %v783_v22 = vpop.f32.mrb[0].mxu0  ;;  %v799_v23 = vpop.f32.mrb[0].mxu1 }
  0xda   :  { %v419_v26 = vadd.f32 %v783_v22, %v57_v18  ;;  %v435_v27 = vadd.f32 %v799_v23, %v73_v19  ;;  %v290_v28 = vpop.f32.mrb[1].mxu0  ;;  %v354_v29 = vpop.f32.mrb[1].mxu1 }
  0xdb   :  { %v417_v32 = vadd.f32 %v290_v28, %v55_v20  ;;  %v433_v33 = vadd.f32 %v354_v29, %v71_v21  ;;  %v784_v34 = vpop.f32.mrb[2].mxu0  ;;  %v800_v35 = vpop.f32.mrb[2].mxu1 }
  0xdc   :  { %452 = vst.msk [vmem:[#allocation2 + $0x10] sm:$0xff] %vm22_vm0, %v419_v26  ;;  %468 = vst.msk [vmem:[#allocation2 + $0x90] sm:$0xff] %vm22_vm0, %v435_v27  ;;  %v420_v36 = vadd.f32 %v784_v34, %v58_v24  ;;  %v436_v37 = vadd.f32 %v800_v35, %v74_v25  ;;  %v293_v38 = vpop.f32.mrb[3].mxu0  ;;  %v357_v39 = vpop.f32.mrb[3].mxu1 }
  0xdd   :  { %450 = vst.msk [vmem:[#allocation2] sm:$0xff] %vm22_vm0, %v417_v32  ;;  %466 = vst.msk [vmem:[#allocation2 + $0x80] sm:$0xff] %vm22_vm0, %v433_v33  ;;  %v418_v40 = vadd.f32 %v293_v38, %v56_v30  ;;  %v434_v41 = vadd.f32 %v357_v39, %v72_v31 }
  0xde   :  { %453 = vst.msk [vmem:[#allocation2 + $0x18] sm:$0xff] %vm22_vm0, %v420_v36  ;;  %469 = vst.msk [vmem:[#allocation2 + $0x98] sm:$0xff] %vm22_vm0, %v436_v37 }
  0xdf   :  { %451 = vst.msk [vmem:[#allocation2 + $0x8] sm:$0xff] %vm22_vm0, %v418_v40  ;;  %467 = vst.msk [vmem:[#allocation2 + $0x88] sm:$0xff] %vm22_vm0, %v434_v41 }
  0xe1   :  { %v787_v47 = vpop.f32.mrb[4].mxu0  ;;  %v803_v48 = vpop.f32.mrb[4].mxu1 }
  0xe2   :  { %v423_v51 = vadd.f32 %v787_v47, %v61_v42  ;;  %v439_v52 = vadd.f32 %v803_v48, %v77_v43  ;;  %v306_v53 = vpop.f32.mrb[5].mxu0  ;;  %v370_v54 = vpop.f32.mrb[5].mxu1 }
  0xe3   :  { %v487_v57 = vld [vmem:[#allocation2 + $0x10] sm:$0xff]  ;;  %v421_v60 = vadd.f32 %v306_v53, %v59_v44  ;;  %v437_v61 = vadd.f32 %v370_v54, %v75_v45  ;;  %v788_v62 = vpop.f32.mrb[6].mxu0  ;;  %v804_v63 = vpop.f32.mrb[6].mxu1 }
  0xe4   :  { %v503_v59 = vld [vmem:[#allocation2 + $0x90] sm:$0xff]  ;;  %v526_v0 = vmul.f32 %v969_v46, %v487_v57  ;;  %v485_v2 = vld [vmem:[#allocation2] sm:$0xff]  ;;  %456 = vst.msk [vmem:[#allocation2 + $0x30] sm:$0xff] %vm22_vm0, %v423_v51  ;;  %472 = vst.msk [vmem:[#allocation2 + $0xb0] sm:$0xff] %vm22_vm0, %v439_v52  ;;  %v424_v4 = vadd.f32 %v788_v62, %v62_v49  ;;  %v440_v5 = vadd.f32 %v804_v63, %v78_v50  ;;  %v309_v6 = vpop.f32.mrb[7].mxu0  ;;  %v373_v7 = vpop.f32.mrb[7].mxu1 }
  0xe5   :  { %v542_v1 = vmul.f32 %v969_v46, %v503_v59  ;;  %v501_v3 = vld [vmem:[#allocation2 + $0x80] sm:$0xff]  ;;  %v524_v8 = vmul.f32 %v969_v46, %v485_v2  ;;  %v488_v10 = vld [vmem:[#allocation2 + $0x18] sm:$0xff]  ;;  %454 = vst.msk [vmem:[#allocation2 + $0x20] sm:$0xff] %vm22_vm0, %v421_v60  ;;  %470 = vst.msk [vmem:[#allocation2 + $0xa0] sm:$0xff] %vm22_vm0, %v437_v61  ;;  %v422_v12 = vadd.f32 %v309_v6, %v60_v55 }
  0xe6   :  { %v540_v9 = vmul.f32 %v969_v46, %v501_v3  ;;  %v504_v11 = vld [vmem:[#allocation2 + $0x98] sm:$0xff]  ;;  %v438_v13 = vadd.f32 %v373_v7, %v76_v56  ;;  %v565_v14 = vadd.f32 %v974_v58, %v526_v0  ;;  %v527_v16 = vmul.f32 %v969_v46, %v488_v10  ;;  %v486_v18 = vld [vmem:[#allocation2 + $0x8] sm:$0xff]  ;;  %457 = vst.msk [vmem:[#allocation2 + $0x38] sm:$0xff] %vm22_vm0, %v424_v4 }
  0xe7   :  { %v581_v15 = vadd.f32 %v974_v58, %v542_v1  ;;  %v543_v17 = vmul.f32 %v969_v46, %v504_v11  ;;  %v502_v19 = vld [vmem:[#allocation2 + $0x88] sm:$0xff]  ;;  %473 = vst.msk [vmem:[#allocation2 + $0xb8] sm:$0xff] %vm22_vm0, %v440_v5  ;;  %v563_v20 = vadd.f32 %v974_v58, %v524_v8  ;;  %v525_v22 = vmul.f32 %v969_v46, %v486_v18 }
  0xe8   :  { %v579_v21 = vadd.f32 %v974_v58, %v540_v9  ;;  %v541_v23 = vmul.f32 %v969_v46, %v502_v19  ;;  %455 = vst.msk [vmem:[#allocation2 + $0x28] sm:$0xff] %vm22_vm0, %v422_v12  ;;  %471 = vst.msk [vmem:[#allocation2 + $0xa8] sm:$0xff] %vm22_vm0, %v438_v13  ;;  %vm597_vm2 = vcmp.gt.f32.partialorder %v565_v14, 0.0  ;;  %v629_v24 = vmul.f32 0.2, %v565_v14 }
  0xe9   :  { %vm613_vm3 = vcmp.gt.f32.partialorder %v581_v15, 0.0  ;;  %v645_v25 = vmul.f32 0.2, %v581_v15  ;;  %vm595_vm4 = vcmp.gt.f32.partialorder %v563_v20, 0.0  ;;  %v627_v26 = vmul.f32 0.2, %v563_v20 }
  0xea   :  { %vm611_vm5 = vcmp.gt.f32.partialorder %v579_v21, 0.0  ;;  %v643_v27 = vmul.f32 0.2, %v579_v21  ;;  %v661_v28 = vsel %vm597_vm2, %v565_v14, %v629_v24  ;;  %v566_v30 = vadd.f32 %v974_v58, %v527_v16  ;;  %v998_v32 = vpop.f32.mrb[8].mxu0  ;;  %v1000_v33 = vpop.f32.mrb[8].mxu1  ;;  %v65_v16 = vld [vmem:[#allocation2 + $0x50] sm:$0xff] }
  0xeb   :  { %v677_v29 = vsel %vm613_vm3, %v581_v15, %v645_v25  ;;  %v582_v31 = vadd.f32 %v974_v58, %v543_v17  ;;  %693 = vst.msk [vmem:[%s1227_s4 + $0x10] sm:$0xff] %vm22_vm0, %v661_v28  ;;  %v659_v34 = vsel %vm595_vm4, %v563_v20, %v627_v26  ;;  %v564_v36 = vadd.f32 %v974_v58, %v525_v22  ;;  %v491_v38 = vld [vmem:[#allocation2 + $0x30] sm:$0xff]  ;;  %v1012_v40 = vpop.f32.mrb[9].mxu0  ;;  %v1014_v41 = vpop.f32.mrb[9].mxu1  ;;  %v63_v22 = vld [vmem:[#allocation2 + $0x40] sm:$0xff] }
  0xec   :  { %709 = vst.msk [vmem:[%s1227_s4 + $0x90] sm:$0xff] %vm22_vm0, %v677_v29  ;;  %v675_v35 = vsel %vm611_vm5, %v579_v21, %v643_v27  ;;  %v580_v37 = vadd.f32 %v974_v58, %v541_v23  ;;  %v507_v39 = vld [vmem:[#allocation2 + $0xb0] sm:$0xff]  ;;  %691 = vst.msk [vmem:[%s1227_s4] sm:$0xff] %vm22_vm0, %v659_v34  ;;  %vm598_vm6 = vcmp.gt.f32.partialorder %v566_v30, 0.0  ;;  %v630_v42 = vmul.f32 0.2, %v566_v30 }
  0xed   :  { %707 = vst.msk [vmem:[%s1227_s4 + $0x80] sm:$0xff] %vm22_vm0, %v675_v35  ;;  %vm614_vm7 = vcmp.gt.f32.partialorder %v582_v31, 0.0  ;;  %v646_v43 = vmul.f32 0.2, %v582_v31  ;;  %vm596_vm8 = vcmp.gt.f32.partialorder %v564_v36, 0.0  ;;  %v530_v49 = vmul.f32 %v969_v46, %v491_v38  ;;  %v489_v51 = vld [vmem:[#allocation2 + $0x20] sm:$0xff] }
  0xee   :  { %v628_v44 = vmul.f32 0.2, %v564_v36  ;;  %vm612_vm9 = vcmp.gt.f32.partialorder %v580_v37, 0.0  ;;  %v644_v45 = vmul.f32 0.2, %v580_v37  ;;  %v662_v47 = vsel %vm598_vm6, %v566_v30, %v630_v42  ;;  %v505_v52 = vld [vmem:[#allocation2 + $0xa0] sm:$0xff] }
  0xef   :  { %v678_v48 = vsel %vm614_vm7, %v582_v31, %v646_v43  ;;  %v546_v50 = vmul.f32 %v969_v46, %v507_v39  ;;  %v492_v53 = vld [vmem:[#allocation2 + $0x38] sm:$0xff]  ;;  %v1026_v54 = vpop.f32.mrb[10].mxu0  ;;  %v1028_v55 = vpop.f32.mrb[10].mxu1  ;;  %694 = vst.msk [vmem:[%s1227_s4 + $0x18] sm:$0xff] %vm22_vm0, %v662_v47  ;;  %v528_v59 = vmul.f32 %v969_v46, %v489_v51  ;;  %v544_v60 = vmul.f32 %v969_v46, %v505_v52  ;;  %v490_v62 = vld [vmem:[#allocation2 + $0x28] sm:$0xff]  ;;  %v81_v21 = vld [vmem:[#allocation2 + $0xd0] sm:$0xff] }
  0xf0   :  { %710 = vst.msk [vmem:[%s1227_s4 + $0x98] sm:$0xff] %vm22_vm0, %v678_v48  ;;  %v660_v56 = vsel %vm596_vm8, %v564_v36, %v628_v44  ;;  %v676_v57 = vsel %vm612_vm9, %v580_v37, %v644_v45  ;;  %v508_v61 = vld [vmem:[#allocation2 + $0xb8] sm:$0xff]  ;;  %v506_v63 = vld [vmem:[#allocation2 + $0xa8] sm:$0xff]  ;;  %v1040_v0 = vpop.f32.mrb[11].mxu0  ;;  %v1042_v1 = vpop.f32.mrb[11].mxu1  ;;  %v569_v2 = vadd.f32 %v974_v58, %v530_v49  ;;  %v531_v4 = vmul.f32 %v969_v46, %v492_v53  ;;  %v79_v23 = vld [vmem:[#allocation2 + $0xc0] sm:$0xff] }
  0xf1   :  { %692 = vst.msk [vmem:[%s1227_s4 + $0x8] sm:$0xff] %vm22_vm0, %v660_v56  ;;  %708 = vst.msk [vmem:[%s1227_s4 + $0x88] sm:$0xff] %vm22_vm0, %v676_v57  ;;  %v585_v3 = vadd.f32 %v974_v58, %v546_v50  ;;  %v547_v5 = vmul.f32 %v969_v46, %v508_v61  ;;  %v567_v6 = vadd.f32 %v974_v58, %v528_v59  ;;  %v1060_v10 = vpop.f32.mrb[12].mxu0  ;;  %v1062_v11 = vpop.f32.mrb[12].mxu1  ;;  %v66_v30 = vld [vmem:[#allocation2 + $0x58] sm:$0xff]  ;;  %v64_v34 = vld [vmem:[#allocation2 + $0x48] sm:$0xff] }
  0xf2   :  { %v583_v7 = vadd.f32 %v974_v58, %v544_v60  ;;  %v529_v8 = vmul.f32 %v969_v46, %v490_v62  ;;  %v545_v9 = vmul.f32 %v969_v46, %v506_v63  ;;  %vm601_vm10 = vcmp.gt.f32.partialorder %v569_v2, 0.0  ;;  %v338_v24 = vpop.f32.mrb[13].mxu0  ;;  %v402_v25 = vpop.f32.mrb[13].mxu1  ;;  %v82_v31 = vld [vmem:[#allocation2 + $0xd8] sm:$0xff]  ;;  %v80_v35 = vld [vmem:[#allocation2 + $0xc8] sm:$0xff]  ;;  %v69_v42 = vld [vmem:[#allocation2 + $0x70] sm:$0xff] }
  0xf3   :  { %v633_v12 = vmul.f32 0.2, %v569_v2  ;;  %vm617_vm11 = vcmp.gt.f32.partialorder %v585_v3, 0.0  ;;  %v649_v13 = vmul.f32 0.2, %v585_v3  ;;  %vm599_vm12 = vcmp.gt.f32.partialorder %v567_v6, 0.0 }
  0xf4   :  { %v631_v14 = vmul.f32 0.2, %v567_v6  ;;  %vm615_vm13 = vcmp.gt.f32.partialorder %v583_v7, 0.0  ;;  %v647_v15 = vmul.f32 0.2, %v583_v7  ;;  %v570_v19 = vadd.f32 %v974_v58, %v531_v4  ;;  %v796_v36 = vpop.f32.mrb[14].mxu0 }
  0xf5   :  { %v665_v17 = vsel %vm601_vm10, %v569_v2, %v633_v12  ;;  %v681_v18 = vsel %vm617_vm11, %v585_v3, %v649_v13  ;;  %v586_v20 = vadd.f32 %v974_v58, %v547_v5  ;;  %v568_v28 = vadd.f32 %v974_v58, %v529_v8  ;;  %v812_v37 = vpop.f32.mrb[14].mxu1  ;;  %v85_v43 = vld [vmem:[#allocation2 + $0xf0] sm:$0xff]  ;;  %v67_v51 = vld [vmem:[#allocation2 + $0x60] sm:$0xff]  ;;  %v70_v53 = vld [vmem:[#allocation2 + $0x78] sm:$0xff]  ;;  %v341_v56 = vpop.f32.mrb[15].mxu0 }
  0xf6   :  { %697 = vst.msk [vmem:[%s1227_s4 + $0x30] sm:$0xff] %vm22_vm0, %v665_v17  ;;  %713 = vst.msk [vmem:[%s1227_s4 + $0xb0] sm:$0xff] %vm22_vm0, %v681_v18  ;;  %v663_v26 = vsel %vm599_vm12, %v567_v6, %v631_v14  ;;  %v679_v27 = vsel %vm615_vm13, %v583_v7, %v647_v15  ;;  %v584_v29 = vadd.f32 %v974_v58, %v545_v9  ;;  %vm602_vm14 = vcmp.gt.f32.partialorder %v570_v19, 0.0  ;;  %v83_v52 = vld [vmem:[#allocation2 + $0xe0] sm:$0xff]  ;;  %v405_v57 = vpop.f32.mrb[15].mxu1  ;;  %v86_v61 = vld [vmem:[#allocation2 + $0xf8] sm:$0xff] }
  0xf7   :  { %695 = vst.msk [vmem:[%s1227_s4 + $0x20] sm:$0xff] %vm22_vm0, %v663_v26  ;;  %711 = vst.msk [vmem:[%s1227_s4 + $0xa0] sm:$0xff] %vm22_vm0, %v679_v27  ;;  %v634_v38 = vmul.f32 0.2, %v570_v19  ;;  %vm618_vm15 = vcmp.gt.f32.partialorder %v586_v20, 0.0  ;;  %vm600_vm1 = vcmp.gt.f32.partialorder %v568_v28, 0.0  ;;  %v427_v49 = vadd.f32 %v998_v32, %v65_v16 }
  0xf8   :  { %v650_v39 = vmul.f32 0.2, %v586_v20  ;;  %v632_v44 = vmul.f32 0.2, %v568_v28  ;;  %vm616_vm2 = vcmp.gt.f32.partialorder %v584_v29, 0.0  ;;  %v443_v50 = vadd.f32 %v1000_v33, %v81_v21  ;;  %v68_v62 = vld [vmem:[#allocation2 + $0x68] sm:$0xff] }
  0xf9   :  { %v648_v45 = vmul.f32 0.2, %v584_v29  ;;  %v666_v47 = vsel %vm602_vm14, %v570_v19, %v634_v38  ;;  %v425_v32 = vadd.f32 %v1012_v40, %v63_v22  ;;  %v441_v33 = vadd.f32 %v1014_v41, %v79_v23  ;;  %v84_v63 = vld [vmem:[#allocation2 + $0xe8] sm:$0xff]  ;;  %460 = vst.msk [vmem:[#allocation2 + $0x50] sm:$0xff] %vm22_vm0, %v427_v49 }
  0xfa   :  { %v682_v48 = vsel %vm618_vm15, %v586_v20, %v650_v39  ;;  %698 = vst.msk [vmem:[%s1227_s4 + $0x38] sm:$0xff] %vm22_vm0, %v666_v47  ;;  %v664_v59 = vsel %vm600_vm1, %v568_v28, %v632_v44  ;;  %476 = vst.msk [vmem:[#allocation2 + $0xd0] sm:$0xff] %vm22_vm0, %v443_v50  ;;  %v428_v40 = vadd.f32 %v1026_v54, %v66_v30 }
  0xfb   :  { %714 = vst.msk [vmem:[%s1227_s4 + $0xb8] sm:$0xff] %vm22_vm0, %v682_v48  ;;  %v680_v60 = vsel %vm616_vm2, %v584_v29, %v648_v45  ;;  %696 = vst.msk [vmem:[%s1227_s4 + $0x28] sm:$0xff] %vm22_vm0, %v664_v59  ;;  %v444_v41 = vadd.f32 %v1028_v55, %v82_v31  ;;  %v426_v2 = vadd.f32 %v1040_v0, %v64_v34 }
  0xfc   :  { %712 = vst.msk [vmem:[%s1227_s4 + $0xa8] sm:$0xff] %vm22_vm0, %v680_v60  ;;  %v442_v3 = vadd.f32 %v1042_v1, %v80_v35  ;;  %458 = vst.msk [vmem:[#allocation2 + $0x40] sm:$0xff] %vm22_vm0, %v425_v32  ;;  %v431_v4 = vadd.f32 %v1060_v10, %v69_v42  ;;  %v447_v5 = vadd.f32 %v1062_v11, %v85_v43 }
  0xfd   :  { %474 = vst.msk [vmem:[#allocation2 + $0xc0] sm:$0xff] %vm22_vm0, %v441_v33  ;;  %v429_v6 = vadd.f32 %v338_v24, %v67_v51  ;;  %v445_v7 = vadd.f32 %v402_v25, %v83_v52  ;;  %461 = vst.msk [vmem:[#allocation2 + $0x58] sm:$0xff] %vm22_vm0, %v428_v40  ;;  %v432_v54 = vadd.f32 %v796_v36, %v70_v53 }
  0xfe   :  { %477 = vst.msk [vmem:[#allocation2 + $0xd8] sm:$0xff] %vm22_vm0, %v444_v41  ;;  %459 = vst.msk [vmem:[#allocation2 + $0x48] sm:$0xff] %vm22_vm0, %v426_v2  ;;  %v448_v55 = vadd.f32 %v812_v37, %v86_v61  ;;  %v430_v0 = vadd.f32 %v341_v56, %v68_v62  ;;  %v446_v1 = vadd.f32 %v405_v57, %v84_v63 }
  0xff   :  { %475 = vst.msk [vmem:[#allocation2 + $0xc8] sm:$0xff] %vm22_vm0, %v442_v3  ;;  %464 = vst.msk [vmem:[#allocation2 + $0x70] sm:$0xff] %vm22_vm0, %v431_v4 }
 0x100   :  { %480 = vst.msk [vmem:[#allocation2 + $0xf0] sm:$0xff] %vm22_vm0, %v447_v5  ;;  %462 = vst.msk [vmem:[#allocation2 + $0x60] sm:$0xff] %vm22_vm0, %v429_v6  ;;  %v495_v8 = vld [vmem:[#allocation2 + $0x50] sm:$0xff] }
 0x101   :  { %478 = vst.msk [vmem:[#allocation2 + $0xe0] sm:$0xff] %vm22_vm0, %v445_v7  ;;  %465 = vst.msk [vmem:[#allocation2 + $0x78] sm:$0xff] %vm22_vm0, %v432_v54  ;;  %v511_v9 = vld [vmem:[#allocation2 + $0xd0] sm:$0xff]  ;;  %v534_v10 = vmul.f32 %v969_v46, %v495_v8 }
 0x102   :  { %481 = vst.msk [vmem:[#allocation2 + $0xf8] sm:$0xff] %vm22_vm0, %v448_v55  ;;  %463 = vst.msk [vmem:[#allocation2 + $0x68] sm:$0xff] %vm22_vm0, %v430_v0  ;;  %v550_v11 = vmul.f32 %v969_v46, %v511_v9 }
 0x103   :  { %479 = vst.msk [vmem:[#allocation2 + $0xe8] sm:$0xff] %vm22_vm0, %v446_v1  ;;  %v493_v12 = vld [vmem:[#allocation2 + $0x40] sm:$0xff]  ;;  %v573_v19 = vadd.f32 %v974_v58, %v534_v10 }
 0x104   :  { %v509_v13 = vld [vmem:[#allocation2 + $0xc0] sm:$0xff]  ;;  %v532_v14 = vmul.f32 %v969_v46, %v493_v12  ;;  %v496_v16 = vld [vmem:[#allocation2 + $0x58] sm:$0xff]  ;;  %v589_v20 = vadd.f32 %v974_v58, %v550_v11 }
 0x105   :  { %v548_v15 = vmul.f32 %v969_v46, %v509_v13  ;;  %v512_v17 = vld [vmem:[#allocation2 + $0xd8] sm:$0xff]  ;;  %v494_v18 = vld [vmem:[#allocation2 + $0x48] sm:$0xff]  ;;  %v535_v21 = vmul.f32 %v969_v46, %v496_v16  ;;  %vm605_vm3 = vcmp.gt.f32.partialorder %v573_v19, 0.0  ;;  %v637_v28 = vmul.f32 0.2, %v573_v19 }
 0x106   :  { %v551_v22 = vmul.f32 %v969_v46, %v512_v17  ;;  %v510_v23 = vld [vmem:[#allocation2 + $0xc8] sm:$0xff]  ;;  %v571_v24 = vadd.f32 %v974_v58, %v532_v14  ;;  %v533_v26 = vmul.f32 %v969_v46, %v494_v18  ;;  %vm621_vm4 = vcmp.gt.f32.partialorder %v589_v20, 0.0  ;;  %v499_v38 = vld [vmem:[#allocation2 + $0x70] sm:$0xff] }
 0x107   :  { %v587_v25 = vadd.f32 %v974_v58, %v548_v15  ;;  %v549_v27 = vmul.f32 %v969_v46, %v510_v23  ;;  %v653_v29 = vmul.f32 0.2, %v589_v20  ;;  %v669_v34 = vsel %vm605_vm3, %v573_v19, %v637_v28  ;;  %v515_v39 = vld [vmem:[#allocation2 + $0xf0] sm:$0xff]  ;;  %v497_v42 = vld [vmem:[#allocation2 + $0x60] sm:$0xff] }
 0x108   :  { %vm603_vm5 = vcmp.gt.f32.partialorder %v571_v24, 0.0  ;;  %v635_v30 = vmul.f32 0.2, %v571_v24  ;;  %v574_v36 = vadd.f32 %v974_v58, %v535_v21  ;;  %v590_v37 = vadd.f32 %v974_v58, %v551_v22  ;;  %701 = vst.msk [vmem:[%s1227_s4 + $0x50] sm:$0xff] %vm22_vm0, %v669_v34  ;;  %v513_v48 = vld [vmem:[#allocation2 + $0xe0] sm:$0xff]  ;;  %v500_v49 = vld [vmem:[#allocation2 + $0x78] sm:$0xff] }
 0x109   :  { %vm619_vm6 = vcmp.gt.f32.partialorder %v587_v25, 0.0  ;;  %v651_v31 = vmul.f32 0.2, %v587_v25  ;;  %v685_v35 = vsel %vm621_vm4, %v589_v20, %v653_v29  ;;  %v572_v45 = vadd.f32 %v974_v58, %v533_v26  ;;  %v516_v50 = vld [vmem:[#allocation2 + $0xf8] sm:$0xff]  ;;  %v498_v33 = vld [vmem:[#allocation2 + $0x68] sm:$0xff] }
 0x10a   :  { %717 = vst.msk [vmem:[%s1227_s4 + $0xd0] sm:$0xff] %vm22_vm0, %v685_v35  ;;  %v667_v43 = vsel %vm603_vm5, %v571_v24, %v635_v30  ;;  %v588_v47 = vadd.f32 %v974_v58, %v549_v27  ;;  %vm606_vm7 = vcmp.gt.f32.partialorder %v574_v36, 0.0  ;;  %v638_v51 = vmul.f32 0.2, %v574_v36  ;;  %v514_v61 = vld [vmem:[#allocation2 + $0xe8] sm:$0xff] }
 0x10b   :  { %v683_v44 = vsel %vm619_vm6, %v587_v25, %v651_v31  ;;  %699 = vst.msk [vmem:[%s1227_s4 + $0x40] sm:$0xff] %vm22_vm0, %v667_v43  ;;  %vm622_vm8 = vcmp.gt.f32.partialorder %v590_v37, 0.0  ;;  %v654_v52 = vmul.f32 0.2, %v590_v37  ;;  %vm604_vm9 = vcmp.gt.f32.partialorder %v572_v45, 0.0 }
 0x10c   :  { %715 = vst.msk [vmem:[%s1227_s4 + $0xc0] sm:$0xff] %vm22_vm0, %v683_v44  ;;  %v636_v53 = vmul.f32 0.2, %v572_v45  ;;  %vm620_vm10 = vcmp.gt.f32.partialorder %v588_v47, 0.0  ;;  %v652_v56 = vmul.f32 0.2, %v588_v47  ;;  %v670_v57 = vsel %vm606_vm7, %v574_v36, %v638_v51 }
 0x10d   :  { %v686_v59 = vsel %vm622_vm8, %v590_v37, %v654_v52  ;;  %v538_v60 = vmul.f32 %v969_v46, %v499_v38  ;;  %v554_v32 = vmul.f32 %v969_v46, %v515_v39  ;;  %702 = vst.msk [vmem:[%s1227_s4 + $0x58] sm:$0xff] %vm22_vm0, %v670_v57  ;;  %v536_v40 = vmul.f32 %v969_v46, %v497_v42 }
 0x10e   :  { %718 = vst.msk [vmem:[%s1227_s4 + $0xd8] sm:$0xff] %vm22_vm0, %v686_v59  ;;  %v668_v62 = vsel %vm604_vm9, %v572_v45, %v636_v53  ;;  %v684_v63 = vsel %vm620_vm10, %v588_v47, %v652_v56  ;;  %v552_v41 = vmul.f32 %v969_v46, %v513_v48  ;;  %v539_v4 = vmul.f32 %v969_v46, %v500_v49 }
 0x10f   :  { %700 = vst.msk [vmem:[%s1227_s4 + $0x48] sm:$0xff] %vm22_vm0, %v668_v62  ;;  %716 = vst.msk [vmem:[%s1227_s4 + $0xc8] sm:$0xff] %vm22_vm0, %v684_v63  ;;  %v577_v2 = vadd.f32 %v974_v58, %v538_v60  ;;  %v593_v3 = vadd.f32 %v974_v58, %v554_v32  ;;  %v555_v5 = vmul.f32 %v969_v46, %v516_v50 }
 0x110   :  { %v575_v6 = vadd.f32 %v974_v58, %v536_v40  ;;  %v591_v7 = vadd.f32 %v974_v58, %v552_v41  ;;  %v537_v54 = vmul.f32 %v969_v46, %v498_v33  ;;  %v553_v55 = vmul.f32 %v969_v46, %v514_v61 }
 0x111   :  { %vm609_vm11 = vcmp.gt.f32.partialorder %v577_v2, 0.0  ;;  %v641_v0 = vmul.f32 0.2, %v577_v2  ;;  %vm625_vm12 = vcmp.gt.f32.partialorder %v593_v3, 0.0  ;;  %v657_v1 = vmul.f32 0.2, %v593_v3 }
 0x112   :  { %vm607_vm13 = vcmp.gt.f32.partialorder %v575_v6, 0.0  ;;  %v639_v8 = vmul.f32 0.2, %v575_v6  ;;  %vm623_vm14 = vcmp.gt.f32.partialorder %v591_v7, 0.0  ;;  %v655_v9 = vmul.f32 0.2, %v591_v7 }
 0x113   :  { %v673_v10 = vsel %vm609_vm11, %v577_v2, %v641_v0  ;;  %v689_v11 = vsel %vm625_vm12, %v593_v3, %v657_v1  ;;  %v578_v12 = vadd.f32 %v974_v58, %v539_v4  ;;  %v594_v13 = vadd.f32 %v974_v58, %v555_v5 }
 0x114   :  { %705 = vst.msk [vmem:[%s1227_s4 + $0x70] sm:$0xff] %vm22_vm0, %v673_v10  ;;  %721 = vst.msk [vmem:[%s1227_s4 + $0xf0] sm:$0xff] %vm22_vm0, %v689_v11  ;;  %v671_v46 = vsel %vm607_vm13, %v575_v6, %v639_v8  ;;  %v687_v14 = vsel %vm623_vm14, %v591_v7, %v655_v9  ;;  %v576_v15 = vadd.f32 %v974_v58, %v537_v54 }
 0x115   :  { %v592_v16 = vadd.f32 %v974_v58, %v553_v55  ;;  %703 = vst.msk [vmem:[%s1227_s4 + $0x60] sm:$0xff] %vm22_vm0, %v671_v46  ;;  %719 = vst.msk [vmem:[%s1227_s4 + $0xe0] sm:$0xff] %vm22_vm0, %v687_v14  ;;  %vm610_vm15 = vcmp.gt.f32.partialorder %v578_v12, 0.0  ;;  %v642_v17 = vmul.f32 0.2, %v578_v12  ;;  %vm626_vm1 = vcmp.gt.f32.partialorder %v594_v13, 0.0 }
 0x116   :  { %v658_v18 = vmul.f32 0.2, %v594_v13  ;;  %vm608_vm2 = vcmp.gt.f32.partialorder %v576_v15, 0.0  ;;  %v640_v19 = vmul.f32 0.2, %v576_v15 }
 0x117   :  { %vm624_vm3 = vcmp.gt.f32.partialorder %v592_v16, 0.0  ;;  %v656_v20 = vmul.f32 0.2, %v592_v16  ;;  %v674_v21 = vsel %vm610_vm15, %v578_v12, %v642_v17 }
 0x118   :  { %v690_v58 = vsel %vm626_vm1, %v594_v13, %v658_v18  ;;  %706 = vst.msk [vmem:[%s1227_s4 + $0x78] sm:$0xff] %vm22_vm0, %v674_v21  ;;  %v672_v22 = vsel %vm608_vm2, %v576_v15, %v640_v19 }
 0x119   :  { %722 = vst.msk [vmem:[%s1227_s4 + $0xf8] sm:$0xff] %vm22_vm0, %v690_v58  ;;  %v688_v23 = vsel %vm624_vm3, %v592_v16, %v656_v20  ;;  %704 = vst.msk [vmem:[%s1227_s4 + $0x68] sm:$0xff] %vm22_vm0, %v672_v22 }
 0x11a   :  { %720 = vst.msk [vmem:[%s1227_s4 + $0xe8] sm:$0xff] %vm22_vm0, %v688_v23 }

// kernel: encoder_forward.8
= control target key start
LH: loop header
LB: loop body
LE: loop exit
PB: predicated region body
PF: predicated region fallthrough
CT: control target
= control target key end

     0   :  { %vm22_vm0 = vcmask 523264   ;;  %v802_v48 = vmov 0.0   ;;  %s1046_s1 = inlined_call_operand.vmem [shape: bf16[512,64], index: 1, kind: input, shape index: {}]   ;;  %s1047_s0 = inlined_call_operand.vmem [shape: bf16[64,512], index: 0, kind: input, shape index: {}]   ;;  %s1048_s2 = inlined_call_operand.vmem [shape: f32[1,64], index: 2, kind: input, shape index: {}]   ;;  %s1049_s3 = inlined_call_operand.vmem [shape: f32[1,64], index: 3, kind: input, shape index: {}]   ;;  %s1050_s4 = inlined_call_operand.vmem [shape: f32[64,64], index: 4, kind: output, shape index: {}]  }
   0x1   :  { %v746_v0 = vld [vmem:[%s1046_s1 + $0x40] sm:$0xff]   ;;  %v750_v4 = vld [vmem:[%s1046_s1 + $0x48] sm:$0xff]   ;;  %v754_v8 = vld [vmem:[%s1046_s1 + $0x50] sm:$0xff]   ;;  %23 = vst.msk [vmem:[#allocation2] sm:$0xff] %vm22_vm0, %v802_v48 }
   0x2   :  { %v747_v1 = vld [vmem:[%s1046_s1 + $0xc0] sm:$0xff]   ;;  %665 = vmatprep.subr.bf16.mxu0 %v746_v0  ;;  %v751_v5 = vld [vmem:[%s1046_s1 + $0xc8] sm:$0xff]   ;;  %v755_v9 = vld [vmem:[%s1046_s1 + $0xd0] sm:$0xff]   ;;  %24 = vst.msk [vmem:[#allocation2 + $0x8] sm:$0xff] %vm22_vm0, %v802_v48 }
   0x3   :  { %v748_v2 = vld [vmem:[%s1046_s1] sm:$0xff]   ;;  %705 = vmatprep.subr.bf16.mxu1 %v747_v1  ;;  %v752_v6 = vld [vmem:[%s1046_s1 + $0x8] sm:$0xff]   ;;  %v756_v10 = vld [vmem:[%s1046_s1 + $0x10] sm:$0xff]   ;;  %25 = vst.msk [vmem:[#allocation2 + $0x10] sm:$0xff] %vm22_vm0, %v802_v48 }
   0x4   :  { %v749_v3 = vld [vmem:[%s1046_s1 + $0x80] sm:$0xff]   ;;  %666 = vmatpush3.bf16.msra.mxu0 %v748_v2  ;;  %v753_v7 = vld [vmem:[%s1046_s1 + $0x88] sm:$0xff]   ;;  %v757_v11 = vld [vmem:[%s1046_s1 + $0x90] sm:$0xff]   ;;  %26 = vst.msk [vmem:[#allocation2 + $0x18] sm:$0xff] %vm22_vm0, %v802_v48 }
   0x5   :  { %706 = vmatpush3.bf16.msra.mxu1 %v749_v3  ;;  %667 = vmatprep.subr.bf16.mxu0 %v750_v4  ;;  %v758_v12 = vld [vmem:[%s1046_s1 + $0x58] sm:$0xff]   ;;  %v762_v16 = vld [vmem:[%s1046_s1 + $0x60] sm:$0xff]   ;;  %v766_v20 = vld [vmem:[%s1046_s1 + $0x68] sm:$0xff]   ;;  %27 = vst.msk [vmem:[#allocation2 + $0x20] sm:$0xff] %vm22_vm0, %v802_v48 }
   0x6   :  { %707 = vmatprep.subr.bf16.mxu1 %v751_v5  ;;  %v759_v13 = vld [vmem:[%s1046_s1 + $0xd8] sm:$0xff]   ;;  %v763_v17 = vld [vmem:[%s1046_s1 + $0xe0] sm:$0xff]   ;;  %v767_v21 = vld [vmem:[%s1046_s1 + $0xe8] sm:$0xff]   ;;  %28 = vst.msk [vmem:[#allocation2 + $0x28] sm:$0xff] %vm22_vm0, %v802_v48 }
   0x7   :  { %v760_v14 = vld [vmem:[%s1046_s1 + $0x18] sm:$0xff]   ;;  %v764_v18 = vld [vmem:[%s1046_s1 + $0x20] sm:$0xff]   ;;  %v768_v22 = vld [vmem:[%s1046_s1 + $0x28] sm:$0xff]   ;;  %29 = vst.msk [vmem:[#allocation2 + $0x30] sm:$0xff] %vm22_vm0, %v802_v48 }
   0x8   :  { %668 = vmatpush3.bf16.msra.mxu0 %v752_v6  ;;  %v761_v15 = vld [vmem:[%s1046_s1 + $0x98] sm:$0xff]   ;;  %v765_v19 = vld [vmem:[%s1046_s1 + $0xa0] sm:$0xff]   ;;  %v769_v23 = vld [vmem:[%s1046_s1 + $0xa8] sm:$0xff]   ;;  %30 = vst.msk [vmem:[#allocation2 + $0x38] sm:$0xff] %vm22_vm0, %v802_v48 }
   0x9   :  { %708 = vmatpush3.bf16.msra.mxu1 %v753_v7  ;;  %669 = vmatprep.subr.bf16.mxu0 %v754_v8  ;;  %v770_v24 = vld [vmem:[%s1046_s1 + $0x70] sm:$0xff]   ;;  %v774_v28 = vld [vmem:[%s1046_s1 + $0x78] sm:$0xff]   ;;  %v31_v58 = vld [vmem:[#allocation2] sm:$0xff] }
   0xa   :  { %709 = vmatprep.subr.bf16.mxu1 %v755_v9  ;;  %v771_v25 = vld [vmem:[%s1046_s1 + $0xf0] sm:$0xff]   ;;  %v775_v29 = vld [vmem:[%s1046_s1 + $0xf8] sm:$0xff]   ;;  %v32_v63 = vld [vmem:[#allocation2 + $0x8] sm:$0xff] }
   0xb   :  { %v772_v26 = vld [vmem:[%s1046_s1 + $0x30] sm:$0xff]   ;;  %v776_v30 = vld [vmem:[%s1046_s1 + $0x38] sm:$0xff]  }
   0xc   :  { %670 = vmatpush3.bf16.msra.mxu0 %v756_v10  ;;  %v773_v27 = vld [vmem:[%s1046_s1 + $0xb0] sm:$0xff]   ;;  %v777_v31 = vld [vmem:[%s1046_s1 + $0xb8] sm:$0xff]  }
   0xd   :  { %710 = vmatpush3.bf16.msra.mxu1 %v757_v11  ;;  %671 = vmatprep.subr.bf16.mxu0 %v758_v12  ;;  %v778_v32 = vld [vmem:[%s1047_s0] ss:$16 sps:$4 sm:$0xff]   ;;  %v780_v33 = vld [vmem:[%s1047_s0 + $0x4] ss:$16 sps:$4 sm:$0xff]   ;;  %v781_v34 = vld [vmem:[%s1047_s0 + $0x8] ss:$16 sps:$4 sm:$0xff]  }
   0xe   :  { %711 = vmatprep.subr.bf16.mxu1 %v759_v13  ;;  %v783_v35 = vld [vmem:[%s1047_s0 + $0xc] ss:$16 sps:$4 sm:$0xff]   ;;  %423 = vmatprep.mubr.bf16.mxu0 %v780_v33  ;;  %v784_v36 = vld [vmem:[%s1047_s0 + $0x24] ss:$16 sps:$4 sm:$0xff]   ;;  %v788_v38 = vld [vmem:[%s1047_s0 + $0x20] ss:$16 sps:$4 sm:$0xff]  }
   0xf   :  { %488 = vmatprep.mubr.bf16.mxu1 %v783_v35  ;;  %v786_v37 = vld [vmem:[%s1047_s0 + $0x2c] ss:$16 sps:$4 sm:$0xff]   ;;  %v789_v39 = vld [vmem:[%s1047_s0 + $0x28] ss:$16 sps:$4 sm:$0xff]   ;;  %v790_v40 = vld [vmem:[%s1047_s0 + $0x44] ss:$16 sps:$4 sm:$0xff]  }
  0x10   :  { %672 = vmatpush3.bf16.msra.mxu0 %v760_v14  ;;  %v792_v41 = vld [vmem:[%s1047_s0 + $0x4c] ss:$16 sps:$4 sm:$0xff]   ;;  %v794_v42 = vld [vmem:[%s1047_s0 + $0x40] ss:$16 sps:$4 sm:$0xff]   ;;  %v795_v43 = vld [vmem:[%s1047_s0 + $0x48] ss:$16 sps:$4 sm:$0xff]  }
  0x11   :  { %712 = vmatpush3.bf16.msra.mxu1 %v761_v15  ;;  %673 = vmatprep.subr.bf16.mxu0 %v762_v16  ;;  %v796_v44 = vld [vmem:[%s1047_s0 + $0x64] ss:$16 sps:$4 sm:$0xff]   ;;  %v798_v45 = vld [vmem:[%s1047_s0 + $0x6c] ss:$16 sps:$4 sm:$0xff]   ;;  %v800_v46 = vld [vmem:[%s1047_s0 + $0x60] ss:$16 sps:$4 sm:$0xff]  }
  0x12   :  { %713 = vmatprep.subr.bf16.mxu1 %v763_v17  ;;  %v801_v47 = vld [vmem:[%s1047_s0 + $0x68] ss:$16 sps:$4 sm:$0xff]   ;;  %v33_v12 = vld [vmem:[#allocation2 + $0x10] sm:$0xff]  ;;  %v985_v17 = vld [vmem:[%s1048_s2] ss:$0 sm:$0xff] }
  0x14   :  { %674 = vmatpush3.bf16.msra.mxu0 %v764_v18  ;;  %v34_v18 = vld [vmem:[#allocation2 + $0x18] sm:$0xff] }
  0x15   :  { %714 = vmatpush3.bf16.msra.mxu1 %v765_v19  ;;  %675 = vmatprep.subr.bf16.mxu0 %v766_v20 }
  0x16   :  { %715 = vmatprep.subr.bf16.mxu1 %v767_v21 }
  0x18   :  { %676 = vmatpush3.bf16.msra.mxu0 %v768_v22  ;;  %v990_v22 = vld [vmem:[%s1049_s3] ss:$0 sm:$0xff] }
  0x19   :  { %716 = vmatpush3.bf16.msra.mxu1 %v769_v23  ;;  %677 = vmatprep.subr.bf16.mxu0 %v770_v24 }
  0x1a   :  { %717 = vmatprep.subr.bf16.mxu1 %v771_v25 }
  0x1c   :  { %678 = vmatpush3.bf16.msra.mxu0 %v772_v26 }
  0x1d   :  { %718 = vmatpush3.bf16.msra.mxu1 %v773_v27  ;;  %679 = vmatprep.subr.bf16.mxu0 %v774_v28 }
  0x1e   :  { %719 = vmatprep.subr.bf16.mxu1 %v775_v29 }
  0x20   :  { %680 = vmatpush3.bf16.msra.mxu0 %v776_v30 }
  0x21   :  { %720 = vmatpush3.bf16.msra.mxu1 %v777_v31 }
  0x23   :  { %424 = vmatmul.mubr.bf16.vlgmr.msra.gmra.mrb[0].mxu0 %v778_v32 }
  0x24   :  { %489 = vmatmul.mubr.bf16.vlgmr.msra.gmra.mrb[0].mxu1 %v781_v34  ;;  %431 = vmatprep.mubr.bf16.mxu0 %v784_v36 }
  0x25   :  { %496 = vmatprep.mubr.bf16.mxu1 %v786_v37  ;;  %v35_v37 = vld [vmem:[#allocation2 + $0x20] sm:$0xff] }
  0x2b   :  { %432 = vmatmul.mubr.bf16.gmra.mrb[4].mxu0 %v788_v38 }
  0x2c   :  { %497 = vmatmul.mubr.bf16.gmra.mrb[4].mxu1 %v789_v39  ;;  %439 = vmatprep.mubr.bf16.mxu0 %v790_v40 }
  0x2d   :  { %504 = vmatprep.mubr.bf16.mxu1 %v792_v41 }
  0x33   :  { %440 = vmatmul.mubr.bf16.gmra.mrb[8].mxu0 %v794_v42 }
  0x34   :  { %505 = vmatmul.mubr.bf16.gmra.mrb[8].mxu1 %v795_v43  ;;  %447 = vmatprep.mubr.bf16.mxu0 %v796_v44 }
  0x35   :  { %512 = vmatprep.mubr.bf16.mxu1 %v798_v45 }
  0x3b   :  { %448 = vmatmul.mubr.bf16.gmra.mrb[12].mxu0 %v800_v46 }
  0x3c   :  { %513 = vmatmul.mubr.bf16.gmra.mrb[12].mxu1 %v801_v47  ;;  %v36_v47 = vld [vmem:[#allocation2 + $0x28] sm:$0xff] }
  0xf6   :  { %v681_v49 = vpop.f32.mrb[0].mxu0 }
  0xf7   :  { %v721_v50 = vpop.f32.mrb[0].mxu1  ;;  %v682_v51 = vpop.f32.mrb[1].mxu0 }
  0xf8   :  { %v683_v52 = vadd.f32 %v682_v51, %v681_v49  ;;  %v722_v53 = vpop.f32.mrb[1].mxu1  ;;  %v684_v54 = vpop.f32.mrb[2].mxu0 }
  0xf9   :  { %v723_v55 = vadd.f32 %v722_v53, %v721_v50  ;;  %v724_v56 = vpop.f32.mrb[2].mxu1  ;;  %v685_v57 = vpop.f32.mrb[3].mxu0 }
  0xfa   :  { %v686_v59 = vadd.f32 %v685_v57, %v684_v54  ;;  %v725_v60 = vpop.f32.mrb[3].mxu1 }
  0xfb   :  { %v491_v61 = vadd.f32 %v723_v55, %v683_v52  ;;  %v726_v62 = vadd.f32 %v725_v60, %v724_v56 }
  0xfd   :  { %v521_v0 = vadd.f32 %v491_v61, %v31_v58  ;;  %v494_v1 = vadd.f32 %v726_v62, %v686_v59 }
  0xfe   :  { %v687_v2 = vpop.f32.mrb[4].mxu0 }
  0xff   :  { %530 = vst.msk [vmem:[#allocation2] sm:$0xff] %vm22_vm0, %v521_v0  ;;  %v522_v3 = vadd.f32 %v494_v1, %v32_v63  ;;  %v727_v4 = vpop.f32.mrb[4].mxu1  ;;  %v688_v5 = vpop.f32.mrb[5].mxu0  ;;  %v37_v1 = vld [vmem:[#allocation2 + $0x30] sm:$0xff] }
 0x100   :  { %v689_v6 = vadd.f32 %v688_v5, %v687_v2  ;;  %v728_v7 = vpop.f32.mrb[5].mxu1  ;;  %v690_v8 = vpop.f32.mrb[6].mxu0 }
 0x101   :  { %531 = vst.msk [vmem:[#allocation2 + $0x8] sm:$0xff] %vm22_vm0, %v522_v3  ;;  %v729_v9 = vadd.f32 %v728_v7, %v727_v4  ;;  %v730_v10 = vpop.f32.mrb[6].mxu1  ;;  %v691_v11 = vpop.f32.mrb[7].mxu0 }
 0x102   :  { %v692_v13 = vadd.f32 %v691_v11, %v690_v8  ;;  %v731_v14 = vpop.f32.mrb[7].mxu1  ;;  %v38_v11 = vld [vmem:[#allocation2 + $0x38] sm:$0xff] }
 0x103   :  { %v499_v15 = vadd.f32 %v729_v9, %v689_v6  ;;  %v732_v16 = vadd.f32 %v731_v14, %v730_v10 }
 0x105   :  { %v523_v19 = vadd.f32 %v499_v15, %v33_v12  ;;  %v502_v20 = vadd.f32 %v732_v16, %v692_v13 }
 0x106   :  { %v541_v21 = vld [vmem:[#allocation2] sm:$0xff]  ;;  %v693_v23 = vpop.f32.mrb[8].mxu0 }
 0x107   :  { %v556_v24 = vmul.f32 %v985_v17, %v541_v21  ;;  %532 = vst.msk [vmem:[#allocation2 + $0x10] sm:$0xff] %vm22_vm0, %v523_v19  ;;  %v524_v25 = vadd.f32 %v502_v20, %v34_v18  ;;  %v733_v26 = vpop.f32.mrb[8].mxu1  ;;  %v694_v27 = vpop.f32.mrb[9].mxu0 }
 0x108   :  { %v542_v28 = vld [vmem:[#allocation2 + $0x8] sm:$0xff]  ;;  %v695_v29 = vadd.f32 %v694_v27, %v693_v23  ;;  %v734_v30 = vpop.f32.mrb[9].mxu1  ;;  %v696_v31 = vpop.f32.mrb[10].mxu0 }
 0x109   :  { %v571_v32 = vadd.f32 %v990_v22, %v556_v24  ;;  %v557_v33 = vmul.f32 %v985_v17, %v542_v28  ;;  %533 = vst.msk [vmem:[#allocation2 + $0x18] sm:$0xff] %vm22_vm0, %v524_v25  ;;  %v735_v34 = vadd.f32 %v734_v30, %v733_v26  ;;  %v736_v35 = vpop.f32.mrb[10].mxu1  ;;  %v697_v36 = vpop.f32.mrb[11].mxu0 }
 0x10a   :  { %v698_v38 = vadd.f32 %v697_v36, %v696_v31  ;;  %v737_v39 = vpop.f32.mrb[11].mxu1 }
 0x10b   :  { %vm579_vm1 = vcmp.gt.f32.partialorder %v571_v32, 0.0  ;;  %v587_v40 = vmul.f32 0.2, %v571_v32  ;;  %v572_v41 = vadd.f32 %v990_v22, %v557_v33  ;;  %v507_v42 = vadd.f32 %v735_v34, %v695_v29 }
 0x10c   :  { %v738_v43 = vadd.f32 %v737_v39, %v736_v35 }
 0x10d   :  { %v595_v44 = vsel %vm579_vm1, %v571_v32, %v587_v40  ;;  %vm580_vm2 = vcmp.gt.f32.partialorder %v572_v41, 0.0  ;;  %v588_v45 = vmul.f32 0.2, %v572_v41  ;;  %v525_v46 = vadd.f32 %v507_v42, %v35_v37 }
 0x10e   :  { %603 = vst.msk [vmem:[%s1050_s4] sm:$0xff] %vm22_vm0, %v595_v44  ;;  %v543_v48 = vld [vmem:[#allocation2 + $0x10] sm:$0xff]  ;;  %v510_v49 = vadd.f32 %v738_v43, %v698_v38  ;;  %v699_v50 = vpop.f32.mrb[12].mxu0 }
 0x10f   :  { %v596_v51 = vsel %vm580_vm2, %v572_v41, %v588_v45  ;;  %v558_v52 = vmul.f32 %v985_v17, %v543_v48  ;;  %534 = vst.msk [vmem:[#allocation2 + $0x20] sm:$0xff] %vm22_vm0, %v525_v46  ;;  %v739_v53 = vpop.f32.mrb[12].mxu1  ;;  %v700_v54 = vpop.f32.mrb[13].mxu0 }
 0x110   :  { %604 = vst.msk [vmem:[%s1050_s4 + $0x8] sm:$0xff] %vm22_vm0, %v596_v51  ;;  %v544_v55 = vld [vmem:[#allocation2 + $0x18] sm:$0xff]  ;;  %v526_v56 = vadd.f32 %v510_v49, %v36_v47  ;;  %v701_v57 = vadd.f32 %v700_v54, %v699_v50  ;;  %v740_v58 = vpop.f32.mrb[13].mxu1  ;;  %v702_v59 = vpop.f32.mrb[14].mxu0 }
 0x111   :  { %v573_v60 = vadd.f32 %v990_v22, %v558_v52  ;;  %v559_v61 = vmul.f32 %v985_v17, %v544_v55  ;;  %v741_v62 = vadd.f32 %v740_v58, %v739_v53  ;;  %v742_v63 = vpop.f32.mrb[14].mxu1  ;;  %v703_v0 = vpop.f32.mrb[15].mxu0 }
 0x112   :  { %535 = vst.msk [vmem:[#allocation2 + $0x28] sm:$0xff] %vm22_vm0, %v526_v56  ;;  %v704_v2 = vadd.f32 %v703_v0, %v702_v59  ;;  %v743_v3 = vpop.f32.mrb[15].mxu1 }
 0x113   :  { %vm581_vm3 = vcmp.gt.f32.partialorder %v573_v60, 0.0  ;;  %v589_v4 = vmul.f32 0.2, %v573_v60  ;;  %v574_v5 = vadd.f32 %v990_v22, %v559_v61  ;;  %v515_v6 = vadd.f32 %v741_v62, %v701_v57 }
 0x114   :  { %v744_v7 = vadd.f32 %v743_v3, %v742_v63 }
 0x115   :  { %v597_v8 = vsel %vm581_vm3, %v573_v60, %v589_v4  ;;  %vm582_vm4 = vcmp.gt.f32.partialorder %v574_v5, 0.0  ;;  %v590_v9 = vmul.f32 0.2, %v574_v5  ;;  %v527_v10 = vadd.f32 %v515_v6, %v37_v1 }
 0x116   :  { %605 = vst.msk [vmem:[%s1050_s4 + $0x10] sm:$0xff] %vm22_vm0, %v597_v8  ;;  %v545_v12 = vld [vmem:[#allocation2 + $0x20] sm:$0xff]  ;;  %v518_v13 = vadd.f32 %v744_v7, %v704_v2 }
 0x117   :  { %v598_v14 = vsel %vm582_vm4, %v574_v5, %v590_v9  ;;  %v560_v15 = vmul.f32 %v985_v17, %v545_v12  ;;  %536 = vst.msk [vmem:[#allocation2 + $0x30] sm:$0xff] %vm22_vm0, %v527_v10 }
 0x118   :  { %606 = vst.msk [vmem:[%s1050_s4 + $0x18] sm:$0xff] %vm22_vm0, %v598_v14  ;;  %v528_v16 = vadd.f32 %v518_v13, %v38_v11 }
 0x119   :  { %v575_v18 = vadd.f32 %v990_v22, %v560_v15  ;;  %v546_v19 = vld [vmem:[#allocation2 + $0x28] sm:$0xff] }
 0x11a   :  { %v561_v20 = vmul.f32 %v985_v17, %v546_v19  ;;  %537 = vst.msk [vmem:[#allocation2 + $0x38] sm:$0xff] %vm22_vm0, %v528_v16 }
 0x11b   :  { %vm583_vm5 = vcmp.gt.f32.partialorder %v575_v18, 0.0  ;;  %v591_v21 = vmul.f32 0.2, %v575_v18 }
 0x11c   :  { %v576_v23 = vadd.f32 %v990_v22, %v561_v20 }
 0x11d   :  { %v599_v24 = vsel %vm583_vm5, %v575_v18, %v591_v21 }
 0x11e   :  { %607 = vst.msk [vmem:[%s1050_s4 + $0x20] sm:$0xff] %vm22_vm0, %v599_v24  ;;  %vm584_vm6 = vcmp.gt.f32.partialorder %v576_v23, 0.0  ;;  %v592_v25 = vmul.f32 0.2, %v576_v23  ;;  %v547_v26 = vld [vmem:[#allocation2 + $0x30] sm:$0xff] }
 0x11f   :  { %v562_v27 = vmul.f32 %v985_v17, %v547_v26 }
 0x120   :  { %v600_v28 = vsel %vm584_vm6, %v576_v23, %v592_v25 }
 0x121   :  { %608 = vst.msk [vmem:[%s1050_s4 + $0x28] sm:$0xff] %vm22_vm0, %v600_v28  ;;  %v577_v29 = vadd.f32 %v990_v22, %v562_v27  ;;  %v548_v30 = vld [vmem:[#allocation2 + $0x38] sm:$0xff] }
 0x122   :  { %v563_v31 = vmul.f32 %v985_v17, %v548_v30 }
 0x123   :  { %vm585_vm7 = vcmp.gt.f32.partialorder %v577_v29, 0.0  ;;  %v593_v32 = vmul.f32 0.2, %v577_v29 }
 0x124   :  { %v578_v33 = vadd.f32 %v990_v22, %v563_v31 }
 0x125   :  { %v601_v34 = vsel %vm585_vm7, %v577_v29, %v593_v32 }
 0x126   :  { %609 = vst.msk [vmem:[%s1050_s4 + $0x30] sm:$0xff] %vm22_vm0, %v601_v34  ;;  %vm586_vm8 = vcmp.gt.f32.partialorder %v578_v33, 0.0  ;;  %v594_v35 = vmul.f32 0.2, %v578_v33 }
 0x128   :  { %v602_v36 = vsel %vm586_vm8, %v578_v33, %v594_v35 }
 0x129   :  { %610 = vst.msk [vmem:[%s1050_s4 + $0x38] sm:$0xff] %vm22_vm0, %v602_v36 }

// kernel: encoder_forward.9
= control target key start
LH: loop header
LB: loop body
LE: loop exit
PB: predicated region body
PF: predicated region fallthrough
CT: control target
= control target key end

     0   :  { %s1268_s1 = inlined_call_operand.vmem [shape: bf16[1024,128], index: 1, kind: input, shape index: {}]   ;;  %s1269_s0 = inlined_call_operand.vmem [shape: bf16[16,1024], index: 0, kind: input, shape index: {}]   ;;  %s1270_s2 = inlined_call_operand.vmem [shape: f32[1,128], index: 2, kind: input, shape index: {}]   ;;  %s1271_s3 = inlined_call_operand.vmem [shape: f32[1,128], index: 3, kind: input, shape index: {}]   ;;  %s1272_s4 = inlined_call_operand.vmem [shape: f32[16,128], index: 4, kind: output, shape index: {}]  }
   0x1   :  { %v951_v0 = vld [vmem:[%s1268_s1 + $0x40] sm:$0xff]   ;;  %v955_v4 = vld [vmem:[%s1268_s1 + $0x48] sm:$0xff]   ;;  %v959_v8 = vld [vmem:[%s1268_s1 + $0x50] sm:$0xff]  }
   0x2   :  { %v952_v1 = vld [vmem:[%s1268_s1 + $0xc0] sm:$0xff]   ;;  %863 = vmatprep.subr.bf16.mxu0 %v951_v0  ;;  %v956_v5 = vld [vmem:[%s1268_s1 + $0xc8] sm:$0xff]   ;;  %v960_v9 = vld [vmem:[%s1268_s1 + $0xd0] sm:$0xff]  }
   0x3   :  { %v953_v2 = vld [vmem:[%s1268_s1] sm:$0xff]   ;;  %885 = vmatprep.subr.bf16.mxu1 %v952_v1  ;;  %v957_v6 = vld [vmem:[%s1268_s1 + $0x8] sm:$0xff]   ;;  %v961_v10 = vld [vmem:[%s1268_s1 + $0x10] sm:$0xff]  }
   0x4   :  { %v954_v3 = vld [vmem:[%s1268_s1 + $0x80] sm:$0xff]   ;;  %864 = vmatpush3.bf16.msra.mxu0 %v953_v2  ;;  %v958_v7 = vld [vmem:[%s1268_s1 + $0x88] sm:$0xff]   ;;  %v962_v11 = vld [vmem:[%s1268_s1 + $0x90] sm:$0xff]  }
   0x5   :  { %886 = vmatpush3.bf16.msra.mxu1 %v954_v3  ;;  %865 = vmatprep.subr.bf16.mxu0 %v955_v4  ;;  %v963_v12 = vld [vmem:[%s1268_s1 + $0x58] sm:$0xff]   ;;  %v967_v16 = vld [vmem:[%s1268_s1 + $0x60] sm:$0xff]   ;;  %v971_v20 = vld [vmem:[%s1268_s1 + $0x68] sm:$0xff]  }
   0x6   :  { %887 = vmatprep.subr.bf16.mxu1 %v956_v5  ;;  %v964_v13 = vld [vmem:[%s1268_s1 + $0xd8] sm:$0xff]   ;;  %v968_v17 = vld [vmem:[%s1268_s1 + $0xe0] sm:$0xff]   ;;  %v972_v21 = vld [vmem:[%s1268_s1 + $0xe8] sm:$0xff]  }
   0x7   :  { %v965_v14 = vld [vmem:[%s1268_s1 + $0x18] sm:$0xff]   ;;  %v969_v18 = vld [vmem:[%s1268_s1 + $0x20] sm:$0xff]   ;;  %v973_v22 = vld [vmem:[%s1268_s1 + $0x28] sm:$0xff]  }
   0x8   :  { %866 = vmatpush3.bf16.msra.mxu0 %v957_v6  ;;  %v966_v15 = vld [vmem:[%s1268_s1 + $0x98] sm:$0xff]   ;;  %v970_v19 = vld [vmem:[%s1268_s1 + $0xa0] sm:$0xff]   ;;  %v974_v23 = vld [vmem:[%s1268_s1 + $0xa8] sm:$0xff]  }
   0x9   :  { %888 = vmatpush3.bf16.msra.mxu1 %v958_v7  ;;  %867 = vmatprep.subr.bf16.mxu0 %v959_v8  ;;  %v975_v24 = vld [vmem:[%s1268_s1 + $0x70] sm:$0xff]   ;;  %v979_v28 = vld [vmem:[%s1268_s1 + $0x78] sm:$0xff]   ;;  %v26_v32 = vld [vmem:[%s1269_s0] sm:$0xff] }
   0xa   :  { %889 = vmatprep.subr.bf16.mxu1 %v960_v9  ;;  %v976_v25 = vld [vmem:[%s1268_s1 + $0xf0] sm:$0xff]   ;;  %v980_v29 = vld [vmem:[%s1268_s1 + $0xf8] sm:$0xff]   ;;  %v30_v33 = vld [vmem:[%s1269_s0 + $0x20] sm:$0xff] }
   0xb   :  { %v977_v26 = vld [vmem:[%s1268_s1 + $0x30] sm:$0xff]   ;;  %v981_v30 = vld [vmem:[%s1268_s1 + $0x38] sm:$0xff]   ;;  %v27_v34 = vld [vmem:[%s1269_s0 + $0x8] sm:$0xff]  ;;  %v789_v35 = vcombine.low %v26_v32, %v30_v33  ;;  %v790_v36 = vcombine.high %v26_v32, %v30_v33 }
   0xc   :  { %868 = vmatpush3.bf16.msra.mxu0 %v961_v10  ;;  %v978_v27 = vld [vmem:[%s1268_s1 + $0xb0] sm:$0xff]   ;;  %v982_v31 = vld [vmem:[%s1268_s1 + $0xb8] sm:$0xff]   ;;  %v31_v37 = vld [vmem:[%s1269_s0 + $0x28] sm:$0xff] }
   0xd   :  { %890 = vmatpush3.bf16.msra.mxu1 %v962_v11  ;;  %869 = vmatprep.subr.bf16.mxu0 %v963_v12  ;;  %v791_v38 = vcombine.low %v27_v34, %v31_v37  ;;  %v792_v39 = vcombine.high %v27_v34, %v31_v37  ;;  %v983_v40 = vld [vmem:[%s1268_s1 + $0x140] sm:$0xff]   ;;  %v987_v44 = vld [vmem:[%s1268_s1 + $0x148] sm:$0xff]   ;;  %v991_v48 = vld [vmem:[%s1268_s1 + $0x150] sm:$0xff]  }
   0xe   :  { %891 = vmatprep.subr.bf16.mxu1 %v964_v13  ;;  %618 = vmatprep.mubr.bf16.mxu0 %v790_v36  ;;  %v984_v41 = vld [vmem:[%s1268_s1 + $0x1c0] sm:$0xff]   ;;  %v988_v45 = vld [vmem:[%s1268_s1 + $0x1c8] sm:$0xff]   ;;  %v992_v49 = vld [vmem:[%s1268_s1 + $0x1d0] sm:$0xff]  }
   0xf   :  { %659 = vmatprep.mubr.bf16.mxu1 %v792_v39  ;;  %v985_v42 = vld [vmem:[%s1268_s1 + $0x100] sm:$0xff]   ;;  %v989_v46 = vld [vmem:[%s1268_s1 + $0x108] sm:$0xff]   ;;  %v993_v50 = vld [vmem:[%s1268_s1 + $0x110] sm:$0xff]  }
  0x10   :  { %870 = vmatpush3.bf16.msra.mxu0 %v965_v14  ;;  %v986_v43 = vld [vmem:[%s1268_s1 + $0x180] sm:$0xff]   ;;  %v990_v47 = vld [vmem:[%s1268_s1 + $0x188] sm:$0xff]   ;;  %v994_v51 = vld [vmem:[%s1268_s1 + $0x190] sm:$0xff]  }
  0x11   :  { %892 = vmatpush3.bf16.msra.mxu1 %v966_v15  ;;  %871 = vmatprep.subr.bf16.mxu0 %v967_v16  ;;  %v995_v52 = vld [vmem:[%s1268_s1 + $0x158] sm:$0xff]   ;;  %v999_v56 = vld [vmem:[%s1268_s1 + $0x160] sm:$0xff]   ;;  %v1003_v60 = vld [vmem:[%s1268_s1 + $0x168] sm:$0xff]  }
  0x12   :  { %893 = vmatprep.subr.bf16.mxu1 %v968_v17  ;;  %v996_v53 = vld [vmem:[%s1268_s1 + $0x1d8] sm:$0xff]   ;;  %v1000_v57 = vld [vmem:[%s1268_s1 + $0x1e0] sm:$0xff]   ;;  %v1004_v61 = vld [vmem:[%s1268_s1 + $0x1e8] sm:$0xff]  }
  0x13   :  { %v997_v54 = vld [vmem:[%s1268_s1 + $0x118] sm:$0xff]   ;;  %v1001_v58 = vld [vmem:[%s1268_s1 + $0x120] sm:$0xff]   ;;  %v1005_v62 = vld [vmem:[%s1268_s1 + $0x128] sm:$0xff]  }
  0x14   :  { %872 = vmatpush3.bf16.msra.mxu0 %v969_v18  ;;  %v998_v55 = vld [vmem:[%s1268_s1 + $0x198] sm:$0xff]   ;;  %v1002_v59 = vld [vmem:[%s1268_s1 + $0x1a0] sm:$0xff]   ;;  %v1006_v63 = vld [vmem:[%s1268_s1 + $0x1a8] sm:$0xff]  }
  0x15   :  { %894 = vmatpush3.bf16.msra.mxu1 %v970_v19  ;;  %873 = vmatprep.subr.bf16.mxu0 %v971_v20  ;;  %v1007_v0 = vld [vmem:[%s1268_s1 + $0x170] sm:$0xff]   ;;  %v1011_v4 = vld [vmem:[%s1268_s1 + $0x178] sm:$0xff]  }
  0x16   :  { %895 = vmatprep.subr.bf16.mxu1 %v972_v21  ;;  %v1008_v1 = vld [vmem:[%s1268_s1 + $0x1f0] sm:$0xff]   ;;  %v1012_v5 = vld [vmem:[%s1268_s1 + $0x1f8] sm:$0xff]  }
  0x17   :  { %v1009_v2 = vld [vmem:[%s1268_s1 + $0x130] sm:$0xff]   ;;  %v1013_v6 = vld [vmem:[%s1268_s1 + $0x138] sm:$0xff]  }
  0x18   :  { %874 = vmatpush3.bf16.msra.mxu0 %v973_v22  ;;  %v1010_v3 = vld [vmem:[%s1268_s1 + $0x1b0] sm:$0xff]   ;;  %v1014_v7 = vld [vmem:[%s1268_s1 + $0x1b8] sm:$0xff]  }
  0x19   :  { %896 = vmatpush3.bf16.msra.mxu1 %v974_v23  ;;  %875 = vmatprep.subr.bf16.mxu0 %v975_v24  ;;  %v28_v8 = vld [vmem:[%s1269_s0 + $0x10] sm:$0xff]  ;;  %v29_v12 = vld [vmem:[%s1269_s0 + $0x18] sm:$0xff] }
  0x1a   :  { %897 = vmatprep.subr.bf16.mxu1 %v976_v25  ;;  %v32_v9 = vld [vmem:[%s1269_s0 + $0x30] sm:$0xff]  ;;  %v33_v13 = vld [vmem:[%s1269_s0 + $0x38] sm:$0xff] }
  0x1b   :  { %v793_v10 = vcombine.low %v28_v8, %v32_v9  ;;  %v794_v11 = vcombine.high %v28_v8, %v32_v9  ;;  %v795_v14 = vcombine.low %v29_v12, %v33_v13  ;;  %v796_v15 = vcombine.high %v29_v12, %v33_v13 }
  0x1c   :  { %876 = vmatpush3.bf16.msra.mxu0 %v977_v26 }
  0x1d   :  { %898 = vmatpush3.bf16.msra.mxu1 %v978_v27  ;;  %877 = vmatprep.subr.bf16.mxu0 %v979_v28 }
  0x1e   :  { %899 = vmatprep.subr.bf16.mxu1 %v980_v29 }
  0x20   :  { %878 = vmatpush3.bf16.msra.mxu0 %v981_v30 }
  0x21   :  { %900 = vmatpush3.bf16.msra.mxu1 %v982_v31  ;;  %907 = vmatprep.subr.bf16.mxu0 %v983_v40 }
  0x22   :  { %929 = vmatprep.subr.bf16.mxu1 %v984_v41 }
  0x23   :  { %619 = vmatmul.mubr.bf16.vlgmr.msra.gmra.mrb[0].mxu0 %v789_v35 }
  0x24   :  { %660 = vmatmul.mubr.bf16.vlgmr.msra.gmra.mrb[0].mxu1 %v791_v38  ;;  %908 = vmatpush3.bf16.msra.mxu0 %v985_v42  ;;  %v861_v42 = vld [vmem:[%s1270_s2] ss:$0 sm:$0xff] }
  0x25   :  { %930 = vmatpush3.bf16.msra.mxu1 %v986_v43  ;;  %909 = vmatprep.subr.bf16.mxu0 %v987_v44 }
  0x26   :  { %931 = vmatprep.subr.bf16.mxu1 %v988_v45  ;;  %700 = vmatprep.mubr.bf16.mxu0 %v794_v11 }
  0x27   :  { %741 = vmatprep.mubr.bf16.mxu1 %v796_v15 }
  0x28   :  { %910 = vmatpush3.bf16.msra.mxu0 %v989_v46  ;;  %v862_v46 = vld [vmem:[%s1271_s3] ss:$0 sm:$0xff] }
  0x29   :  { %932 = vmatpush3.bf16.msra.mxu1 %v990_v47  ;;  %911 = vmatprep.subr.bf16.mxu0 %v991_v48 }
  0x2a   :  { %933 = vmatprep.subr.bf16.mxu1 %v992_v49 }
  0x2c   :  { %912 = vmatpush3.bf16.msra.mxu0 %v993_v50 }
  0x2d   :  { %934 = vmatpush3.bf16.msra.mxu1 %v994_v51  ;;  %913 = vmatprep.subr.bf16.mxu0 %v995_v52 }
  0x2e   :  { %935 = vmatprep.subr.bf16.mxu1 %v996_v53 }
  0x30   :  { %914 = vmatpush3.bf16.msra.mxu0 %v997_v54 }
  0x31   :  { %936 = vmatpush3.bf16.msra.mxu1 %v998_v55  ;;  %915 = vmatprep.subr.bf16.mxu0 %v999_v56 }
  0x32   :  { %937 = vmatprep.subr.bf16.mxu1 %v1000_v57 }
  0x34   :  { %916 = vmatpush3.bf16.msra.mxu0 %v1001_v58 }
  0x35   :  { %938 = vmatpush3.bf16.msra.mxu1 %v1002_v59  ;;  %917 = vmatprep.subr.bf16.mxu0 %v1003_v60 }
  0x36   :  { %939 = vmatprep.subr.bf16.mxu1 %v1004_v61 }
  0x38   :  { %918 = vmatpush3.bf16.msra.mxu0 %v1005_v62 }
  0x39   :  { %940 = vmatpush3.bf16.msra.mxu1 %v1006_v63  ;;  %919 = vmatprep.subr.bf16.mxu0 %v1007_v0 }
  0x3a   :  { %941 = vmatprep.subr.bf16.mxu1 %v1008_v1 }
  0x3c   :  { %920 = vmatpush3.bf16.msra.mxu0 %v1009_v2 }
  0x3d   :  { %942 = vmatpush3.bf16.msra.mxu1 %v1010_v3  ;;  %921 = vmatprep.subr.bf16.mxu0 %v1011_v4 }
  0x3e   :  { %943 = vmatprep.subr.bf16.mxu1 %v1012_v5 }
  0x40   :  { %922 = vmatpush3.bf16.msra.mxu0 %v1013_v6 }
  0x41   :  { %944 = vmatpush3.bf16.msra.mxu1 %v1014_v7 }
  0x43   :  { %701 = vmatmul.mubr.bf16.vlgmr.msra.gmra.mrb[4].mxu0 %v793_v10 }
  0x44   :  { %742 = vmatmul.mubr.bf16.vlgmr.msra.gmra.mrb[4].mxu1 %v795_v14 }
  0xf6   :  { %v879_v16 = vpop.f32.mrb[0].mxu0 }
  0xf7   :  { %v901_v17 = vpop.f32.mrb[0].mxu1  ;;  %v880_v18 = vpop.f32.mrb[1].mxu0 }
  0xf8   :  { %v881_v19 = vadd.f32 %v880_v18, %v879_v16  ;;  %v902_v20 = vpop.f32.mrb[1].mxu1  ;;  %v882_v21 = vpop.f32.mrb[2].mxu0 }
  0xf9   :  { %v903_v22 = vadd.f32 %v902_v20, %v901_v17  ;;  %v904_v23 = vpop.f32.mrb[2].mxu1  ;;  %v883_v24 = vpop.f32.mrb[3].mxu0 }
  0xfa   :  { %v884_v25 = vadd.f32 %v883_v24, %v882_v21  ;;  %v905_v26 = vpop.f32.mrb[3].mxu1 }
  0xfb   :  { %v662_v27 = vadd.f32 %v903_v22, %v881_v19  ;;  %v906_v28 = vadd.f32 %v905_v26, %v904_v23 }
  0xfd   :  { %v665_v29 = vadd.f32 %v906_v28, %v884_v25 }
 0x116   :  { %v923_v30 = vpop.f32.mrb[4].mxu0 }
 0x117   :  { %v945_v31 = vpop.f32.mrb[4].mxu1  ;;  %v924_v32 = vpop.f32.mrb[5].mxu0 }
 0x118   :  { %v925_v33 = vadd.f32 %v924_v32, %v923_v30  ;;  %v946_v34 = vpop.f32.mrb[5].mxu1  ;;  %v926_v35 = vpop.f32.mrb[6].mxu0 }
 0x119   :  { %v947_v36 = vadd.f32 %v946_v34, %v945_v31  ;;  %v948_v37 = vpop.f32.mrb[6].mxu1  ;;  %v927_v38 = vpop.f32.mrb[7].mxu0 }
 0x11a   :  { %v703_v39 = vadd.f32 %v925_v33, %v662_v27  ;;  %v928_v40 = vadd.f32 %v927_v38, %v926_v35  ;;  %v949_v41 = vpop.f32.mrb[7].mxu1 }
 0x11b   :  { %v950_v43 = vadd.f32 %v949_v41, %v948_v37 }
 0x11c   :  { %v744_v44 = vadd.f32 %v947_v36, %v703_v39  ;;  %v706_v45 = vadd.f32 %v928_v40, %v665_v29 }
 0x11e   :  { %v766_v47 = vmul.f32 %v861_v42, %v744_v44  ;;  %v747_v48 = vadd.f32 %v950_v43, %v706_v45 }
 0x120   :  { %v775_v49 = vadd.f32 %v862_v46, %v766_v47  ;;  %v767_v50 = vmul.f32 %v861_v42, %v747_v48 }
 0x122   :  { %vm777_vm0 = vcmp.gt.f32.partialorder %v775_v49, 0.0  ;;  %v779_v51 = vmul.f32 0.2, %v775_v49  ;;  %v776_v52 = vadd.f32 %v862_v46, %v767_v50 }
 0x124   :  { %v781_v53 = vsel %vm777_vm0, %v775_v49, %v779_v51  ;;  %vm778_vm1 = vcmp.gt.f32.partialorder %v776_v52, 0.0  ;;  %v780_v54 = vmul.f32 0.2, %v776_v52 }
 0x125   :  { %783 = vst [vmem:[%s1272_s4] sm:$0xff] %v781_v53 }
 0x126   :  { %v782_v55 = vsel %vm778_vm1, %v776_v52, %v780_v54 }
 0x127   :  { %784 = vst [vmem:[%s1272_s4 + $0x8] sm:$0xff] %v782_v55 }

// kernel: encoder_forward.12
= control target key start
LH: loop header
LB: loop body
LE: loop exit
PB: predicated region body
PF: predicated region fallthrough
CT: control target
= control target key end

     0   :  { %v307_v6 = vmov 1966171168   ;;  %v69_v8 = vlaneseq  ;;  %v308_v26 = vmov 0.0   ;;  %s394_s1 = inlined_call_operand.vmem [shape: bf16[256,128], index: 1, kind: input, shape index: {}]   ;;  %s395_s0 = inlined_call_operand.vmem [shape: bf16[2,256], index: 0, kind: input, shape index: {}]   ;;  %s396_s2 = inlined_call_operand.vmem [shape: f32[1,128], index: 2, kind: input, shape index: {}]   ;;  %s397_s3 = inlined_call_operand.vmem [shape: f32[1,128], index: 3, kind: input, shape index: {}]   ;;  %s398_s4 = inlined_call_operand.vmem [shape: f32[2,128], index: 4, kind: output, shape index: {}]  }
   0x1   :  { %v291_v0 = vld [vmem:[%s394_s1 + $0x40] sm:$0xff]   ;;  %v293_v2 = vld [vmem:[%s394_s1 + $0x48] sm:$0xff]   ;;  %v295_v4 = vld [vmem:[%s394_s1 + $0x50] sm:$0xff]   ;;  %v67_v7 = vunpack.c.l.s4 %v307_v6  ;;  %22 = vst [vmem:[#allocation2] sm:$0x3] %v308_v26 }
   0x2   :  { %v292_v1 = vld [vmem:[%s394_s1] sm:$0xff]   ;;  %267 = vmatprep.subr.bf16.mxu0 %v291_v0  ;;  %v294_v3 = vld [vmem:[%s394_s1 + $0x8] sm:$0xff]   ;;  %v296_v5 = vld [vmem:[%s394_s1 + $0x10] sm:$0xff]   ;;  %v70_v12 = vshrl.u32 %v69_v8, 7 }
   0x3   :  { %268 = vmatpush3.bf16.msra.mxu0 %v292_v1  ;;  %v297_v9 = vld [vmem:[%s394_s1 + $0x58] sm:$0xff]   ;;  %v68_v11 = vunpack.c.0.s8 %v67_v7  ;;  %v299_v13 = vld [vmem:[%s394_s1 + $0x60] sm:$0xff]   ;;  %v301_v16 = vld [vmem:[%s394_s1 + $0x68] sm:$0xff]  }
   0x4   :  { %269 = vmatprep.subr.bf16.mxu0 %v293_v2  ;;  %v298_v10 = vld [vmem:[%s394_s1 + $0x18] sm:$0xff]   ;;  %v300_v14 = vld [vmem:[%s394_s1 + $0x20] sm:$0xff]   ;;  %v302_v19 = vld [vmem:[%s394_s1 + $0x28] sm:$0xff]  }
   0x5   :  { %v71_v15 = vsub.s32 %v68_v11, %v70_v12  ;;  %v248_v17 = vld.sshfl [vmem:[%s395_s0] sm:$0x11 pattern:$0x75316420]  ;;  %v303_v21 = vld [vmem:[%s394_s1 + $0x70] sm:$0xff]   ;;  %v305_v23 = vld [vmem:[%s394_s1 + $0x78] sm:$0xff]  }
   0x6   :  { %v65_v18 = vcombine.high %v248_v17, %v248_v17  ;;  %v304_v22 = vld [vmem:[%s394_s1 + $0x30] sm:$0xff]   ;;  %v306_v24 = vld [vmem:[%s394_s1 + $0x38] sm:$0xff]   ;;  %v265_v34 = vld [vmem:[%s396_s2] ss:$0 sm:$0xff] }
   0x7   :  { %270 = vmatpush3.bf16.msra.mxu0 %v294_v3  ;;  %v72_v25 = vrot.slane %v248_v17, %v71_v15  ;;  %v266_v36 = vld [vmem:[%s397_s3] ss:$0 sm:$0xff] }
   0x8   :  { %271 = vmatprep.subr.bf16.mxu0 %v295_v4  ;;  %v79_v20 = vrot.slane %v65_v18, %v71_v15  ;;  %v23_v28 = vld [vmem:[#allocation2] sm:$0x3] }
   0xa   :  { %210 = vmatprep.mubr.bf16.mxu0 %v79_v20 }
   0xb   :  { %272 = vmatpush3.bf16.msra.mxu0 %v296_v5 }
   0xc   :  { %273 = vmatprep.subr.bf16.mxu0 %v297_v9 }
   0xf   :  { %274 = vmatpush3.bf16.msra.mxu0 %v298_v10 }
  0x10   :  { %275 = vmatprep.subr.bf16.mxu0 %v299_v13 }
  0x13   :  { %276 = vmatpush3.bf16.msra.mxu0 %v300_v14 }
  0x14   :  { %277 = vmatprep.subr.bf16.mxu0 %v301_v16 }
  0x17   :  { %278 = vmatpush3.bf16.msra.mxu0 %v302_v19 }
  0x18   :  { %279 = vmatprep.subr.bf16.mxu0 %v303_v21 }
  0x1b   :  { %280 = vmatpush3.bf16.msra.mxu0 %v304_v22 }
  0x1c   :  { %281 = vmatprep.subr.bf16.mxu0 %v305_v23 }
  0x1f   :  { %282 = vmatpush3.bf16.msra.mxu0 %v306_v24 }
  0x22   :  { %211 = vmatmul.mubr.bf16.vlgmr.msra.gmra.mrb[0].mxu0 %v72_v25 }
  0xf5   :  { %v283_v27 = vpop.f32.mrb[0].mxu0 }
  0xf6   :  { %v284_v29 = vpop.f32.mrb[1].mxu0 }
  0xf7   :  { %v285_v30 = vadd.f32 %v284_v29, %v283_v27  ;;  %v286_v31 = vpop.f32.mrb[2].mxu0 }
  0xf8   :  { %v287_v32 = vpop.f32.mrb[3].mxu0 }
  0xf9   :  { %v218_v33 = vadd.f32 %v285_v30, %v23_v28 }
  0xfb   :  { %219 = vst [vmem:[#allocation2] sm:$0x3] %v218_v33 }
 0x102   :  { %v223_v35 = vld [vmem:[#allocation2] sm:$0x3] }
 0x103   :  { %v231_v37 = vmul.f32 %v265_v34, %v223_v35 }
 0x105   :  { %v239_v38 = vadd.f32 %v266_v36, %v231_v37 }
 0x107   :  { %vm240_vm0 = vcmp.gt.f32.partialorder %v239_v38, 0.0  ;;  %v241_v39 = vmul.f32 0.2, %v239_v38 }
 0x109   :  { %v242_v40 = vsel %vm240_vm0, %v239_v38, %v241_v39 }
 0x10a   :  { %243 = vst [vmem:[%s398_s4] sm:$0x3] %v242_v40 }

// kernel: encoder_forward.10
= control target key start
LH: loop header
LB: loop body
LE: loop exit
PB: predicated region body
PF: predicated region fallthrough
CT: control target
= control target key end

     0   :  { %s2495_s15 = smov 0   ;;  %s2497_s16 = smov 0   ;;  %s3008_s0 = inlined_call_operand.vmem [shape: bf16[2,1024], index: 0, kind: input, shape index: {}]   ;;  %s3009_s1 = inlined_call_operand.vmem [shape: bf16[1024,512], index: 1, kind: input, shape index: {}]   ;;  %s3010_s2 = inlined_call_operand.vmem [shape: f32[1,512], index: 2, kind: input, shape index: {}]   ;;  %s3011_s3 = inlined_call_operand.vmem [shape: f32[1,512], index: 3, kind: input, shape index: {}]   ;;  %s3012_s4 = inlined_call_operand.vmem [shape: f32[2,512], index: 4, kind: output, shape index: {}]  }
   0x1   :  { %s2499_s17 = smov 0   ;;  %s2501_s18 = smov 0  }
   0x2   :  { %s2503_s19 = smov 0  }
   0x3 LB: > { %s29_s20 = sadd.s32 1, %s2461_s18  ;;  %p77_p1 = scmp.ne.s32.totalorder %s2453_s16, %s2449_s15  ;;  %s2465_s19 = sphi %s2503_s19, %s14_s19   ;;  %s2461_s18 = sphi %s2501_s18, %s3016_s18   ;;  %s2457_s17 = sphi %s2499_s17, %s3015_s17   ;;  %s2453_s16 = sphi %s2497_s16, %s3014_s16   ;;  %s2449_s15 = sphi %s2495_s15, %s3013_s15  }
   0x4   : > { %p31_p0 = scmp.ge.s32.totalorder %s29_s20, 2  ;;  %p78_p2 = scmp.eq.s32.totalorder %s2465_s19, 0 }
   0x5   : > { %s70_s22 = sadd.s32 1, %s2453_s16  ;;  %p2040_p5 = scmp.ge.s32.totalorder %s2465_s19, 2 }
   0x6   : > { %s3018_s20 = smov (%p31_p0, %s29_s20), 0  ;;  %p79_p3 = por %p78_p2, %p77_p1 }
   0x7   : > { %s66_s21 = ssub.s32 %s2461_s18, %s3018_s20  ;;  %195 = sbr.rel (%p2040_p5) target bundleno = 82 (0x52), region = 20 }
   0x8   : > { %p68_p4 = scmp.eq.s32.totalorder %s66_s21, 0 }
   0xa   : > { %s2530_s23 = scalar_select %p68_p4, %s2453_s16, %s70_s22  }
   0xe   : > { %198 = sbr.rel (!%p79_p3) target bundleno = 82 (0x52), region = 24  ;;  %s200_s24 = sand.u32 (%p79_p3), 1, %s2453_s16  }
   0xf   : > { %s2180_s25 = sshll.u32 (%p79_p3), %s2461_s18, 3  ;;  %s2041_s26 = sshll.u32 (%p79_p3), %s200_s24, 10 }
  0x10   : > { %s2538_s29 = scalar_lea.vmem (%p79_p3), %s3009_s1, %s2180_s25  ;;  %s2543_s30 = scalar_lea.vmem (%p79_p3), [#allocation3], %s2041_s26 }
  0x11   : > { %v490_v0 = vld [vmem:[%s2538_s29] sm:$0xff] (%p79_p3)  ;;  %v492_v1 = vld [vmem:[%s2538_s29 + $0x10] sm:$0xff] (%p79_p3) }
  0x12   : > { %v494_v2 = vld [vmem:[%s2538_s29 + $0x20] sm:$0xff] (%p79_p3)  ;;  %491 = vst [vmem:[%s2543_s30] sm:$0xff] (%p79_p3), %v490_v0  ;;  %493 = vst [vmem:[%s2543_s30 + $0x8] sm:$0xff] (%p79_p3), %v492_v1  ;;  %v496_v3 = vld [vmem:[%s2538_s29 + $0x30] sm:$0xff] (%p79_p3) }
  0x13   : > { %495 = vst [vmem:[%s2543_s30 + $0x10] sm:$0xff] (%p79_p3), %v494_v2  ;;  %v498_v4 = vld [vmem:[%s2538_s29 + $0x40] sm:$0xff] (%p79_p3)  ;;  %v500_v5 = vld [vmem:[%s2538_s29 + $0x50] sm:$0xff] (%p79_p3)  ;;  %497 = vst [vmem:[%s2543_s30 + $0x18] sm:$0xff] (%p79_p3), %v496_v3 }
  0x14   : > { %499 = vst [vmem:[%s2543_s30 + $0x20] sm:$0xff] (%p79_p3), %v498_v4  ;;  %501 = vst [vmem:[%s2543_s30 + $0x28] sm:$0xff] (%p79_p3), %v500_v5  ;;  %v502_v6 = vld [vmem:[%s2538_s29 + $0x60] sm:$0xff] (%p79_p3)  ;;  %v504_v7 = vld [vmem:[%s2538_s29 + $0x70] sm:$0xff] (%p79_p3) }
  0x15   : > { %v506_v8 = vld [vmem:[%s2538_s29 + $0x80] sm:$0xff]  ;;  %503 = vst [vmem:[%s2543_s30 + $0x30] sm:$0xff] %v502_v6  ;;  %505 = vst [vmem:[%s2543_s30 + $0x38] sm:$0xff] %v504_v7  ;;  %v508_v9 = vld [vmem:[%s2538_s29 + $0x90] sm:$0xff] }
  0x16   : > { %507 = vst [vmem:[%s2543_s30 + $0x40] sm:$0xff] %v506_v8  ;;  %v510_v10 = vld [vmem:[%s2538_s29 + $0xa0] sm:$0xff]  ;;  %v512_v11 = vld [vmem:[%s2538_s29 + $0xb0] sm:$0xff]  ;;  %509 = vst [vmem:[%s2543_s30 + $0x48] sm:$0xff] %v508_v9 }
  0x17   : > { %511 = vst [vmem:[%s2543_s30 + $0x50] sm:$0xff] %v510_v10  ;;  %513 = vst [vmem:[%s2543_s30 + $0x58] sm:$0xff] %v512_v11  ;;  %v514_v12 = vld [vmem:[%s2538_s29 + $0xc0] sm:$0xff]  ;;  %v516_v13 = vld [vmem:[%s2538_s29 + $0xd0] sm:$0xff] }
  0x18   : > { %v518_v14 = vld [vmem:[%s2538_s29 + $0xe0] sm:$0xff]  ;;  %515 = vst [vmem:[%s2543_s30 + $0x60] sm:$0xff] %v514_v12  ;;  %517 = vst [vmem:[%s2543_s30 + $0x68] sm:$0xff] %v516_v13  ;;  %v520_v15 = vld [vmem:[%s2538_s29 + $0xf0] sm:$0xff] }
  0x19   : > { %519 = vst [vmem:[%s2543_s30 + $0x70] sm:$0xff] %v518_v14  ;;  %v522_v16 = vld [vmem:[%s2538_s29 + $0x100] sm:$0xff]  ;;  %v524_v17 = vld [vmem:[%s2538_s29 + $0x110] sm:$0xff]  ;;  %521 = vst [vmem:[%s2543_s30 + $0x78] sm:$0xff] %v520_v15 }
  0x1a   : > { %523 = vst [vmem:[%s2543_s30 + $0x80] sm:$0xff] %v522_v16  ;;  %525 = vst [vmem:[%s2543_s30 + $0x88] sm:$0xff] %v524_v17  ;;  %v526_v18 = vld [vmem:[%s2538_s29 + $0x120] sm:$0xff]  ;;  %v528_v19 = vld [vmem:[%s2538_s29 + $0x130] sm:$0xff] }
  0x1b   : > { %v530_v20 = vld [vmem:[%s2538_s29 + $0x140] sm:$0xff]  ;;  %527 = vst [vmem:[%s2543_s30 + $0x90] sm:$0xff] %v526_v18  ;;  %529 = vst [vmem:[%s2543_s30 + $0x98] sm:$0xff] %v528_v19  ;;  %v532_v21 = vld [vmem:[%s2538_s29 + $0x150] sm:$0xff] }
  0x1c   : > { %531 = vst [vmem:[%s2543_s30 + $0xa0] sm:$0xff] %v530_v20  ;;  %v534_v22 = vld [vmem:[%s2538_s29 + $0x160] sm:$0xff]  ;;  %v536_v23 = vld [vmem:[%s2538_s29 + $0x170] sm:$0xff]  ;;  %533 = vst [vmem:[%s2543_s30 + $0xa8] sm:$0xff] %v532_v21 }
  0x1d   : > { %535 = vst [vmem:[%s2543_s30 + $0xb0] sm:$0xff] %v534_v22  ;;  %537 = vst [vmem:[%s2543_s30 + $0xb8] sm:$0xff] %v536_v23  ;;  %v538_v24 = vld [vmem:[%s2538_s29 + $0x180] sm:$0xff]  ;;  %v540_v25 = vld [vmem:[%s2538_s29 + $0x190] sm:$0xff] }
  0x1e   : > { %v542_v26 = vld [vmem:[%s2538_s29 + $0x1a0] sm:$0xff]  ;;  %539 = vst [vmem:[%s2543_s30 + $0xc0] sm:$0xff] %v538_v24  ;;  %541 = vst [vmem:[%s2543_s30 + $0xc8] sm:$0xff] %v540_v25  ;;  %v544_v27 = vld [vmem:[%s2538_s29 + $0x1b0] sm:$0xff] }
  0x1f   : > { %543 = vst [vmem:[%s2543_s30 + $0xd0] sm:$0xff] %v542_v26  ;;  %v546_v28 = vld [vmem:[%s2538_s29 + $0x1c0] sm:$0xff]  ;;  %v548_v29 = vld [vmem:[%s2538_s29 + $0x1d0] sm:$0xff]  ;;  %545 = vst [vmem:[%s2543_s30 + $0xd8] sm:$0xff] %v544_v27 }
  0x20   : > { %547 = vst [vmem:[%s2543_s30 + $0xe0] sm:$0xff] %v546_v28  ;;  %549 = vst [vmem:[%s2543_s30 + $0xe8] sm:$0xff] %v548_v29  ;;  %v550_v30 = vld [vmem:[%s2538_s29 + $0x1e0] sm:$0xff]  ;;  %v552_v31 = vld [vmem:[%s2538_s29 + $0x1f0] sm:$0xff] }
  0x21   : > { %v554_v32 = vld [vmem:[%s2538_s29 + $0x200] sm:$0xff]  ;;  %551 = vst [vmem:[%s2543_s30 + $0xf0] sm:$0xff] %v550_v30  ;;  %553 = vst [vmem:[%s2543_s30 + $0xf8] sm:$0xff] %v552_v31  ;;  %v556_v33 = vld [vmem:[%s2538_s29 + $0x210] sm:$0xff] }
  0x22   : > { %555 = vst [vmem:[%s2543_s30 + $0x100] sm:$0xff] %v554_v32  ;;  %v558_v34 = vld [vmem:[%s2538_s29 + $0x220] sm:$0xff]  ;;  %v560_v35 = vld [vmem:[%s2538_s29 + $0x230] sm:$0xff]  ;;  %557 = vst [vmem:[%s2543_s30 + $0x108] sm:$0xff] %v556_v33 }
  0x23   : > { %559 = vst [vmem:[%s2543_s30 + $0x110] sm:$0xff] %v558_v34  ;;  %561 = vst [vmem:[%s2543_s30 + $0x118] sm:$0xff] %v560_v35  ;;  %v562_v36 = vld [vmem:[%s2538_s29 + $0x240] sm:$0xff]  ;;  %v564_v37 = vld [vmem:[%s2538_s29 + $0x250] sm:$0xff] }
  0x24   : > { %v566_v38 = vld [vmem:[%s2538_s29 + $0x260] sm:$0xff]  ;;  %563 = vst [vmem:[%s2543_s30 + $0x120] sm:$0xff] %v562_v36  ;;  %565 = vst [vmem:[%s2543_s30 + $0x128] sm:$0xff] %v564_v37  ;;  %v568_v39 = vld [vmem:[%s2538_s29 + $0x270] sm:$0xff] }
  0x25   : > { %567 = vst [vmem:[%s2543_s30 + $0x130] sm:$0xff] %v566_v38  ;;  %v570_v40 = vld [vmem:[%s2538_s29 + $0x280] sm:$0xff]  ;;  %v572_v41 = vld [vmem:[%s2538_s29 + $0x290] sm:$0xff]  ;;  %569 = vst [vmem:[%s2543_s30 + $0x138] sm:$0xff] %v568_v39 }
  0x26   : > { %571 = vst [vmem:[%s2543_s30 + $0x140] sm:$0xff] %v570_v40  ;;  %573 = vst [vmem:[%s2543_s30 + $0x148] sm:$0xff] %v572_v41  ;;  %v574_v42 = vld [vmem:[%s2538_s29 + $0x2a0] sm:$0xff]  ;;  %v576_v43 = vld [vmem:[%s2538_s29 + $0x2b0] sm:$0xff] }
  0x27   : > { %v578_v44 = vld [vmem:[%s2538_s29 + $0x2c0] sm:$0xff]  ;;  %575 = vst [vmem:[%s2543_s30 + $0x150] sm:$0xff] %v574_v42  ;;  %577 = vst [vmem:[%s2543_s30 + $0x158] sm:$0xff] %v576_v43  ;;  %v580_v45 = vld [vmem:[%s2538_s29 + $0x2d0] sm:$0xff] }
  0x28   : > { %579 = vst [vmem:[%s2543_s30 + $0x160] sm:$0xff] %v578_v44  ;;  %v582_v46 = vld [vmem:[%s2538_s29 + $0x2e0] sm:$0xff]  ;;  %v584_v47 = vld [vmem:[%s2538_s29 + $0x2f0] sm:$0xff]  ;;  %581 = vst [vmem:[%s2543_s30 + $0x168] sm:$0xff] %v580_v45 }
  0x29   : > { %583 = vst [vmem:[%s2543_s30 + $0x170] sm:$0xff] %v582_v46  ;;  %585 = vst [vmem:[%s2543_s30 + $0x178] sm:$0xff] %v584_v47  ;;  %v586_v48 = vld [vmem:[%s2538_s29 + $0x300] sm:$0xff]  ;;  %v588_v49 = vld [vmem:[%s2538_s29 + $0x310] sm:$0xff] }
  0x2a   : > { %v590_v50 = vld [vmem:[%s2538_s29 + $0x320] sm:$0xff]  ;;  %587 = vst [vmem:[%s2543_s30 + $0x180] sm:$0xff] %v586_v48  ;;  %589 = vst [vmem:[%s2543_s30 + $0x188] sm:$0xff] %v588_v49  ;;  %v592_v51 = vld [vmem:[%s2538_s29 + $0x330] sm:$0xff] }
  0x2b   : > { %591 = vst [vmem:[%s2543_s30 + $0x190] sm:$0xff] %v590_v50  ;;  %v594_v52 = vld [vmem:[%s2538_s29 + $0x340] sm:$0xff]  ;;  %v596_v53 = vld [vmem:[%s2538_s29 + $0x350] sm:$0xff]  ;;  %593 = vst [vmem:[%s2543_s30 + $0x198] sm:$0xff] %v592_v51 }
  0x2c   : > { %595 = vst [vmem:[%s2543_s30 + $0x1a0] sm:$0xff] %v594_v52  ;;  %597 = vst [vmem:[%s2543_s30 + $0x1a8] sm:$0xff] %v596_v53  ;;  %v598_v54 = vld [vmem:[%s2538_s29 + $0x360] sm:$0xff]  ;;  %v600_v55 = vld [vmem:[%s2538_s29 + $0x370] sm:$0xff] }
  0x2d   : > { %v602_v56 = vld [vmem:[%s2538_s29 + $0x380] sm:$0xff]  ;;  %599 = vst [vmem:[%s2543_s30 + $0x1b0] sm:$0xff] %v598_v54  ;;  %601 = vst [vmem:[%s2543_s30 + $0x1b8] sm:$0xff] %v600_v55  ;;  %v604_v57 = vld [vmem:[%s2538_s29 + $0x390] sm:$0xff] }
  0x2e   : > { %603 = vst [vmem:[%s2543_s30 + $0x1c0] sm:$0xff] %v602_v56  ;;  %v606_v58 = vld [vmem:[%s2538_s29 + $0x3a0] sm:$0xff]  ;;  %v608_v59 = vld [vmem:[%s2538_s29 + $0x3b0] sm:$0xff]  ;;  %605 = vst [vmem:[%s2543_s30 + $0x1c8] sm:$0xff] %v604_v57 }
  0x2f   : > { %607 = vst [vmem:[%s2543_s30 + $0x1d0] sm:$0xff] %v606_v58  ;;  %609 = vst [vmem:[%s2543_s30 + $0x1d8] sm:$0xff] %v608_v59  ;;  %v610_v60 = vld [vmem:[%s2538_s29 + $0x3c0] sm:$0xff]  ;;  %v612_v61 = vld [vmem:[%s2538_s29 + $0x3d0] sm:$0xff] }
  0x30   : > { %v614_v62 = vld [vmem:[%s2538_s29 + $0x3e0] sm:$0xff]  ;;  %611 = vst [vmem:[%s2543_s30 + $0x1e0] sm:$0xff] %v610_v60  ;;  %613 = vst [vmem:[%s2543_s30 + $0x1e8] sm:$0xff] %v612_v61  ;;  %v616_v63 = vld [vmem:[%s2538_s29 + $0x3f0] sm:$0xff] }
  0x31   : > { %615 = vst [vmem:[%s2543_s30 + $0x1f0] sm:$0xff] %v614_v62  ;;  %v618_v0 = vld [vmem:[%s2538_s29 + $0x400] sm:$0xff]  ;;  %v620_v1 = vld [vmem:[%s2538_s29 + $0x410] sm:$0xff]  ;;  %617 = vst [vmem:[%s2543_s30 + $0x1f8] sm:$0xff] %v616_v63 }
  0x32   : > { %619 = vst [vmem:[%s2543_s30 + $0x200] sm:$0xff] %v618_v0  ;;  %621 = vst [vmem:[%s2543_s30 + $0x208] sm:$0xff] %v620_v1  ;;  %v622_v2 = vld [vmem:[%s2538_s29 + $0x420] sm:$0xff]  ;;  %v624_v3 = vld [vmem:[%s2538_s29 + $0x430] sm:$0xff] }
  0x33   : > { %v626_v4 = vld [vmem:[%s2538_s29 + $0x440] sm:$0xff]  ;;  %623 = vst [vmem:[%s2543_s30 + $0x210] sm:$0xff] %v622_v2  ;;  %625 = vst [vmem:[%s2543_s30 + $0x218] sm:$0xff] %v624_v3  ;;  %v628_v5 = vld [vmem:[%s2538_s29 + $0x450] sm:$0xff] }
  0x34   : > { %627 = vst [vmem:[%s2543_s30 + $0x220] sm:$0xff] %v626_v4  ;;  %v630_v6 = vld [vmem:[%s2538_s29 + $0x460] sm:$0xff]  ;;  %v632_v7 = vld [vmem:[%s2538_s29 + $0x470] sm:$0xff]  ;;  %629 = vst [vmem:[%s2543_s30 + $0x228] sm:$0xff] %v628_v5 }
  0x35   : > { %631 = vst [vmem:[%s2543_s30 + $0x230] sm:$0xff] %v630_v6  ;;  %633 = vst [vmem:[%s2543_s30 + $0x238] sm:$0xff] %v632_v7  ;;  %v634_v8 = vld [vmem:[%s2538_s29 + $0x480] sm:$0xff]  ;;  %v636_v9 = vld [vmem:[%s2538_s29 + $0x490] sm:$0xff] }
  0x36   : > { %v638_v10 = vld [vmem:[%s2538_s29 + $0x4a0] sm:$0xff]  ;;  %635 = vst [vmem:[%s2543_s30 + $0x240] sm:$0xff] %v634_v8  ;;  %637 = vst [vmem:[%s2543_s30 + $0x248] sm:$0xff] %v636_v9  ;;  %v640_v11 = vld [vmem:[%s2538_s29 + $0x4b0] sm:$0xff] }
  0x37   : > { %639 = vst [vmem:[%s2543_s30 + $0x250] sm:$0xff] %v638_v10  ;;  %v642_v12 = vld [vmem:[%s2538_s29 + $0x4c0] sm:$0xff]  ;;  %v644_v13 = vld [vmem:[%s2538_s29 + $0x4d0] sm:$0xff]  ;;  %641 = vst [vmem:[%s2543_s30 + $0x258] sm:$0xff] %v640_v11 }
  0x38   : > { %643 = vst [vmem:[%s2543_s30 + $0x260] sm:$0xff] %v642_v12  ;;  %645 = vst [vmem:[%s2543_s30 + $0x268] sm:$0xff] %v644_v13  ;;  %v646_v14 = vld [vmem:[%s2538_s29 + $0x4e0] sm:$0xff]  ;;  %v648_v15 = vld [vmem:[%s2538_s29 + $0x4f0] sm:$0xff] }
  0x39   : > { %v650_v16 = vld [vmem:[%s2538_s29 + $0x500] sm:$0xff]  ;;  %647 = vst [vmem:[%s2543_s30 + $0x270] sm:$0xff] %v646_v14  ;;  %649 = vst [vmem:[%s2543_s30 + $0x278] sm:$0xff] %v648_v15  ;;  %v652_v17 = vld [vmem:[%s2538_s29 + $0x510] sm:$0xff] }
  0x3a   : > { %651 = vst [vmem:[%s2543_s30 + $0x280] sm:$0xff] %v650_v16  ;;  %v654_v18 = vld [vmem:[%s2538_s29 + $0x520] sm:$0xff]  ;;  %v656_v19 = vld [vmem:[%s2538_s29 + $0x530] sm:$0xff]  ;;  %653 = vst [vmem:[%s2543_s30 + $0x288] sm:$0xff] %v652_v17 }
  0x3b   : > { %655 = vst [vmem:[%s2543_s30 + $0x290] sm:$0xff] %v654_v18  ;;  %657 = vst [vmem:[%s2543_s30 + $0x298] sm:$0xff] %v656_v19  ;;  %v658_v20 = vld [vmem:[%s2538_s29 + $0x540] sm:$0xff]  ;;  %v660_v21 = vld [vmem:[%s2538_s29 + $0x550] sm:$0xff] }
  0x3c   : > { %v662_v22 = vld [vmem:[%s2538_s29 + $0x560] sm:$0xff]  ;;  %659 = vst [vmem:[%s2543_s30 + $0x2a0] sm:$0xff] %v658_v20  ;;  %661 = vst [vmem:[%s2543_s30 + $0x2a8] sm:$0xff] %v660_v21  ;;  %v664_v23 = vld [vmem:[%s2538_s29 + $0x570] sm:$0xff] }
  0x3d   : > { %663 = vst [vmem:[%s2543_s30 + $0x2b0] sm:$0xff] %v662_v22  ;;  %v666_v24 = vld [vmem:[%s2538_s29 + $0x580] sm:$0xff]  ;;  %v668_v25 = vld [vmem:[%s2538_s29 + $0x590] sm:$0xff]  ;;  %665 = vst [vmem:[%s2543_s30 + $0x2b8] sm:$0xff] %v664_v23 }
  0x3e   : > { %667 = vst [vmem:[%s2543_s30 + $0x2c0] sm:$0xff] %v666_v24  ;;  %669 = vst [vmem:[%s2543_s30 + $0x2c8] sm:$0xff] %v668_v25  ;;  %v670_v26 = vld [vmem:[%s2538_s29 + $0x5a0] sm:$0xff]  ;;  %v672_v27 = vld [vmem:[%s2538_s29 + $0x5b0] sm:$0xff] }
  0x3f   : > { %v674_v28 = vld [vmem:[%s2538_s29 + $0x5c0] sm:$0xff]  ;;  %671 = vst [vmem:[%s2543_s30 + $0x2d0] sm:$0xff] %v670_v26  ;;  %673 = vst [vmem:[%s2543_s30 + $0x2d8] sm:$0xff] %v672_v27  ;;  %v676_v29 = vld [vmem:[%s2538_s29 + $0x5d0] sm:$0xff] }
  0x40   : > { %675 = vst [vmem:[%s2543_s30 + $0x2e0] sm:$0xff] %v674_v28  ;;  %v678_v30 = vld [vmem:[%s2538_s29 + $0x5e0] sm:$0xff]  ;;  %v680_v31 = vld [vmem:[%s2538_s29 + $0x5f0] sm:$0xff]  ;;  %677 = vst [vmem:[%s2543_s30 + $0x2e8] sm:$0xff] %v676_v29 }
  0x41   : > { %679 = vst [vmem:[%s2543_s30 + $0x2f0] sm:$0xff] %v678_v30  ;;  %681 = vst [vmem:[%s2543_s30 + $0x2f8] sm:$0xff] %v680_v31  ;;  %v682_v32 = vld [vmem:[%s2538_s29 + $0x600] sm:$0xff]  ;;  %v684_v33 = vld [vmem:[%s2538_s29 + $0x610] sm:$0xff] }
  0x42   : > { %v686_v34 = vld [vmem:[%s2538_s29 + $0x620] sm:$0xff]  ;;  %683 = vst [vmem:[%s2543_s30 + $0x300] sm:$0xff] %v682_v32  ;;  %685 = vst [vmem:[%s2543_s30 + $0x308] sm:$0xff] %v684_v33  ;;  %v688_v35 = vld [vmem:[%s2538_s29 + $0x630] sm:$0xff] }
  0x43   : > { %687 = vst [vmem:[%s2543_s30 + $0x310] sm:$0xff] %v686_v34  ;;  %v690_v36 = vld [vmem:[%s2538_s29 + $0x640] sm:$0xff]  ;;  %v692_v37 = vld [vmem:[%s2538_s29 + $0x650] sm:$0xff]  ;;  %689 = vst [vmem:[%s2543_s30 + $0x318] sm:$0xff] %v688_v35 }
  0x44   : > { %691 = vst [vmem:[%s2543_s30 + $0x320] sm:$0xff] %v690_v36  ;;  %693 = vst [vmem:[%s2543_s30 + $0x328] sm:$0xff] %v692_v37  ;;  %v694_v38 = vld [vmem:[%s2538_s29 + $0x660] sm:$0xff]  ;;  %v696_v39 = vld [vmem:[%s2538_s29 + $0x670] sm:$0xff] }
  0x45   : > { %v698_v40 = vld [vmem:[%s2538_s29 + $0x680] sm:$0xff]  ;;  %695 = vst [vmem:[%s2543_s30 + $0x330] sm:$0xff] %v694_v38  ;;  %697 = vst [vmem:[%s2543_s30 + $0x338] sm:$0xff] %v696_v39  ;;  %v700_v41 = vld [vmem:[%s2538_s29 + $0x690] sm:$0xff] }
  0x46   : > { %699 = vst [vmem:[%s2543_s30 + $0x340] sm:$0xff] %v698_v40  ;;  %v702_v42 = vld [vmem:[%s2538_s29 + $0x6a0] sm:$0xff]  ;;  %v704_v43 = vld [vmem:[%s2538_s29 + $0x6b0] sm:$0xff]  ;;  %701 = vst [vmem:[%s2543_s30 + $0x348] sm:$0xff] %v700_v41 }
  0x47   : > { %703 = vst [vmem:[%s2543_s30 + $0x350] sm:$0xff] %v702_v42  ;;  %705 = vst [vmem:[%s2543_s30 + $0x358] sm:$0xff] %v704_v43  ;;  %v706_v44 = vld [vmem:[%s2538_s29 + $0x6c0] sm:$0xff]  ;;  %v708_v45 = vld [vmem:[%s2538_s29 + $0x6d0] sm:$0xff] }
  0x48   : > { %v710_v46 = vld [vmem:[%s2538_s29 + $0x6e0] sm:$0xff]  ;;  %707 = vst [vmem:[%s2543_s30 + $0x360] sm:$0xff] %v706_v44  ;;  %709 = vst [vmem:[%s2543_s30 + $0x368] sm:$0xff] %v708_v45  ;;  %v712_v47 = vld [vmem:[%s2538_s29 + $0x6f0] sm:$0xff] }
  0x49   : > { %711 = vst [vmem:[%s2543_s30 + $0x370] sm:$0xff] %v710_v46  ;;  %v714_v48 = vld [vmem:[%s2538_s29 + $0x700] sm:$0xff]  ;;  %v716_v49 = vld [vmem:[%s2538_s29 + $0x710] sm:$0xff]  ;;  %713 = vst [vmem:[%s2543_s30 + $0x378] sm:$0xff] %v712_v47 }
  0x4a   : > { %715 = vst [vmem:[%s2543_s30 + $0x380] sm:$0xff] %v714_v48  ;;  %717 = vst [vmem:[%s2543_s30 + $0x388] sm:$0xff] %v716_v49  ;;  %v718_v50 = vld [vmem:[%s2538_s29 + $0x720] sm:$0xff]  ;;  %v720_v51 = vld [vmem:[%s2538_s29 + $0x730] sm:$0xff] }
  0x4b   : > { %v722_v52 = vld [vmem:[%s2538_s29 + $0x740] sm:$0xff]  ;;  %719 = vst [vmem:[%s2543_s30 + $0x390] sm:$0xff] %v718_v50  ;;  %721 = vst [vmem:[%s2543_s30 + $0x398] sm:$0xff] %v720_v51  ;;  %v724_v53 = vld [vmem:[%s2538_s29 + $0x750] sm:$0xff] }
  0x4c   : > { %723 = vst [vmem:[%s2543_s30 + $0x3a0] sm:$0xff] %v722_v52  ;;  %v726_v54 = vld [vmem:[%s2538_s29 + $0x760] sm:$0xff]  ;;  %v728_v55 = vld [vmem:[%s2538_s29 + $0x770] sm:$0xff]  ;;  %725 = vst [vmem:[%s2543_s30 + $0x3a8] sm:$0xff] %v724_v53 }
  0x4d   : > { %727 = vst [vmem:[%s2543_s30 + $0x3b0] sm:$0xff] %v726_v54  ;;  %729 = vst [vmem:[%s2543_s30 + $0x3b8] sm:$0xff] %v728_v55  ;;  %v730_v56 = vld [vmem:[%s2538_s29 + $0x780] sm:$0xff]  ;;  %v732_v57 = vld [vmem:[%s2538_s29 + $0x790] sm:$0xff] }
  0x4e   : > { %v734_v58 = vld [vmem:[%s2538_s29 + $0x7a0] sm:$0xff]  ;;  %731 = vst [vmem:[%s2543_s30 + $0x3c0] sm:$0xff] %v730_v56  ;;  %733 = vst [vmem:[%s2543_s30 + $0x3c8] sm:$0xff] %v732_v57  ;;  %v736_v59 = vld [vmem:[%s2538_s29 + $0x7b0] sm:$0xff] }
  0x4f   : > { %735 = vst [vmem:[%s2543_s30 + $0x3d0] sm:$0xff] %v734_v58  ;;  %v738_v60 = vld [vmem:[%s2538_s29 + $0x7c0] sm:$0xff]  ;;  %v740_v61 = vld [vmem:[%s2538_s29 + $0x7d0] sm:$0xff]  ;;  %737 = vst [vmem:[%s2543_s30 + $0x3d8] sm:$0xff] %v736_v59 }
  0x50   : > { %739 = vst [vmem:[%s2543_s30 + $0x3e0] sm:$0xff] %v738_v60  ;;  %741 = vst [vmem:[%s2543_s30 + $0x3e8] sm:$0xff] %v740_v61  ;;  %v742_v62 = vld [vmem:[%s2538_s29 + $0x7e0] sm:$0xff]  ;;  %v744_v63 = vld [vmem:[%s2538_s29 + $0x7f0] sm:$0xff] }
  0x51   : > { %743 = vst [vmem:[%s2543_s30 + $0x3f0] sm:$0xff] %v742_v62  ;;  %745 = vst [vmem:[%s2543_s30 + $0x3f8] sm:$0xff] %v744_v63 }
  0x52 PF: > { %p2044_p6 = scmp.ge.s32.totalorder %s2465_s19, 1  ;;  %p766_p7 = scmp.lt.s32.totalorder %s2465_s19, 3 }
  0x54   : > { %p767_p8 = pnand %p2044_p6, %p766_p7 }
  0x55   : > { %s773_s5 = sand.u32 (!%p767_p8), 1, %s2449_s15   ;;  %v855_v0 = vld [vmem:[%s3008_s0] sm:$0xff] (!%p767_p8)  ;;  %v989_v1 = vlaneseq (!%p767_p8)  ;;  %v2467_v2 = vmov (!%p767_p8), 1966171168   ;;  %s2046_s10 = sshll.u32 (!%p767_p8), %s2457_s17, 1 }
  0x56   : > { %770 = sbr.rel (%p767_p8) target bundleno = 455 (0x1c7), region = 70  ;;  %s2045_s8 = sshll.u32 (!%p767_p8), %s773_s5, 10  ;;  %v987_v3 = vunpack.c.l.s4 (!%p767_p8), %v2467_v2  ;;  %v985_v7 = vcombine.high (!%p767_p8), %v855_v0, %v855_v0 }
  0x57   : > { %v2804_v4 = vshrl.u32 (!%p767_p8), %v989_v1, 7  ;;  %s2806_s9 = scalar_lea.vmem (!%p767_p8), [#allocation3], %s2045_s8  ;;  %p830_p9 = scmp.lt.s32.totalorder (!%p767_p8), %s2046_s10, 3 }
  0x58   : > { %v2234_v5 = vld [vmem:[%s2806_s9 + $0x4] ss:$8 sps:$4 sm:$0xff] (!%p767_p8)   ;;  %v988_v6 = vunpack.c.0.s8 (!%p767_p8), %v987_v3  ;;  %v2238_v9 = vld [vmem:[%s2806_s9] ss:$8 sps:$4 sm:$0xff] (!%p767_p8)   ;;  %v2240_v12 = vld [vmem:[%s2806_s9 + $0x14] ss:$8 sps:$4 sm:$0xff] (!%p767_p8)  }
  0x59   : > { %v2236_v8 = vld [vmem:[%s2806_s9 + $0x204] ss:$8 sps:$4 sm:$0xff] (!%p767_p8)   ;;  %1682 = vmatprep.subr.bf16.mxu1 (!%p767_p8), %v2234_v5  ;;  %v2239_v10 = vld [vmem:[%s2806_s9 + $0x200] ss:$8 sps:$4 sm:$0xff] (!%p767_p8)   ;;  %v2242_v13 = vld [vmem:[%s2806_s9 + $0x214] ss:$8 sps:$4 sm:$0xff] (!%p767_p8)  }
  0x5a   : > { %v2813_v11 = vsub.s32 (!%p767_p8), %v988_v6, %v2804_v4  ;;  %1764 = vmatprep.subr.bf16.mxu0 (!%p767_p8), %v2236_v8  ;;  %1683 = vmatpush1.bf16.msra.mxu1 (!%p767_p8), %v2238_v9  ;;  %v2244_v14 = vld [vmem:[%s2806_s9 + $0x10] ss:$8 sps:$4 sm:$0xff] (!%p767_p8)   ;;  %v2246_v18 = vld [vmem:[%s2806_s9 + $0x24] ss:$8 sps:$4 sm:$0xff] (!%p767_p8)   ;;  %v2250_v22 = vld [vmem:[%s2806_s9 + $0x20] ss:$8 sps:$4 sm:$0xff] (!%p767_p8)  }
  0x5b   : > { %1765 = vmatpush1.bf16.msra.mxu0 (!%p767_p8), %v2239_v10  ;;  %1684 = vmatprep.subr.bf16.mxu1 (!%p767_p8), %v2240_v12  ;;  %v2245_v17 = vld [vmem:[%s2806_s9 + $0x210] ss:$8 sps:$4 sm:$0xff] (!%p767_p8)   ;;  %v2248_v21 = vld [vmem:[%s2806_s9 + $0x224] ss:$8 sps:$4 sm:$0xff] (!%p767_p8)   ;;  %v2251_v23 = vld [vmem:[%s2806_s9 + $0x220] ss:$8 sps:$4 sm:$0xff] (!%p767_p8)  }
  0x5c   : > { %v2819_v15 = vrot.slane (!%p767_p8), %v855_v0, %v2813_v11  ;;  %v2822_v16 = vrot.slane (!%p767_p8), %v985_v7, %v2813_v11  ;;  %1766 = vmatprep.subr.bf16.mxu0 (!%p767_p8), %v2242_v13  ;;  %v2252_v24 = vld [vmem:[%s2806_s9 + $0x34] ss:$8 sps:$4 sm:$0xff] (!%p767_p8)   ;;  %v2256_v28 = vld [vmem:[%s2806_s9 + $0x30] ss:$8 sps:$4 sm:$0xff] (!%p767_p8)   ;;  %v2258_v30 = vld [vmem:[%s2806_s9 + $0x44] ss:$8 sps:$4 sm:$0xff] (!%p767_p8)  }
  0x5d   : > { %v2254_v27 = vld [vmem:[%s2806_s9 + $0x234] ss:$8 sps:$4 sm:$0xff]   ;;  %v2257_v29 = vld [vmem:[%s2806_s9 + $0x230] ss:$8 sps:$4 sm:$0xff]   ;;  %v2260_v31 = vld [vmem:[%s2806_s9 + $0x244] ss:$8 sps:$4 sm:$0xff]  }
  0x5e   : > { %v1000_v19 = vcombine.high %v2819_v15, %v2819_v15  ;;  %v1001_v20 = vcombine.high %v2822_v16, %v2822_v16  ;;  %1685 = vmatpush1.bf16.msra.mxu1 %v2244_v14  ;;  %v2262_v32 = vld [vmem:[%s2806_s9 + $0x40] ss:$8 sps:$4 sm:$0xff]   ;;  %v2264_v34 = vld [vmem:[%s2806_s9 + $0x54] ss:$8 sps:$4 sm:$0xff]   ;;  %v2268_v36 = vld [vmem:[%s2806_s9 + $0x50] ss:$8 sps:$4 sm:$0xff]  }
  0x5f   : > { %1767 = vmatpush1.bf16.msra.mxu0 %v2245_v17  ;;  %1686 = vmatprep.subr.bf16.mxu1 %v2246_v18  ;;  %v2263_v33 = vld [vmem:[%s2806_s9 + $0x240] ss:$8 sps:$4 sm:$0xff]   ;;  %v2266_v35 = vld [vmem:[%s2806_s9 + $0x254] ss:$8 sps:$4 sm:$0xff]   ;;  %v2269_v37 = vld [vmem:[%s2806_s9 + $0x250] ss:$8 sps:$4 sm:$0xff]  }
  0x60   : > { %v2835_v25 = vrot.slane %v1000_v19, %v2813_v11  ;;  %v2838_v26 = vrot.slane %v1001_v20, %v2813_v11  ;;  %1768 = vmatprep.subr.bf16.mxu0 %v2248_v21  ;;  %v2270_v38 = vld [vmem:[%s2806_s9 + $0x64] ss:$8 sps:$4 sm:$0xff]   ;;  %v2274_v40 = vld [vmem:[%s2806_s9 + $0x60] ss:$8 sps:$4 sm:$0xff]   ;;  %v2276_v42 = vld [vmem:[%s2806_s9 + $0x74] ss:$8 sps:$4 sm:$0xff]  }
  0x61   : > { %v2272_v39 = vld [vmem:[%s2806_s9 + $0x264] ss:$8 sps:$4 sm:$0xff]   ;;  %v2275_v41 = vld [vmem:[%s2806_s9 + $0x260] ss:$8 sps:$4 sm:$0xff]   ;;  %v2278_v43 = vld [vmem:[%s2806_s9 + $0x274] ss:$8 sps:$4 sm:$0xff]  }
  0x62   : > { %1714 = vmatprep.mubr.bf16.mxu1 %v2835_v25  ;;  %1796 = vmatprep.mubr.bf16.mxu0 %v2838_v26  ;;  %v2280_v44 = vld [vmem:[%s2806_s9 + $0x70] ss:$8 sps:$4 sm:$0xff]   ;;  %v2282_v46 = vld [vmem:[%s2806_s9 + $0x84] ss:$8 sps:$4 sm:$0xff]   ;;  %v2286_v48 = vld [vmem:[%s2806_s9 + $0x80] ss:$8 sps:$4 sm:$0xff]  }
  0x63   : > { %1687 = vmatpush1.bf16.msra.mxu1 %v2250_v22  ;;  %1769 = vmatpush1.bf16.msra.mxu0 %v2251_v23  ;;  %v2281_v45 = vld [vmem:[%s2806_s9 + $0x270] ss:$8 sps:$4 sm:$0xff]   ;;  %v2284_v47 = vld [vmem:[%s2806_s9 + $0x284] ss:$8 sps:$4 sm:$0xff]   ;;  %v2287_v49 = vld [vmem:[%s2806_s9 + $0x280] ss:$8 sps:$4 sm:$0xff]   ;;  %v2899_v22 = vrot.slane %v2819_v15, %v2813_v11  ;;  %v2903_v23 = vrot.slane %v2822_v16, %v2813_v11  ;;  %v1033_v15 = vcombine.high %v2838_v26, %v2838_v26 }
  0x64   : > { %1688 = vmatprep.subr.bf16.mxu1 %v2252_v24  ;;  %1770 = vmatprep.subr.bf16.mxu0 %v2254_v27  ;;  %v2288_v50 = vld [vmem:[%s2806_s9 + $0x94] ss:$8 sps:$4 sm:$0xff]   ;;  %v2292_v52 = vld [vmem:[%s2806_s9 + $0x90] ss:$8 sps:$4 sm:$0xff]   ;;  %v2294_v54 = vld [vmem:[%s2806_s9 + $0xa4] ss:$8 sps:$4 sm:$0xff]  }
  0x65   : > { %v2290_v51 = vld [vmem:[%s2806_s9 + $0x294] ss:$8 sps:$4 sm:$0xff]   ;;  %v2293_v53 = vld [vmem:[%s2806_s9 + $0x290] ss:$8 sps:$4 sm:$0xff]   ;;  %v2296_v55 = vld [vmem:[%s2806_s9 + $0x2a4] ss:$8 sps:$4 sm:$0xff]  }
  0x66   : > { %v2298_v56 = vld [vmem:[%s2806_s9 + $0xa0] ss:$8 sps:$4 sm:$0xff]   ;;  %v2300_v58 = vld [vmem:[%s2806_s9 + $0xb4] ss:$8 sps:$4 sm:$0xff]   ;;  %v2304_v60 = vld [vmem:[%s2806_s9 + $0xb0] ss:$8 sps:$4 sm:$0xff]  }
  0x67   : > { %1689 = vmatpush1.bf16.msra.mxu1 %v2256_v28  ;;  %1771 = vmatpush1.bf16.msra.mxu0 %v2257_v29  ;;  %v2299_v57 = vld [vmem:[%s2806_s9 + $0x2a0] ss:$8 sps:$4 sm:$0xff]   ;;  %v2302_v59 = vld [vmem:[%s2806_s9 + $0x2b4] ss:$8 sps:$4 sm:$0xff]   ;;  %v2305_v61 = vld [vmem:[%s2806_s9 + $0x2b0] ss:$8 sps:$4 sm:$0xff]   ;;  %v1032_v28 = vcombine.high %v2835_v25, %v2835_v25 }
  0x68   : > { %1690 = vmatprep.subr.bf16.mxu1 %v2258_v30  ;;  %1772 = vmatprep.subr.bf16.mxu0 %v2260_v31  ;;  %v2306_v62 = vld [vmem:[%s2806_s9 + $0xc4] ss:$8 sps:$4 sm:$0xff]   ;;  %v2310_v0 = vld [vmem:[%s2806_s9 + $0xc0] ss:$8 sps:$4 sm:$0xff]   ;;  %v2312_v2 = vld [vmem:[%s2806_s9 + $0xd4] ss:$8 sps:$4 sm:$0xff]  }
  0x69   : > { %v2308_v63 = vld [vmem:[%s2806_s9 + $0x2c4] ss:$8 sps:$4 sm:$0xff]   ;;  %v2311_v1 = vld [vmem:[%s2806_s9 + $0x2c0] ss:$8 sps:$4 sm:$0xff]   ;;  %v2314_v3 = vld [vmem:[%s2806_s9 + $0x2d4] ss:$8 sps:$4 sm:$0xff]  }
  0x6a   : > { %v2316_v5 = vld [vmem:[%s2806_s9 + $0xd0] ss:$8 sps:$4 sm:$0xff]   ;;  %v2318_v7 = vld [vmem:[%s2806_s9 + $0xe4] ss:$8 sps:$4 sm:$0xff]   ;;  %v2322_v9 = vld [vmem:[%s2806_s9 + $0xe0] ss:$8 sps:$4 sm:$0xff]  }
  0x6b   : > { %1691 = vmatpush1.bf16.msra.mxu1 %v2262_v32  ;;  %1773 = vmatpush1.bf16.msra.mxu0 %v2263_v33  ;;  %v2317_v6 = vld [vmem:[%s2806_s9 + $0x2d0] ss:$8 sps:$4 sm:$0xff]   ;;  %v2320_v8 = vld [vmem:[%s2806_s9 + $0x2e4] ss:$8 sps:$4 sm:$0xff]   ;;  %v2323_v10 = vld [vmem:[%s2806_s9 + $0x2e0] ss:$8 sps:$4 sm:$0xff]  }
  0x6c   : > { %1692 = vmatprep.subr.bf16.mxu1 %v2264_v34  ;;  %1774 = vmatprep.subr.bf16.mxu0 %v2266_v35  ;;  %v2324_v12 = vld [vmem:[%s2806_s9 + $0xf4] ss:$8 sps:$4 sm:$0xff]   ;;  %v2328_v14 = vld [vmem:[%s2806_s9 + $0xf0] ss:$8 sps:$4 sm:$0xff]   ;;  %v2332_v18 = vld [vmem:[%s2806_s9 + $0x104] ss:$8 sps:$4 sm:$0xff]  }
  0x6d   : > { %v2326_v13 = vld [vmem:[%s2806_s9 + $0x2f4] ss:$8 sps:$4 sm:$0xff]   ;;  %v2329_v17 = vld [vmem:[%s2806_s9 + $0x2f0] ss:$8 sps:$4 sm:$0xff]   ;;  %v2336_v19 = vld [vmem:[%s2806_s9 + $0x304] ss:$8 sps:$4 sm:$0xff]  }
  0x6e   : > { %v2330_v20 = vld [vmem:[%s2806_s9 + $0x100] ss:$8 sps:$4 sm:$0xff]   ;;  %v2339_v24 = vld [vmem:[%s2806_s9 + $0x114] ss:$8 sps:$4 sm:$0xff]   ;;  %v2337_v11 = vld [vmem:[%s2806_s9 + $0x110] ss:$8 sps:$4 sm:$0xff]  }
  0x6f   : > { %1693 = vmatpush1.bf16.msra.mxu1 %v2268_v36  ;;  %1775 = vmatpush1.bf16.msra.mxu0 %v2269_v37  ;;  %v2334_v21 = vld [vmem:[%s2806_s9 + $0x300] ss:$8 sps:$4 sm:$0xff]   ;;  %v2342_v27 = vld [vmem:[%s2806_s9 + $0x314] ss:$8 sps:$4 sm:$0xff]   ;;  %v2340_v16 = vld [vmem:[%s2806_s9 + $0x310] ss:$8 sps:$4 sm:$0xff]  }
  0x70   : > { %1694 = vmatprep.subr.bf16.mxu1 %v2270_v38  ;;  %1776 = vmatprep.subr.bf16.mxu0 %v2272_v39  ;;  %v2345_v29 = vld [vmem:[%s2806_s9 + $0x124] ss:$8 sps:$4 sm:$0xff]   ;;  %v2343_v26 = vld [vmem:[%s2806_s9 + $0x120] ss:$8 sps:$4 sm:$0xff]   ;;  %v2351_v31 = vld [vmem:[%s2806_s9 + $0x134] ss:$8 sps:$4 sm:$0xff]  }
  0x71   : > { %v2348_v25 = vld [vmem:[%s2806_s9 + $0x324] ss:$8 sps:$4 sm:$0xff]   ;;  %v2346_v30 = vld [vmem:[%s2806_s9 + $0x320] ss:$8 sps:$4 sm:$0xff]   ;;  %v2354_v32 = vld [vmem:[%s2806_s9 + $0x334] ss:$8 sps:$4 sm:$0xff]  }
  0x72   : > { %v2349_v33 = vld [vmem:[%s2806_s9 + $0x130] ss:$8 sps:$4 sm:$0xff]   ;;  %v2357_v35 = vld [vmem:[%s2806_s9 + $0x144] ss:$8 sps:$4 sm:$0xff]   ;;  %v2355_v37 = vld [vmem:[%s2806_s9 + $0x140] ss:$8 sps:$4 sm:$0xff]  }
  0x73   : > { %1695 = vmatpush1.bf16.msra.mxu1 %v2274_v40  ;;  %1777 = vmatpush1.bf16.msra.mxu0 %v2275_v41  ;;  %v2352_v34 = vld [vmem:[%s2806_s9 + $0x330] ss:$8 sps:$4 sm:$0xff]   ;;  %v2360_v36 = vld [vmem:[%s2806_s9 + $0x344] ss:$8 sps:$4 sm:$0xff]   ;;  %v2358_v38 = vld [vmem:[%s2806_s9 + $0x340] ss:$8 sps:$4 sm:$0xff]  }
  0x74   : > { %1696 = vmatprep.subr.bf16.mxu1 %v2276_v42  ;;  %1778 = vmatprep.subr.bf16.mxu0 %v2278_v43  ;;  %v2363_v39 = vld [vmem:[%s2806_s9 + $0x154] ss:$8 sps:$4 sm:$0xff]   ;;  %v2361_v41 = vld [vmem:[%s2806_s9 + $0x150] ss:$8 sps:$4 sm:$0xff]   ;;  %v2369_v43 = vld [vmem:[%s2806_s9 + $0x164] ss:$8 sps:$4 sm:$0xff]  }
  0x75   : > { %v2366_v40 = vld [vmem:[%s2806_s9 + $0x354] ss:$8 sps:$4 sm:$0xff]   ;;  %v2364_v42 = vld [vmem:[%s2806_s9 + $0x350] ss:$8 sps:$4 sm:$0xff]   ;;  %s3020_s10 = smov (!%p830_p9, %s2046_s10), 3 }
  0x76   : > { %s832_s13 = scalar_lea.vmem %s3010_s2, %s3020_s10  ;;  %s837_s17 = scalar_lea.vmem %s3011_s3, %s3020_s10 }
  0x77   : > { %1697 = vmatpush1.bf16.msra.mxu1 %v2280_v44  ;;  %1779 = vmatpush1.bf16.msra.mxu0 %v2281_v45  ;;  %v2372_v44 = vld [vmem:[%s2806_s9 + $0x364] ss:$8 sps:$4 sm:$0xff]   ;;  %v2367_v45 = vld [vmem:[%s2806_s9 + $0x160] ss:$8 sps:$4 sm:$0xff]   ;;  %s2049_s21 = sshll.u32 %s3020_s10, 1 }
  0x78   : > { %1698 = vmatprep.subr.bf16.mxu1 %v2282_v46  ;;  %1780 = vmatprep.subr.bf16.mxu0 %v2284_v47  ;;  %v2370_v46 = vld [vmem:[%s2806_s9 + $0x360] ss:$8 sps:$4 sm:$0xff]   ;;  %v2375_v47 = vld [vmem:[%s2806_s9 + $0x174] ss:$8 sps:$4 sm:$0xff]   ;;  %s847_s25 = scalar_lea.vmem %s3012_s4, %s2049_s21 }
  0x7b   : > { %1699 = vmatpush1.bf16.msra.mxu1 %v2286_v48  ;;  %1781 = vmatpush1.bf16.msra.mxu0 %v2287_v49  ;;  %v2378_v48 = vld [vmem:[%s2806_s9 + $0x374] ss:$8 sps:$4 sm:$0xff]   ;;  %v2373_v49 = vld [vmem:[%s2806_s9 + $0x170] ss:$8 sps:$4 sm:$0xff]  }
  0x7c   : > { %1700 = vmatprep.subr.bf16.mxu1 %v2288_v50  ;;  %1782 = vmatprep.subr.bf16.mxu0 %v2290_v51  ;;  %v2376_v50 = vld [vmem:[%s2806_s9 + $0x370] ss:$8 sps:$4 sm:$0xff]   ;;  %v2381_v51 = vld [vmem:[%s2806_s9 + $0x184] ss:$8 sps:$4 sm:$0xff]  }
  0x7f   : > { %1701 = vmatpush1.bf16.msra.mxu1 %v2292_v52  ;;  %1783 = vmatpush1.bf16.msra.mxu0 %v2293_v53  ;;  %v2384_v52 = vld [vmem:[%s2806_s9 + $0x384] ss:$8 sps:$4 sm:$0xff]   ;;  %v2379_v53 = vld [vmem:[%s2806_s9 + $0x180] ss:$8 sps:$4 sm:$0xff]  }
  0x80   : > { %1702 = vmatprep.subr.bf16.mxu1 %v2294_v54  ;;  %1784 = vmatprep.subr.bf16.mxu0 %v2296_v55  ;;  %v2382_v54 = vld [vmem:[%s2806_s9 + $0x380] ss:$8 sps:$4 sm:$0xff]   ;;  %v2387_v55 = vld [vmem:[%s2806_s9 + $0x194] ss:$8 sps:$4 sm:$0xff]  }
  0x83   : > { %1703 = vmatpush1.bf16.msra.mxu1 %v2298_v56  ;;  %1785 = vmatpush1.bf16.msra.mxu0 %v2299_v57  ;;  %v2390_v56 = vld [vmem:[%s2806_s9 + $0x394] ss:$8 sps:$4 sm:$0xff]   ;;  %v2385_v57 = vld [vmem:[%s2806_s9 + $0x190] ss:$8 sps:$4 sm:$0xff]  }
  0x84   : > { %1704 = vmatprep.subr.bf16.mxu1 %v2300_v58  ;;  %1786 = vmatprep.subr.bf16.mxu0 %v2302_v59  ;;  %v2388_v58 = vld [vmem:[%s2806_s9 + $0x390] ss:$8 sps:$4 sm:$0xff]   ;;  %v2393_v59 = vld [vmem:[%s2806_s9 + $0x1a4] ss:$8 sps:$4 sm:$0xff]  }
  0x87   : > { %1705 = vmatpush1.bf16.msra.mxu1 %v2304_v60  ;;  %1787 = vmatpush1.bf16.msra.mxu0 %v2305_v61  ;;  %v2396_v60 = vld [vmem:[%s2806_s9 + $0x3a4] ss:$8 sps:$4 sm:$0xff]   ;;  %v2391_v61 = vld [vmem:[%s2806_s9 + $0x1a0] ss:$8 sps:$4 sm:$0xff]  }
  0x88   : > { %1706 = vmatprep.subr.bf16.mxu1 %v2306_v62  ;;  %1788 = vmatprep.subr.bf16.mxu0 %v2308_v63  ;;  %v2394_v62 = vld [vmem:[%s2806_s9 + $0x3a0] ss:$8 sps:$4 sm:$0xff]   ;;  %v2399_v63 = vld [vmem:[%s2806_s9 + $0x1b4] ss:$8 sps:$4 sm:$0xff]  }
  0x8b   : > { %1707 = vmatpush1.bf16.msra.mxu1 %v2310_v0  ;;  %1789 = vmatpush1.bf16.msra.mxu0 %v2311_v1  ;;  %v2402_v0 = vld [vmem:[%s2806_s9 + $0x3b4] ss:$8 sps:$4 sm:$0xff]   ;;  %v2397_v1 = vld [vmem:[%s2806_s9 + $0x1b0] ss:$8 sps:$4 sm:$0xff]  }
  0x8c   : > { %1708 = vmatprep.subr.bf16.mxu1 %v2312_v2  ;;  %1790 = vmatprep.subr.bf16.mxu0 %v2314_v3  ;;  %v2400_v2 = vld [vmem:[%s2806_s9 + $0x3b0] ss:$8 sps:$4 sm:$0xff]   ;;  %v2405_v3 = vld [vmem:[%s2806_s9 + $0x1c4] ss:$8 sps:$4 sm:$0xff]  }
  0x8f   : > { %1709 = vmatpush1.bf16.msra.mxu1 %v2316_v5  ;;  %1791 = vmatpush1.bf16.msra.mxu0 %v2317_v6  ;;  %v2408_v5 = vld [vmem:[%s2806_s9 + $0x3c4] ss:$8 sps:$4 sm:$0xff]   ;;  %v2403_v6 = vld [vmem:[%s2806_s9 + $0x1c0] ss:$8 sps:$4 sm:$0xff]  }
  0x90   : > { %1710 = vmatprep.subr.bf16.mxu1 %v2318_v7  ;;  %1792 = vmatprep.subr.bf16.mxu0 %v2320_v8  ;;  %v2406_v7 = vld [vmem:[%s2806_s9 + $0x3c0] ss:$8 sps:$4 sm:$0xff]   ;;  %v2411_v8 = vld [vmem:[%s2806_s9 + $0x1d4] ss:$8 sps:$4 sm:$0xff]  }
  0x93   : > { %1711 = vmatpush1.bf16.msra.mxu1 %v2322_v9  ;;  %1793 = vmatpush1.bf16.msra.mxu0 %v2323_v10  ;;  %v2414_v9 = vld [vmem:[%s2806_s9 + $0x3d4] ss:$8 sps:$4 sm:$0xff]   ;;  %v2409_v10 = vld [vmem:[%s2806_s9 + $0x1d0] ss:$8 sps:$4 sm:$0xff]  }
  0x94   : > { %1712 = vmatprep.subr.bf16.mxu1 %v2324_v12  ;;  %1794 = vmatprep.subr.bf16.mxu0 %v2326_v13  ;;  %v2412_v12 = vld [vmem:[%s2806_s9 + $0x3d0] ss:$8 sps:$4 sm:$0xff]   ;;  %v2417_v13 = vld [vmem:[%s2806_s9 + $0x1e4] ss:$8 sps:$4 sm:$0xff]  }
  0x97   : > { %1713 = vmatpush1.bf16.msra.mxu1 %v2328_v14  ;;  %1795 = vmatpush1.bf16.msra.mxu0 %v2329_v17  ;;  %v2420_v14 = vld [vmem:[%s2806_s9 + $0x3e4] ss:$8 sps:$4 sm:$0xff]   ;;  %v2415_v17 = vld [vmem:[%s2806_s9 + $0x1e0] ss:$8 sps:$4 sm:$0xff]  }
  0x98   : > { %1723 = vmatprep.subr.bf16.mxu1 %v2332_v18  ;;  %1805 = vmatprep.subr.bf16.mxu0 %v2336_v19  ;;  %v2418_v18 = vld [vmem:[%s2806_s9 + $0x3e0] ss:$8 sps:$4 sm:$0xff]   ;;  %v2423_v19 = vld [vmem:[%s2806_s9 + $0x1f4] ss:$8 sps:$4 sm:$0xff]  }
  0x9a   : > { %1715 = vmatmul.mubr.bf16.vlgmr.msra.gmra.mrb[0].mxu1 %v2899_v22  ;;  %1797 = vmatmul.mubr.bf16.vlgmr.msra.gmra.mrb[0].mxu0 %v2903_v23 }
  0x9b   : > { %1724 = vmatpush1.bf16.msra.mxu1 %v2330_v20  ;;  %1806 = vmatpush1.bf16.msra.mxu0 %v2334_v21  ;;  %v2426_v20 = vld [vmem:[%s2806_s9 + $0x3f4] ss:$8 sps:$4 sm:$0xff]   ;;  %v2421_v21 = vld [vmem:[%s2806_s9 + $0x1f0] ss:$8 sps:$4 sm:$0xff]  }
  0x9c   : > { %1725 = vmatprep.subr.bf16.mxu1 %v2339_v24  ;;  %1807 = vmatprep.subr.bf16.mxu0 %v2342_v27  ;;  %v2424_v24 = vld [vmem:[%s2806_s9 + $0x3f0] ss:$8 sps:$4 sm:$0xff]   ;;  %v1030_v27 = vcombine.high %v2899_v22, %v2899_v22 }
  0x9d   : > { %1755 = vmatprep.mubr.bf16.mxu1 %v1032_v28  ;;  %1837 = vmatprep.mubr.bf16.mxu0 %v1033_v15  ;;  %v1031_v28 = vcombine.high %v2903_v23, %v2903_v23  ;;  %v2468_v15 = vmov 0.0  }
  0x9e   : > { %853 = vst [vmem:[#allocation2] sm:$0xf] %v2468_v15 }
  0x9f   : > { %1726 = vmatpush1.bf16.msra.mxu1 %v2337_v11  ;;  %1808 = vmatpush1.bf16.msra.mxu0 %v2340_v16  ;;  %v2469_v11 = vmov 1983009808  }
  0xa0   : > { %1727 = vmatprep.subr.bf16.mxu1 %v2345_v29  ;;  %1809 = vmatprep.subr.bf16.mxu0 %v2348_v25  ;;  %v1850_v16 = vunpack.c.l.s4 %v2469_v11 }
  0xa2   : > { %v1851_v29 = vunpack.c.0.s8 %v1850_v16 }
  0xa3   : > { %1728 = vmatpush1.bf16.msra.mxu1 %v2343_v26  ;;  %1810 = vmatpush1.bf16.msra.mxu0 %v2346_v30 }
  0xa4   : > { %1729 = vmatprep.subr.bf16.mxu1 %v2351_v31  ;;  %1811 = vmatprep.subr.bf16.mxu0 %v2354_v32  ;;  %v1854_v32 = vsub.s32 %v1851_v29, %v2804_v4 }
  0xa7   : > { %1730 = vmatpush1.bf16.msra.mxu1 %v2349_v33  ;;  %1812 = vmatpush1.bf16.msra.mxu0 %v2352_v34  ;;  %v1867_v33 = vsub.s32 0, %v2804_v4  ;;  %v1871_v34 = vsub.s32 1, %v2804_v4 }
  0xa8   : > { %1731 = vmatprep.subr.bf16.mxu1 %v2357_v35  ;;  %1813 = vmatprep.subr.bf16.mxu0 %v2360_v36 }
  0xab   : > { %1732 = vmatpush1.bf16.msra.mxu1 %v2355_v37  ;;  %1814 = vmatpush1.bf16.msra.mxu0 %v2358_v38  ;;  %v1863_v37 = vld [vmem:[%s832_s13] sm:$0x3] }
  0xac   : > { %1733 = vmatprep.subr.bf16.mxu1 %v2363_v39  ;;  %1815 = vmatprep.subr.bf16.mxu0 %v2366_v40 }
  0xaf   : > { %1734 = vmatpush1.bf16.msra.mxu1 %v2361_v41  ;;  %1816 = vmatpush1.bf16.msra.mxu0 %v2364_v42  ;;  %v854_v41 = vld [vmem:[#allocation2] sm:$0xf] }
  0xb0   : > { %1735 = vmatprep.subr.bf16.mxu1 %v2369_v43  ;;  %1817 = vmatprep.subr.bf16.mxu0 %v2372_v44  ;;  %v1883_v42 = vld [vmem:[%s837_s17] sm:$0x3]  ;;  %v1868_v44 = vrot.slane %v1863_v37, %v1867_v33 }
  0xb3   : > { %1736 = vmatpush1.bf16.msra.mxu1 %v2367_v45  ;;  %1818 = vmatpush1.bf16.msra.mxu0 %v2370_v46  ;;  %v1872_v45 = vrot.slane %v1863_v37, %v1871_v34 }
  0xb4   : > { %1737 = vmatprep.subr.bf16.mxu1 %v2375_v47  ;;  %1819 = vmatprep.subr.bf16.mxu0 %v2378_v48  ;;  %v1888_v47 = vrot.slane %v1883_v42, %v1867_v33  ;;  %v1892_v48 = vrot.slane %v1883_v42, %v1871_v34 }
  0xb7   : > { %1738 = vmatpush1.bf16.msra.mxu1 %v2373_v49  ;;  %1820 = vmatpush1.bf16.msra.mxu0 %v2376_v50  ;;  %v1873_v49 = vcombine.low %v1868_v44, %v1872_v45  ;;  %v1893_v50 = vcombine.low %v1888_v47, %v1892_v48 }
  0xb8   : > { %1739 = vmatprep.subr.bf16.mxu1 %v2381_v51  ;;  %1821 = vmatprep.subr.bf16.mxu0 %v2384_v52 }
  0xb9   : > { %v1880_v51 = vrot.slane %v1873_v49, %v1854_v32  ;;  %v1900_v4 = vrot.slane %v1893_v50, %v1854_v32 }
  0xbb   : > { %1740 = vmatpush1.bf16.msra.mxu1 %v2379_v53  ;;  %1822 = vmatpush1.bf16.msra.mxu0 %v2382_v54 }
  0xbc   : > { %1741 = vmatprep.subr.bf16.mxu1 %v2387_v55  ;;  %1823 = vmatprep.subr.bf16.mxu0 %v2390_v56 }
  0xbf   : > { %1742 = vmatpush1.bf16.msra.mxu1 %v2385_v57  ;;  %1824 = vmatpush1.bf16.msra.mxu0 %v2388_v58 }
  0xc0   : > { %1743 = vmatprep.subr.bf16.mxu1 %v2393_v59  ;;  %1825 = vmatprep.subr.bf16.mxu0 %v2396_v60 }
  0xc3   : > { %1744 = vmatpush1.bf16.msra.mxu1 %v2391_v61  ;;  %1826 = vmatpush1.bf16.msra.mxu0 %v2394_v62 }
  0xc4   : > { %1745 = vmatprep.subr.bf16.mxu1 %v2399_v63  ;;  %1827 = vmatprep.subr.bf16.mxu0 %v2402_v0 }
  0xc7   : > { %1746 = vmatpush1.bf16.msra.mxu1 %v2397_v1  ;;  %1828 = vmatpush1.bf16.msra.mxu0 %v2400_v2 }
  0xc8   : > { %1747 = vmatprep.subr.bf16.mxu1 %v2405_v3  ;;  %1829 = vmatprep.subr.bf16.mxu0 %v2408_v5 }
  0xcb   : > { %1748 = vmatpush1.bf16.msra.mxu1 %v2403_v6  ;;  %1830 = vmatpush1.bf16.msra.mxu0 %v2406_v7 }
  0xcc   : > { %1749 = vmatprep.subr.bf16.mxu1 %v2411_v8  ;;  %1831 = vmatprep.subr.bf16.mxu0 %v2414_v9 }
  0xcf   : > { %1750 = vmatpush1.bf16.msra.mxu1 %v2409_v10  ;;  %1832 = vmatpush1.bf16.msra.mxu0 %v2412_v12 }
  0xd0   : > { %1751 = vmatprep.subr.bf16.mxu1 %v2417_v13  ;;  %1833 = vmatprep.subr.bf16.mxu0 %v2420_v14 }
  0xd3   : > { %1752 = vmatpush1.bf16.msra.mxu1 %v2415_v17  ;;  %1834 = vmatpush1.bf16.msra.mxu0 %v2418_v18 }
  0xd4   : > { %1753 = vmatprep.subr.bf16.mxu1 %v2423_v19  ;;  %1835 = vmatprep.subr.bf16.mxu0 %v2426_v20 }
  0xd7   : > { %1754 = vmatpush1.bf16.msra.mxu1 %v2421_v21  ;;  %1836 = vmatpush1.bf16.msra.mxu0 %v2424_v24 }
  0xda   : > { %1756 = vmatmul.mubr.bf16.vlgmr.msra.gmra.mrb[0].mxu1 %v1030_v27  ;;  %1838 = vmatmul.mubr.bf16.vlgmr.msra.gmra.mrb[0].mxu0 %v1031_v28 }
 0x1ad   : > { %v1757_v25 = vpop.f32.mrb[0].mxu1  ;;  %v1839_v22 = vpop.f32.mrb[0].mxu0 }
 0x1ae   : > { %v2181_v23 = vadd.f32 %v1839_v22, %v1757_v25  ;;  %v1759_v26 = vpop.f32.mrb[1].mxu1  ;;  %v1841_v30 = vpop.f32.mrb[1].mxu0 }
 0x1af   : > { %v2182_v31 = vadd.f32 %v1841_v30, %v1759_v26  ;;  %v1761_v35 = vpop.f32.mrb[2].mxu1  ;;  %v1843_v36 = vpop.f32.mrb[2].mxu0 }
 0x1b0   : > { %v1762_v38 = vpop.f32.mrb[3].mxu1  ;;  %v1844_v39 = vpop.f32.mrb[3].mxu0 }
 0x1b1   : > { %v1848_v40 = vcombine.low %v2181_v23, %v2182_v31 }
 0x1b3   : > { %v1855_v43 = vrot.slane %v1848_v40, %v1854_v32 }
 0x1b5   : > { %v1857_v46 = vadd.f32 %v1855_v43, %v854_v41 }
 0x1b7   : > { %1858 = vst [vmem:[#allocation2] sm:$0xf] %v1857_v46 }
 0x1be   : > { %v1862_v52 = vld [vmem:[#allocation2] sm:$0xf] }
 0x1bf   : > { %v1882_v53 = vmul.f32 %v1880_v51, %v1862_v52 }
 0x1c1   : > { %v1902_v54 = vadd.f32 %v1900_v4, %v1882_v53 }
 0x1c3   : > { %vm1903_vm0 = vcmp.gt.f32.partialorder %v1902_v54, 0.0  ;;  %v1904_v55 = vmul.f32 0.2, %v1902_v54 }
 0x1c5   : > { %v1905_v56 = vsel %vm1903_vm0, %v1902_v54, %v1904_v55 }
 0x1c6   : > { %1906 = vst [vmem:[%s847_s25] sm:$0xf] %v1905_v56 }
 0x1c7 PF: > { %s14_s19 = sadd.s32 1, %s2465_s19   ;;  %s3013_s15 = smov %s2453_s16 }
 0x1c8   : > { %p11_p10 = scmp.ge.s32.totalorder %s14_s19, 4   ;;  %s3014_s16 = smov %s2530_s23 }
 0x1c9   : > { %s3015_s17 = smov %s2461_s18  ;;  %s3016_s18 = smov %s3018_s20 }
 0x1ca   :  { %13 = sbr.rel (!%p11_p10) target bundleno = 3 (0x3), region = 126 }

// kernel: encoder_forward.11
= control target key start
LH: loop header
LB: loop body
LE: loop exit
PB: predicated region body
PF: predicated region fallthrough
CT: control target
= control target key end

     0   :  { %v750_v38 = vmov 1966171168   ;;  %v100_v40 = vlaneseq  ;;  %s988_s1 = inlined_call_operand.vmem [shape: bf16[512,256], index: 1, kind: input, shape index: {}]   ;;  %s989_s0 = inlined_call_operand.vmem [shape: bf16[2,512], index: 0, kind: input, shape index: {}]   ;;  %s990_s2 = inlined_call_operand.vmem [shape: f32[1,256], index: 2, kind: input, shape index: {}]   ;;  %s991_s3 = inlined_call_operand.vmem [shape: f32[1,256], index: 3, kind: input, shape index: {}]   ;;  %s992_s4 = inlined_call_operand.vmem [shape: f32[2,256], index: 4, kind: output, shape index: {}]  }
   0x1   :  { %v654_v0 = vld [vmem:[%s988_s1 + $0x4] ss:$8 sps:$4 sm:$0xff]   ;;  %v658_v2 = vld [vmem:[%s988_s1] ss:$8 sps:$4 sm:$0xff]   ;;  %v660_v4 = vld [vmem:[%s988_s1 + $0x14] ss:$8 sps:$4 sm:$0xff]   ;;  %v98_v39 = vunpack.c.l.s4 %v750_v38 }
   0x2   :  { %v656_v1 = vld [vmem:[%s988_s1 + $0x104] ss:$8 sps:$4 sm:$0xff]   ;;  %437 = vmatprep.subr.bf16.mxu1 %v654_v0  ;;  %v659_v3 = vld [vmem:[%s988_s1 + $0x100] ss:$8 sps:$4 sm:$0xff]   ;;  %v662_v5 = vld [vmem:[%s988_s1 + $0x114] ss:$8 sps:$4 sm:$0xff]  }
   0x3   :  { %478 = vmatprep.subr.bf16.mxu0 %v656_v1  ;;  %438 = vmatpush1.bf16.msra.mxu1 %v658_v2  ;;  %v664_v6 = vld [vmem:[%s988_s1 + $0x10] ss:$8 sps:$4 sm:$0xff]   ;;  %v666_v8 = vld [vmem:[%s988_s1 + $0x24] ss:$8 sps:$4 sm:$0xff]   ;;  %v670_v10 = vld [vmem:[%s988_s1 + $0x20] ss:$8 sps:$4 sm:$0xff]   ;;  %v99_v45 = vunpack.c.0.s8 %v98_v39 }
   0x4   :  { %479 = vmatpush1.bf16.msra.mxu0 %v659_v3  ;;  %439 = vmatprep.subr.bf16.mxu1 %v660_v4  ;;  %v665_v7 = vld [vmem:[%s988_s1 + $0x110] ss:$8 sps:$4 sm:$0xff]   ;;  %v668_v9 = vld [vmem:[%s988_s1 + $0x124] ss:$8 sps:$4 sm:$0xff]   ;;  %v671_v11 = vld [vmem:[%s988_s1 + $0x120] ss:$8 sps:$4 sm:$0xff]  }
   0x5   :  { %480 = vmatprep.subr.bf16.mxu0 %v662_v5  ;;  %v672_v12 = vld [vmem:[%s988_s1 + $0x34] ss:$8 sps:$4 sm:$0xff]   ;;  %v676_v14 = vld [vmem:[%s988_s1 + $0x30] ss:$8 sps:$4 sm:$0xff]   ;;  %v678_v16 = vld [vmem:[%s988_s1 + $0x44] ss:$8 sps:$4 sm:$0xff]  }
   0x6   :  { %v674_v13 = vld [vmem:[%s988_s1 + $0x134] ss:$8 sps:$4 sm:$0xff]   ;;  %v677_v15 = vld [vmem:[%s988_s1 + $0x130] ss:$8 sps:$4 sm:$0xff]   ;;  %v680_v17 = vld [vmem:[%s988_s1 + $0x144] ss:$8 sps:$4 sm:$0xff]  }
   0x7   :  { %440 = vmatpush1.bf16.msra.mxu1 %v664_v6  ;;  %v682_v18 = vld [vmem:[%s988_s1 + $0x40] ss:$8 sps:$4 sm:$0xff]   ;;  %v684_v20 = vld [vmem:[%s988_s1 + $0x54] ss:$8 sps:$4 sm:$0xff]   ;;  %v688_v22 = vld [vmem:[%s988_s1 + $0x50] ss:$8 sps:$4 sm:$0xff]  }
   0x8   :  { %481 = vmatpush1.bf16.msra.mxu0 %v665_v7  ;;  %441 = vmatprep.subr.bf16.mxu1 %v666_v8  ;;  %v683_v19 = vld [vmem:[%s988_s1 + $0x140] ss:$8 sps:$4 sm:$0xff]   ;;  %v686_v21 = vld [vmem:[%s988_s1 + $0x154] ss:$8 sps:$4 sm:$0xff]   ;;  %v689_v23 = vld [vmem:[%s988_s1 + $0x150] ss:$8 sps:$4 sm:$0xff]  }
   0x9   :  { %482 = vmatprep.subr.bf16.mxu0 %v668_v9  ;;  %v690_v24 = vld [vmem:[%s988_s1 + $0x64] ss:$8 sps:$4 sm:$0xff]   ;;  %v694_v26 = vld [vmem:[%s988_s1 + $0x60] ss:$8 sps:$4 sm:$0xff]   ;;  %v696_v28 = vld [vmem:[%s988_s1 + $0x74] ss:$8 sps:$4 sm:$0xff]  }
   0xa   :  { %v692_v25 = vld [vmem:[%s988_s1 + $0x164] ss:$8 sps:$4 sm:$0xff]   ;;  %v695_v27 = vld [vmem:[%s988_s1 + $0x160] ss:$8 sps:$4 sm:$0xff]   ;;  %v698_v29 = vld [vmem:[%s988_s1 + $0x174] ss:$8 sps:$4 sm:$0xff]  }
   0xb   :  { %442 = vmatpush1.bf16.msra.mxu1 %v670_v10  ;;  %v700_v30 = vld [vmem:[%s988_s1 + $0x70] ss:$8 sps:$4 sm:$0xff]   ;;  %v702_v32 = vld [vmem:[%s988_s1 + $0x84] ss:$8 sps:$4 sm:$0xff]   ;;  %v706_v34 = vld [vmem:[%s988_s1 + $0x80] ss:$8 sps:$4 sm:$0xff]  }
   0xc   :  { %483 = vmatpush1.bf16.msra.mxu0 %v671_v11  ;;  %443 = vmatprep.subr.bf16.mxu1 %v672_v12  ;;  %v701_v31 = vld [vmem:[%s988_s1 + $0x170] ss:$8 sps:$4 sm:$0xff]   ;;  %v704_v33 = vld [vmem:[%s988_s1 + $0x184] ss:$8 sps:$4 sm:$0xff]   ;;  %v707_v35 = vld [vmem:[%s988_s1 + $0x180] ss:$8 sps:$4 sm:$0xff]  }
   0xd   :  { %484 = vmatprep.subr.bf16.mxu0 %v674_v13  ;;  %v708_v36 = vld [vmem:[%s988_s1 + $0x94] ss:$8 sps:$4 sm:$0xff]   ;;  %v712_v41 = vld [vmem:[%s988_s1 + $0x90] ss:$8 sps:$4 sm:$0xff]   ;;  %v714_v43 = vld [vmem:[%s988_s1 + $0xa4] ss:$8 sps:$4 sm:$0xff]  }
   0xe   :  { %v710_v37 = vld [vmem:[%s988_s1 + $0x194] ss:$8 sps:$4 sm:$0xff]   ;;  %v713_v42 = vld [vmem:[%s988_s1 + $0x190] ss:$8 sps:$4 sm:$0xff]   ;;  %v716_v44 = vld [vmem:[%s988_s1 + $0x1a4] ss:$8 sps:$4 sm:$0xff]  }
   0xf   :  { %444 = vmatpush1.bf16.msra.mxu1 %v676_v14  ;;  %v904_v46 = vshrl.u32 %v100_v40, 7  ;;  %v718_v47 = vld [vmem:[%s988_s1 + $0xa0] ss:$8 sps:$4 sm:$0xff]   ;;  %v720_v49 = vld [vmem:[%s988_s1 + $0xb4] ss:$8 sps:$4 sm:$0xff]   ;;  %v751_v12 = vmov 0.0  }
  0x10   :  { %485 = vmatpush1.bf16.msra.mxu0 %v677_v15  ;;  %445 = vmatprep.subr.bf16.mxu1 %v678_v16  ;;  %v719_v48 = vld [vmem:[%s988_s1 + $0x1a0] ss:$8 sps:$4 sm:$0xff]   ;;  %v722_v50 = vld [vmem:[%s988_s1 + $0x1b4] ss:$8 sps:$4 sm:$0xff]   ;;  %v724_v53 = vld [vmem:[%s988_s1 + $0xb0] ss:$8 sps:$4 sm:$0xff]  }
  0x11   :  { %486 = vmatprep.subr.bf16.mxu0 %v680_v17  ;;  %v102_v51 = vsub.s32 %v99_v45, %v904_v46  ;;  %v584_v52 = vld.sshfl [vmem:[%s989_s0] sm:$0x33 pattern:$0x75316420]  ;;  %v725_v54 = vld [vmem:[%s988_s1 + $0x1b0] ss:$8 sps:$4 sm:$0xff]  }
  0x12   :  { %v96_v55 = vcombine.high %v584_v52, %v584_v52  ;;  %v726_v56 = vld [vmem:[%s988_s1 + $0xc4] ss:$8 sps:$4 sm:$0xff]   ;;  %v730_v59 = vld [vmem:[%s988_s1 + $0xc0] ss:$8 sps:$4 sm:$0xff]   ;;  %v732_v62 = vld [vmem:[%s988_s1 + $0xd4] ss:$8 sps:$4 sm:$0xff]  }
  0x13   :  { %446 = vmatpush1.bf16.msra.mxu1 %v682_v18  ;;  %v728_v57 = vld [vmem:[%s988_s1 + $0x1c4] ss:$8 sps:$4 sm:$0xff]   ;;  %v731_v60 = vld [vmem:[%s988_s1 + $0x1c0] ss:$8 sps:$4 sm:$0xff]   ;;  %v734_v63 = vld [vmem:[%s988_s1 + $0x1d4] ss:$8 sps:$4 sm:$0xff]   ;;  %v103_v8 = vrot.slane %v584_v52, %v102_v51 }
  0x14   :  { %487 = vmatpush1.bf16.msra.mxu0 %v683_v19  ;;  %447 = vmatprep.subr.bf16.mxu1 %v684_v20  ;;  %v110_v58 = vrot.slane %v96_v55, %v102_v51  ;;  %v736_v0 = vld [vmem:[%s988_s1 + $0xd0] ss:$8 sps:$4 sm:$0xff]   ;;  %v738_v2 = vld [vmem:[%s988_s1 + $0xe4] ss:$8 sps:$4 sm:$0xff]   ;;  %v742_v4 = vld [vmem:[%s988_s1 + $0xe0] ss:$8 sps:$4 sm:$0xff]  }
  0x15   :  { %488 = vmatprep.subr.bf16.mxu0 %v686_v21  ;;  %v737_v1 = vld [vmem:[%s988_s1 + $0x1d0] ss:$8 sps:$4 sm:$0xff]   ;;  %v740_v3 = vld [vmem:[%s988_s1 + $0x1e4] ss:$8 sps:$4 sm:$0xff]   ;;  %v743_v5 = vld [vmem:[%s988_s1 + $0x1e0] ss:$8 sps:$4 sm:$0xff]   ;;  %v111_v11 = vcombine.high %v103_v8, %v103_v8 }
  0x16   :  { %v112_v61 = vcombine.high %v110_v58, %v110_v58  ;;  %469 = vmatprep.mubr.bf16.mxu1 %v110_v58  ;;  %v744_v6 = vld [vmem:[%s988_s1 + $0xf4] ss:$8 sps:$4 sm:$0xff]   ;;  %v748_v9 = vld [vmem:[%s988_s1 + $0xf0] ss:$8 sps:$4 sm:$0xff]   ;;  %21 = vst [vmem:[#allocation2] sm:$0xf] %v751_v12 }
  0x17   :  { %448 = vmatpush1.bf16.msra.mxu1 %v688_v22  ;;  %v746_v7 = vld [vmem:[%s988_s1 + $0x1f4] ss:$8 sps:$4 sm:$0xff]   ;;  %v749_v10 = vld [vmem:[%s988_s1 + $0x1f0] ss:$8 sps:$4 sm:$0xff]   ;;  %v752_v13 = vmov 1983009808  }
  0x18   :  { %489 = vmatpush1.bf16.msra.mxu0 %v689_v23  ;;  %449 = vmatprep.subr.bf16.mxu1 %v690_v24  ;;  %v523_v14 = vunpack.c.l.s4 %v752_v13  ;;  %v540_v23 = vsub.s32 0, %v904_v46  ;;  %v544_v24 = vsub.s32 1, %v904_v46 }
  0x19   :  { %490 = vmatprep.subr.bf16.mxu0 %v692_v25  ;;  %510 = vmatprep.mubr.bf16.mxu0 %v112_v61 }
  0x1a   :  { %v524_v15 = vunpack.c.0.s8 %v523_v14 }
  0x1b   :  { %450 = vmatpush1.bf16.msra.mxu1 %v694_v26 }
  0x1c   :  { %491 = vmatpush1.bf16.msra.mxu0 %v695_v27  ;;  %451 = vmatprep.subr.bf16.mxu1 %v696_v28  ;;  %v527_v22 = vsub.s32 %v524_v15, %v904_v46  ;;  %v536_v27 = vld [vmem:[%s990_s2] sm:$0x3] }
  0x1d   :  { %492 = vmatprep.subr.bf16.mxu0 %v698_v29 }
  0x1f   :  { %452 = vmatpush1.bf16.msra.mxu1 %v700_v30 }
  0x20   :  { %493 = vmatpush1.bf16.msra.mxu0 %v701_v31  ;;  %453 = vmatprep.subr.bf16.mxu1 %v702_v32  ;;  %v22_v31 = vld [vmem:[#allocation2] sm:$0xf] }
  0x21   :  { %494 = vmatprep.subr.bf16.mxu0 %v704_v33  ;;  %v556_v32 = vld [vmem:[%s991_s3] sm:$0x3] }
  0x22   :  { %v565_v38 = vrot.slane %v556_v32, %v544_v24 }
  0x23   :  { %454 = vmatpush1.bf16.msra.mxu1 %v706_v34  ;;  %v541_v34 = vrot.slane %v536_v27, %v540_v23 }
  0x24   :  { %495 = vmatpush1.bf16.msra.mxu0 %v707_v35  ;;  %455 = vmatprep.subr.bf16.mxu1 %v708_v36  ;;  %v545_v35 = vrot.slane %v536_v27, %v544_v24 }
  0x25   :  { %496 = vmatprep.subr.bf16.mxu0 %v710_v37  ;;  %v561_v37 = vrot.slane %v556_v32, %v540_v23 }
  0x26   :  { %v546_v39 = vcombine.low %v541_v34, %v545_v35 }
  0x27   :  { %456 = vmatpush1.bf16.msra.mxu1 %v712_v41  ;;  %v566_v40 = vcombine.low %v561_v37, %v565_v38 }
  0x28   :  { %497 = vmatpush1.bf16.msra.mxu0 %v713_v42  ;;  %457 = vmatprep.subr.bf16.mxu1 %v714_v43  ;;  %v553_v41 = vrot.slane %v546_v39, %v527_v22 }
  0x29   :  { %498 = vmatprep.subr.bf16.mxu0 %v716_v44  ;;  %v573_v42 = vrot.slane %v566_v40, %v527_v22 }
  0x2b   :  { %458 = vmatpush1.bf16.msra.mxu1 %v718_v47 }
  0x2c   :  { %499 = vmatpush1.bf16.msra.mxu0 %v719_v48  ;;  %459 = vmatprep.subr.bf16.mxu1 %v720_v49 }
  0x2d   :  { %500 = vmatprep.subr.bf16.mxu0 %v722_v50 }
  0x2f   :  { %460 = vmatpush1.bf16.msra.mxu1 %v724_v53 }
  0x30   :  { %501 = vmatpush1.bf16.msra.mxu0 %v725_v54  ;;  %461 = vmatprep.subr.bf16.mxu1 %v726_v56 }
  0x31   :  { %502 = vmatprep.subr.bf16.mxu0 %v728_v57 }
  0x33   :  { %462 = vmatpush1.bf16.msra.mxu1 %v730_v59 }
  0x34   :  { %503 = vmatpush1.bf16.msra.mxu0 %v731_v60  ;;  %463 = vmatprep.subr.bf16.mxu1 %v732_v62 }
  0x35   :  { %504 = vmatprep.subr.bf16.mxu0 %v734_v63 }
  0x37   :  { %464 = vmatpush1.bf16.msra.mxu1 %v736_v0 }
  0x38   :  { %505 = vmatpush1.bf16.msra.mxu0 %v737_v1  ;;  %465 = vmatprep.subr.bf16.mxu1 %v738_v2 }
  0x39   :  { %506 = vmatprep.subr.bf16.mxu0 %v740_v3 }
  0x3b   :  { %466 = vmatpush1.bf16.msra.mxu1 %v742_v4 }
  0x3c   :  { %507 = vmatpush1.bf16.msra.mxu0 %v743_v5  ;;  %467 = vmatprep.subr.bf16.mxu1 %v744_v6 }
  0x3d   :  { %508 = vmatprep.subr.bf16.mxu0 %v746_v7 }
  0x3f   :  { %468 = vmatpush1.bf16.msra.mxu1 %v748_v9 }
  0x40   :  { %509 = vmatpush1.bf16.msra.mxu0 %v749_v10 }
  0x42   :  { %470 = vmatmul.mubr.bf16.vlgmr.msra.gmra.mrb[0].mxu1 %v103_v8 }
  0x43   :  { %511 = vmatmul.mubr.bf16.vlgmr.msra.gmra.mrb[0].mxu0 %v111_v11 }
 0x115   :  { %v471_v16 = vpop.f32.mrb[0].mxu1 }
 0x116   :  { %v512_v17 = vpop.f32.mrb[0].mxu0  ;;  %v473_v19 = vpop.f32.mrb[1].mxu1 }
 0x117   :  { %v513_v18 = vadd.f32 %v512_v17, %v471_v16  ;;  %v514_v20 = vpop.f32.mrb[1].mxu0  ;;  %v475_v25 = vpop.f32.mrb[2].mxu1 }
 0x118   :  { %v515_v21 = vadd.f32 %v514_v20, %v473_v19  ;;  %v516_v26 = vpop.f32.mrb[2].mxu0  ;;  %v476_v28 = vpop.f32.mrb[3].mxu1 }
 0x119   :  { %v517_v29 = vpop.f32.mrb[3].mxu0 }
 0x11a   :  { %v521_v30 = vcombine.low %v513_v18, %v515_v21 }
 0x11c   :  { %v528_v33 = vrot.slane %v521_v30, %v527_v22 }
 0x11e   :  { %v530_v36 = vadd.f32 %v528_v33, %v22_v31 }
 0x120   :  { %531 = vst [vmem:[#allocation2] sm:$0xf] %v530_v36 }
 0x127   :  { %v535_v43 = vld [vmem:[#allocation2] sm:$0xf] }
 0x128   :  { %v555_v44 = vmul.f32 %v553_v41, %v535_v43 }
 0x12a   :  { %v575_v45 = vadd.f32 %v573_v42, %v555_v44 }
 0x12c   :  { %vm576_vm0 = vcmp.gt.f32.partialorder %v575_v45, 0.0  ;;  %v577_v46 = vmul.f32 0.2, %v575_v45 }
 0x12e   :  { %v578_v47 = vsel %vm576_vm0, %v575_v45, %v577_v46 }
 0x12f   :  { %579 = vst [vmem:[%s992_s4] sm:$0xf] %v578_v47 }

// kernel: encoder_forward.13
= control target key start
LH: loop header
LB: loop body
LE: loop exit
PB: predicated region body
PF: predicated region fallthrough
CT: control target
= control target key end

     0   :  { %v243_v1 = vmov 0.0   ;;  %vm244_vm0 = vmmov 0   ;;  %vm23_vm1 = vcmask 74752   ;;  %s319_s0 = inlined_call_operand.vmem [shape: bf16[2,128], index: 0, kind: input, shape index: {}]   ;;  %s320_s1 = inlined_call_operand.vmem [shape: bf16[128,10], index: 1, kind: input, shape index: {}]   ;;  %s321_s2 = inlined_call_operand.vmem [shape: f32[1,10], index: 2, kind: input, shape index: {}]   ;;  %s322_s3 = inlined_call_operand.vmem [shape: f32[1,10], index: 3, kind: input, shape index: {}]   ;;  %s323_s4 = inlined_call_operand.hbm [shape: f32[2,10], index: 4, kind: output, shape index: {}]  }
   0x1   :  { %v211_v0 = vld [vmem:[%s320_s1] sm:$0xff]   ;;  %188 = vmatprep.subr.bf16.mxu0 %v243_v1  ;;  %v212_v2 = vld [vmem:[%s320_s1 + $0x8] sm:$0xff]   ;;  %204 = vmatprep.mubr.msk.bf16.mxu0 %vm244_vm0, %v243_v1  ;;  %24 = vst.msk [vmem:[#allocation2] sm:$0x3] %vm23_vm1, %v243_v1  ;;  %v213_v3 = vld [vmem:[%s320_s1 + $0x10] sm:$0xff]  }
   0x2   :  { %189 = vmatpush3.bf16.msra.mxu0 %v211_v0 }
   0x3   :  { %190 = vmatprep.subr.bf16.mxu0 %v243_v1 }
   0x6   :  { %191 = vmatpush3.bf16.msra.mxu0 %v212_v2 }
   0x7   :  { %192 = vmatprep.subr.bf16.mxu0 %v243_v1 }
   0x8   :  { %9 = vsyncpa [#allocation4], 0  ;;  %v214_v4 = vld [vmem:[%s320_s1 + $0x18] sm:$0xff]   ;;  %v215_v5 = vld [vmem:[%s320_s1 + $0x20] sm:$0xff]   ;;  %s245_s10 = smov [#allocation3]  }
   0x9   :  { %v216_v6 = vld [vmem:[%s320_s1 + $0x28] sm:$0xff]   ;;  %v217_v7 = vld [vmem:[%s320_s1 + $0x30] sm:$0xff]   ;;  %v218_v8 = vld [vmem:[%s320_s1 + $0x38] sm:$0xff]  }
   0xa   :  { %193 = vmatpush3.bf16.msra.mxu0 %v213_v3  ;;  %v26_v9 = vld [vmem:[%s319_s0] sm:$0x1]  ;;  %s161_s0 = sshll.u32 %s245_s10, 4  ;;  %s162_s0 = int_to_ptr.vmem [resolvable:$true] %s161_s0 }
   0xb   :  { %194 = vmatprep.subr.bf16.mxu0 %v243_v1  ;;  %v25_v10 = vld [vmem:[#allocation2] sm:$0x3]  ;;  %s219_s11 = scalar_lea.vmem %s162_s0, 32  ;;  %p224_p1 = scmp.lt.s32.totalorder %s162_s0, %s162_s0 }
   0xc   :  { %v177_v16 = vld [vmem:[%s321_s2] ss:$0 sm:$0xff]  ;;  %p220_p0 = scmp.ne.s32.totalorder %s162_s0, %s219_s11  ;;  %p225_p2 = scmp.lt.s32.totalorder %s219_s11, %s219_s11 }
   0xd   :  { %v178_v18 = vld [vmem:[%s322_s3] ss:$0 sm:$0xff] }
   0xe   :  { %195 = vmatpush3.bf16.msra.mxu0 %v214_v4  ;;  %p226_p3 = por %p225_p2, %p224_p1 }
   0xf   :  { %196 = vmatprep.subr.bf16.mxu0 %v243_v1 }
  0x10   :  { %p227_p4 = pnand %p226_p3, %p220_p0 }
  0x12   :  { %197 = vmatpush3.bf16.msra.mxu0 %v215_v5 }
  0x13   :  { %198 = vmatprep.subr.bf16.mxu0 %v243_v1 }
  0x16   :  { %199 = vmatpush3.bf16.msra.mxu0 %v216_v6 }
  0x17   :  { %200 = vmatprep.subr.bf16.mxu0 %v243_v1 }
  0x1a   :  { %201 = vmatpush3.bf16.msra.mxu0 %v217_v7 }
  0x1b   :  { %202 = vmatprep.subr.bf16.mxu0 %v243_v1 }
  0x1e   :  { %203 = vmatpush3.bf16.msra.mxu0 %v218_v8 }
  0x21   :  { %205 = vmatmul.mubr.bf16.vlgmr.msra.gmra.mrb[0].mxu0 %v26_v9 }
  0xf4   :  { %v125_v11 = vpop.f32.mrb[0].mxu0 }
  0xf5   :  { %v131_v12 = vadd.f32 %v125_v11, %v25_v10  ;;  %v206_v13 = vpop.f32.mrb[1].mxu0 }
  0xf6   :  { %v128_v14 = vpop.f32.mrb[2].mxu0 }
  0xf7   :  { %133 = vst.msk [vmem:[#allocation2] sm:$0x3] %vm23_vm1, %v131_v12  ;;  %v207_v15 = vpop.f32.mrb[3].mxu0 }
  0xfe   :  { %v137_v17 = vld [vmem:[#allocation2] sm:$0x3] }
  0xff   :  { %v145_v19 = vmul.f32 %v177_v16, %v137_v17 }
 0x101   :  { %v153_v20 = vadd.f32 %v178_v18, %v145_v19 }
 0x103   :  { %154 = vst.msk [vmem:[#allocation3] sm:$0x3] %vm23_vm1, %v153_v20 }
 0x104   :  { %230 = shalt.err (!%p227_p4)
}
 0x105   :  { %s231_s13 = scalar_lea.hbm %s323_s4, 32 }
 0x106   :  { %p232_p5 = scmp.ne.s32.totalorder %s323_s4, %s231_s13  ;;  %p235_p6 = scmp.lt.u32.totalorder %s231_s13, %s323_s4 }
 0x108   :  { %p237_p7 = pnand %p235_p6, %p232_p5 }
 0x10a   :  { %240 = shalt.err (!%p237_p7)
}
 0x10b   :  { %164 = dma.vmem_to_hbm [thread:$0]  %s162_s0, 32, %s323_s4, [#allocation4]  }
 0x10c   :  { %241 = dma.done.wait [#allocation4], 32  }
 0x10d   :  { %242 = vsyncadd [#allocation4], 4294967264 }
 0x10e   :  { %168 = vsyncpa [#allocation4], 1 }

</bundles_post_ra>
